<compile_context>
chip_gen: v6e
topology: v6e:2x2x1
jax: 0.10.0
libtpu: 0.0.40
codegen_flags: <defaults>
</compile_context>

<pallas_src>
import functools

import numpy as np

import jax
import jax.numpy as jnp
from jax import lax
from jax.experimental import pallas as pl
from jax.experimental.pallas import tpu as pltpu


# ----------------------------------------------------------------------------
# Fused kernel: ConvTranspose(2,2,s2) -> concat -> conv3x3 -> BN -> ReLU
#                                                -> conv3x3 -> BN -> ReLU
# All tensors are channel-major (C, P) with P = N*Hp*Wr flattened padded pixels
# in the lane dim.  pat_ref is a (9*c_in, 2*margin + P) im2col scratch; each
# spatial tap (dy, dx) is realised by storing the source at a column offset
# (margin - shift) and reading the matmul operand at the fixed, vreg-aligned
# window [margin, margin + P).
# ----------------------------------------------------------------------------
def _fused_up_kernel(x2p_ref, x1sp_ref, mask_ref,
                     wt_ref, bt_ref,
                     w1_ref, g1_ref, be1_ref,
                     w2_ref, g2_ref, be2_ref,
                     o_ref, pat_ref,
                     *, n_img, hp, wr, h, w, c_skip, c_up, c_mid, margin, eps):
    pd = n_img * hp * wr
    rows_valid = n_img * h * w                       # pixels that are "real"
    inv_rows = 1.0 / rows_valid
    maskb = mask_ref[...] > 0.5                      # (1, pd) interior mask

    # ---- ConvTranspose2d(k=2, s=2) == 2x2 conv over the zero-stuffed x1 ----
    c_t = x1sp_ref.shape[0]
    x1sp = x1sp_ref[...]                             # (c_t, pd)
    for a in range(2):
        for b in range(2):
            k = a * 2 + b
            start = margin + a * wr + b              # shift = -(a*wr + b)
            pat_ref[k * c_t:(k + 1) * c_t, start:start + pd] = x1sp
    x1u = jnp.dot(wt_ref[...], pat_ref[0:4 * c_t, margin:margin + pd],
                  preferred_element_type=jnp.float32)        # (c_up, pd)
    # transposed-conv bias is NOT uniform after conv+pad (border effect), keep
    # it; zero the halo lanes so conv1's padding=1 stays exact.
    x1u = jnp.where(maskb, x1u + bt_ref[...], 0.0)

    # ---- 3x3 conv (pad=1) as ONE matmul  W(c_out, 9*c_in) @ patches --------
    def conv3x3(src_top, src_bot, cin, w_ref):
        # src_* are channel-major (c, pd) values with zeros on the halo lanes.
        c_top = src_top.shape[0]
        for dy in range(3):
            for dx in range(3):
                k = dy * 3 + dx
                start = margin - ((dy - 1) * wr + (dx - 1))
                r0 = k * cin
                pat_ref[r0:r0 + c_top, start:start + pd] = src_top
                if src_bot is not None:              # channel concat, in place
                    pat_ref[r0 + c_top:r0 + cin, start:start + pd] = src_bot
        return jnp.dot(w_ref[...], pat_ref[0:9 * cin, margin:margin + pd],
                       preferred_element_type=jnp.float32)

    def bn_relu(acc, g_ref, be_ref):
        # Train-mode BatchNorm with biased batch statistics over the valid
        # pixels only (halo lanes excluded via select, NaN/garbage safe),
        # then ReLU; halo lanes forced back to exact zeros for the next conv.
        mean = jnp.sum(jnp.where(maskb, acc, 0.0), axis=1, keepdims=True) * inv_rows
        xc = acc - mean
        var = jnp.sum(jnp.where(maskb, xc * xc, 0.0), axis=1, keepdims=True) * inv_rows
        y = xc * (g_ref[...] * lax.rsqrt(var + eps)) + be_ref[...]
        return jnp.where(maskb, jnp.maximum(y, 0.0), 0.0)

    # conv1 over concat([x2, x1u], channel) -> BN -> ReLU
    # (conv bias omitted: it cancels exactly with the batch-mean subtraction)
    h1 = bn_relu(conv3x3(x2p_ref[...], x1u, c_skip + c_up, w1_ref),
                 g1_ref, be1_ref)
    # conv2 -> BN -> ReLU
    h2 = bn_relu(conv3x3(h1, None, c_mid, w2_ref), g2_ref, be2_ref)

    o_ref[...] = h2                                  # lane-dense (c_out, pd)


# ----------------------------------------------------------------------------
# One-time parameter preprocessing (hoisted out of the per-call forward).
# ----------------------------------------------------------------------------
def prepare_params(p):
    c_t_in, c_t_out = p["up_w"].shape[0], p["up_w"].shape[1]
    c_mid, c_in = p["w1"].shape[0], p["w1"].shape[1]
    c_out = p["w2"].shape[0]
    return {
        # ConvTranspose2d weight (Cin, Cout, 2, 2) -> (Cout, 4*Cin), cols (a,b,ci)
        "wt": jnp.transpose(p["up_w"], (1, 2, 3, 0)).reshape(c_t_out, 4 * c_t_in),
        "bt": p["up_b"].reshape(c_t_out, 1),
        # Conv2d weight (Cout, Cin, 3, 3) -> (Cout, 9*Cin), cols (dy,dx,ci)
        "w1": jnp.transpose(p["w1"], (0, 2, 3, 1)).reshape(c_mid, 9 * c_in),
        "g1": p["g1"].reshape(c_mid, 1), "be1": p["be1"].reshape(c_mid, 1),
        "w2": jnp.transpose(p["w2"], (0, 2, 3, 1)).reshape(c_out, 9 * c_mid),
        "g2": p["g2"].reshape(c_out, 1), "be2": p["be2"].reshape(c_out, 1),
        # NOTE: conv biases b1/b2 intentionally dropped (cancel under train BN).
    }


# ----------------------------------------------------------------------------
# up.forward(x1, x2) — inputs/outputs are NCHW (PyTorch convention).
# ----------------------------------------------------------------------------
@jax.jit
def up_forward(x1_nchw, x2_nchw, prep):
    zero = jnp.float32(0.0)
    x1 = jnp.transpose(x1_nchw.astype(jnp.float32), (1, 0, 2, 3))  # (c_t, N, H1, W1)
    x2 = jnp.transpose(x2_nchw.astype(jnp.float32), (1, 0, 2, 3))  # (c_skip, N, ., .)
    c_t, n, h1, w1 = x1.shape
    c_skip = x2.shape[0]
    h, w = 2 * h1, 2 * w1                      # spatial size after upscale

    # F.pad exactly as the module is written: diffX (an H difference) pads W
    # and diffY (a W difference) pads H; int(d/2) is round-toward-zero.
    diffX = h - x2.shape[2]
    diffY = w - x2.shape[3]
    x2 = lax.pad(x2, zero, ((0, 0, 0), (0, 0, 0),
                            (diffY // 2, int(diffY / 2), 0),
                            (diffX // 2, int(diffX / 2), 0)))
    assert x2.shape[2:] == (h, w)

    hp = h + 2                                 # +1 halo row top/bottom
    wr = max(32, pl.next_power_of_2(w + 2))    # padded row width (pow2 >= W+2)
    pd = n * hp * wr
    margin = max(128, ((wr + 2 + 127) // 128) * 128)

    # Skip connection on the zero-padded conv grid (pad=1 halo materialised
    # here once; the kernel never re-pads).
    x2p = lax.pad(x2, zero, ((0, 0, 0), (0, 0, 0),
                             (1, hp - h - 1, 0),
                             (1, wr - w - 1, 0))).reshape(c_skip, pd)
    # x1 zero-stuffed onto the same grid (stride-2 interior padding): the
    # ConvTranspose2d(k=2, s=2) becomes a plain 2x2 conv inside the kernel.
    x1sp = lax.pad(x1, zero, ((0, 0, 0), (0, 0, 0),
                              (1, hp - 2 * h1, 1),
                              (1, wr - 2 * w1, 1))).reshape(c_t, pd)

    # Interior-pixel mask: compile-time constant (numpy -> baked into the HLO).
    rr, cc = np.arange(hp), np.arange(wr)
    m2d = ((rr >= 1) & (rr <= h))[:, None] & ((cc >= 1) & (cc <= w))[None, :]
    mask = jnp.asarray(np.tile(m2d[None], (n, 1, 1)).reshape(1, pd).astype(np.float32))

    c_up = prep["wt"].shape[0]
    c_mid = prep["w1"].shape[0]
    c_out = prep["w2"].shape[0]
    c_in = c_skip + c_up

    kern = functools.partial(
        _fused_up_kernel, n_img=n, hp=hp, wr=wr, h=h, w=w,
        c_skip=c_skip, c_up=c_up, c_mid=c_mid, margin=margin, eps=1e-5)

    def full(shape):
        return pl.BlockSpec(shape, lambda i: (0,) * len(shape))

    out_flat = pl.pallas_call(
        kern,
        out_shape=jax.ShapeDtypeStruct((c_out, pd), jnp.float32),
        grid=(1,),
        in_specs=[full((c_skip, pd)), full((c_t, pd)), full((1, pd)),
                  full(prep["wt"].shape), full((c_up, 1)),
                  full(prep["w1"].shape), full((c_mid, 1)), full((c_mid, 1)),
                  full(prep["w2"].shape), full((c_out, 1)), full((c_out, 1))],
        out_specs=full((c_out, pd)),
        scratch_shapes=[pltpu.VMEM(
            (max(9 * c_in, 9 * c_mid, 4 * c_t), pd + 2 * margin), jnp.float32)],
        compiler_params=pltpu.CompilerParams(dimension_semantics=("arbitrary",)),
    )(x2p, x1sp, mask,
      prep["wt"], prep["bt"],
      prep["w1"], prep["g1"], prep["be1"],
      prep["w2"], prep["g2"], prep["be2"])

    out = out_flat.reshape(c_out, n, hp, wr)[:, :, 1:1 + h, 1:1 + w]
    return jnp.transpose(out, (1, 0, 2, 3))   # back to NCHW


# ----------------------------------------------------------------------------
# Pure-JAX reference of the PyTorch module (for an in-script self-check).
# ----------------------------------------------------------------------------
def up_forward_reference(x1, x2, p, eps=1e-5):
    zero = jnp.float32(0.0)
    hi = jax.lax.Precision.HIGHEST
    y = jnp.einsum('ncij,cdab->ndiajb', x1, p["up_w"], precision=hi)
    n, cd, h1, _, w1, _ = y.shape
    x1u = y.reshape(n, cd, 2 * h1, 2 * w1) + p["up_b"][None, :, None, None]
    diffX = x1u.shape[2] - x2.shape[2]
    diffY = x1u.shape[3] - x2.shape[3]
    x2 = lax.pad(x2, zero, ((0, 0, 0), (0, 0, 0),
                            (diffY // 2, int(diffY / 2), 0),
                            (diffX // 2, int(diffX / 2), 0)))
    x = jnp.concatenate([x2, x1u], axis=1)

    def conv_bn_relu(x, wgt, b, g, be):
        y = lax.conv_general_dilated(x, wgt, (1, 1), ((1, 1), (1, 1)),
                                     dimension_numbers=('NCHW', 'OIHW', 'NCHW'),
                                     precision=hi)
        y = y + b[None, :, None, None]
        mean = jnp.mean(y, axis=(0, 2, 3), keepdims=True)
        var = jnp.mean((y - mean) ** 2, axis=(0, 2, 3), keepdims=True)
        y = (y - mean) * lax.rsqrt(var + eps) * g[None, :, None, None] \
            + be[None, :, None, None]
        return jnp.maximum(y, 0.0)

    x = conv_bn_relu(x, p["w1"], p["b1"], p["g1"], p["be1"])
    x = conv_bn_relu(x, p["w2"], p["b2"], p["g2"], p["be2"])
    return x


if __name__ == "__main__":
    N = 2
    trans_in_ch = 4            # x1 channels (= ConvTranspose in/out channels)
    skip_ch = 4                # x2 channels
    in_ch = trans_in_ch + skip_ch
    out_ch = 8

    key = jax.random.PRNGKey(0)
    keys = jax.random.split(key, 12)
    raw = {
        "up_w": 0.1 * jax.random.normal(keys[0], (trans_in_ch, trans_in_ch, 2, 2), jnp.float32),
        "up_b": 0.1 * jax.random.normal(keys[1], (trans_in_ch,), jnp.float32),
        "w1":   0.1 * jax.random.normal(keys[2], (out_ch, in_ch, 3, 3), jnp.float32),
        "b1":   0.1 * jax.random.normal(keys[3], (out_ch,), jnp.float32),
        "g1":   1.0 + 0.1 * jax.random.normal(keys[4], (out_ch,), jnp.float32),
        "be1":  0.1 * jax.random.normal(keys[5], (out_ch,), jnp.float32),
        "w2":   0.1 * jax.random.normal(keys[6], (out_ch, out_ch, 3, 3), jnp.float32),
        "b2":   0.1 * jax.random.normal(keys[7], (out_ch,), jnp.float32),
        "g2":   1.0 + 0.1 * jax.random.normal(keys[8], (out_ch,), jnp.float32),
        "be2":  0.1 * jax.random.normal(keys[9], (out_ch,), jnp.float32),
    }
    prep = prepare_params(raw)                       # one-time, outside jit

    x1 = jax.random.normal(keys[10], (N, trans_in_ch, 8, 8), jnp.float32)    # NCHW
    x2 = jax.random.normal(keys[11], (N, skip_ch, 16, 16), jnp.float32)      # NCHW

    out = jax.block_until_ready(up_forward(x1, x2, prep))
    assert out.shape == (N, out_ch, 16, 16), out.shape
    assert bool(jnp.all(jnp.isfinite(out)))

    ref = jax.block_until_ready(up_forward_reference(x1, x2, raw))
    err = float(jnp.max(jnp.abs(out - ref)))
    assert np.isfinite(err) and err < 5e-2, f"max abs err vs reference: {err}"

    print("KERNEL_OK")
</pallas_src>

<mosaic_0001>
module attributes {stable_mosaic.version = 11 : i64} {
  func.func @_fused_up_kernel(%arg0: i32, %arg1: memref<4x1152xf32, #tpu.memory_space<vmem>>, %arg2: memref<4x1152xf32, #tpu.memory_space<vmem>>, %arg3: memref<1x1152xf32, #tpu.memory_space<vmem>>, %arg4: memref<4x16xf32, #tpu.memory_space<vmem>>, %arg5: memref<4x1xf32, #tpu.memory_space<vmem>>, %arg6: memref<8x72xf32, #tpu.memory_space<vmem>>, %arg7: memref<8x1xf32, #tpu.memory_space<vmem>>, %arg8: memref<8x1xf32, #tpu.memory_space<vmem>>, %arg9: memref<8x72xf32, #tpu.memory_space<vmem>>, %arg10: memref<8x1xf32, #tpu.memory_space<vmem>>, %arg11: memref<8x1xf32, #tpu.memory_space<vmem>>, %arg12: memref<8x1152xf32, #tpu.memory_space<vmem>>, %arg13: memref<72x1408xf32, #tpu.memory_space<vmem>>) attributes {dimension_semantics = [#tpu.dimension_semantics<arbitrary>], iteration_bounds = array<i64: 1>, scalar_prefetch = 0 : i64, scratch_operands = 1 : i64, tpu.core_type = #tpu.core_type<tc>, window_params = [{pipeline_mode = #tpu.pipeline_mode<synchronous>, transform_indices = @transform_0, window_bounds = array<i64: 4, 1152>}, {pipeline_mode = #tpu.pipeline_mode<synchronous>, transform_indices = @transform_1, window_bounds = array<i64: 4, 1152>}, {pipeline_mode = #tpu.pipeline_mode<synchronous>, transform_indices = @transform_2, window_bounds = array<i64: 1, 1152>}, {pipeline_mode = #tpu.pipeline_mode<synchronous>, transform_indices = @transform_3, window_bounds = array<i64: 4, 16>}, {pipeline_mode = #tpu.pipeline_mode<synchronous>, transform_indices = @transform_4, window_bounds = array<i64: 4, 1>}, {pipeline_mode = #tpu.pipeline_mode<synchronous>, transform_indices = @transform_5, window_bounds = array<i64: 8, 72>}, {pipeline_mode = #tpu.pipeline_mode<synchronous>, transform_indices = @transform_6, window_bounds = array<i64: 8, 1>}, {pipeline_mode = #tpu.pipeline_mode<synchronous>, transform_indices = @transform_7, window_bounds = array<i64: 8, 1>}, {pipeline_mode = #tpu.pipeline_mode<synchronous>, transform_indices = @transform_8, window_bounds = array<i64: 8, 72>}, {pipeline_mode = #tpu.pipeline_mode<synchronous>, transform_indices = @transform_9, window_bounds = array<i64: 8, 1>}, {pipeline_mode = #tpu.pipeline_mode<synchronous>, transform_indices = @transform_10, window_bounds = array<i64: 8, 1>}, {pipeline_mode = #tpu.pipeline_mode<synchronous>, transform_indices = @transform_11, window_bounds = array<i64: 8, 1152>}]} {
    %c0 = arith.constant 0 : index
    %c0_0 = arith.constant 0 : index
    %0 = vector.load %arg3[%c0, %c0_0] : memref<1x1152xf32, #tpu.memory_space<vmem>>, vector<1x1152xf32>
    %cst = arith.constant 5.000000e-01 : f32
    %1 = vector.broadcast %cst : f32 to vector<1x1152xf32>
    %2 = arith.cmpf ogt, %0, %1 : vector<1x1152xf32>
    %c0_1 = arith.constant 0 : index
    %c0_2 = arith.constant 0 : index
    %3 = vector.load %arg2[%c0_1, %c0_2] : memref<4x1152xf32, #tpu.memory_space<vmem>>, vector<4x1152xf32>
    %c0_3 = arith.constant 0 : index
    %c128 = arith.constant 128 : index
    %4 = vector.load %arg13[%c0_3, %c128] : memref<72x1408xf32, #tpu.memory_space<vmem>>, vector<4x1152xf32>
    tpu.vector_store %arg13[%c0_3, %c128], %3 {strides = array<i32>} : memref<72x1408xf32, #tpu.memory_space<vmem>>, vector<4x1152xf32>,
    %c4 = arith.constant 4 : index
    %c129 = arith.constant 129 : index
    %5 = vector.load %arg13[%c4, %c129] : memref<72x1408xf32, #tpu.memory_space<vmem>>, vector<4x1152xf32>
    tpu.vector_store %arg13[%c4, %c129], %3 {strides = array<i32>} : memref<72x1408xf32, #tpu.memory_space<vmem>>, vector<4x1152xf32>,
    %c8 = arith.constant 8 : index
    %c160 = arith.constant 160 : index
    %6 = vector.load %arg13[%c8, %c160] : memref<72x1408xf32, #tpu.memory_space<vmem>>, vector<4x1152xf32>
    tpu.vector_store %arg13[%c8, %c160], %3 {strides = array<i32>} : memref<72x1408xf32, #tpu.memory_space<vmem>>, vector<4x1152xf32>,
    %c12 = arith.constant 12 : index
    %c161 = arith.constant 161 : index
    %7 = vector.load %arg13[%c12, %c161] : memref<72x1408xf32, #tpu.memory_space<vmem>>, vector<4x1152xf32>
    tpu.vector_store %arg13[%c12, %c161], %3 {strides = array<i32>} : memref<72x1408xf32, #tpu.memory_space<vmem>>, vector<4x1152xf32>,
    %c0_4 = arith.constant 0 : index
    %c0_5 = arith.constant 0 : index
    %8 = vector.load %arg4[%c0_4, %c0_5] : memref<4x16xf32, #tpu.memory_space<vmem>>, vector<4x16xf32>
    %c0_6 = arith.constant 0 : index
    %c128_7 = arith.constant 128 : index
    %9 = vector.load %arg13[%c0_6, %c128_7] : memref<72x1408xf32, #tpu.memory_space<vmem>>, vector<16x1152xf32>
    %cst_8 = arith.constant dense<0.000000e+00> : vector<4x1152xf32>
    %10 = tpu.matmul %8, %9, %cst_8 {dimension_numbers = #tpu.dot_dimension_numbers<[1], [0], [0], [1], [0, 0, 1, 1], [], []>} : vector<4x16xf32>, vector<16x1152xf32>, vector<4x1152xf32> -> vector<4x1152xf32>
    %c0_9 = arith.constant 0 : index
    %c0_10 = arith.constant 0 : index
    %11 = vector.load %arg5[%c0_9, %c0_10] : memref<4x1xf32, #tpu.memory_space<vmem>>, vector<4x1xf32>
    %12 = vector.broadcast %11 : vector<4x1xf32> to vector<4x1152xf32>
    %13 = arith.addf %10, %12 : vector<4x1152xf32>
    %cst_11 = arith.constant 0.000000e+00 : f32
    %14 = vector.shape_cast %2 : vector<1x1152xi1> to vector<1x1152xi1>
    %15 = vector.broadcast %14 : vector<1x1152xi1> to vector<4x1152xi1>
    %16 = vector.broadcast %cst_11 : f32 to vector<4x1152xf32>
    %17 = arith.select %15, %13, %16 : vector<4x1152xi1>, vector<4x1152xf32>
    %c0_12 = arith.constant 0 : index
    %c0_13 = arith.constant 0 : index
    %18 = vector.load %arg1[%c0_12, %c0_13] : memref<4x1152xf32, #tpu.memory_space<vmem>>, vector<4x1152xf32>
    %c0_14 = arith.constant 0 : index
    %c161_15 = arith.constant 161 : index
    %19 = vector.load %arg13[%c0_14, %c161_15] : memref<72x1408xf32, #tpu.memory_space<vmem>>, vector<4x1152xf32>
    tpu.vector_store %arg13[%c0_14, %c161_15], %18 {strides = array<i32>} : memref<72x1408xf32, #tpu.memory_space<vmem>>, vector<4x1152xf32>,
    %c4_16 = arith.constant 4 : index
    %c161_17 = arith.constant 161 : index
    %20 = vector.load %arg13[%c4_16, %c161_17] : memref<72x1408xf32, #tpu.memory_space<vmem>>, vector<4x1152xf32>
    tpu.vector_store %arg13[%c4_16, %c161_17], %17 {strides = array<i32>} : memref<72x1408xf32, #tpu.memory_space<vmem>>, vector<4x1152xf32>,
    %c8_18 = arith.constant 8 : index
    %c160_19 = arith.constant 160 : index
    %21 = vector.load %arg13[%c8_18, %c160_19] : memref<72x1408xf32, #tpu.memory_space<vmem>>, vector<4x1152xf32>
    tpu.vector_store %arg13[%c8_18, %c160_19], %18 {strides = array<i32>} : memref<72x1408xf32, #tpu.memory_space<vmem>>, vector<4x1152xf32>,
    %c12_20 = arith.constant 12 : index
    %c160_21 = arith.constant 160 : index
    %22 = vector.load %arg13[%c12_20, %c160_21] : memref<72x1408xf32, #tpu.memory_space<vmem>>, vector<4x1152xf32>
    tpu.vector_store %arg13[%c12_20, %c160_21], %17 {strides = array<i32>} : memref<72x1408xf32, #tpu.memory_space<vmem>>, vector<4x1152xf32>,
    %c16 = arith.constant 16 : index
    %c159 = arith.constant 159 : index
    %23 = vector.load %arg13[%c16, %c159] : memref<72x1408xf32, #tpu.memory_space<vmem>>, vector<4x1152xf32>
    tpu.vector_store %arg13[%c16, %c159], %18 {strides = array<i32>} : memref<72x1408xf32, #tpu.memory_space<vmem>>, vector<4x1152xf32>,
    %c20 = arith.constant 20 : index
    %c159_22 = arith.constant 159 : index
    %24 = vector.load %arg13[%c20, %c159_22] : memref<72x1408xf32, #tpu.memory_space<vmem>>, vector<4x1152xf32>
    tpu.vector_store %arg13[%c20, %c159_22], %17 {strides = array<i32>} : memref<72x1408xf32, #tpu.memory_space<vmem>>, vector<4x1152xf32>,
    %c24 = arith.constant 24 : index
    %c129_23 = arith.constant 129 : index
    %25 = vector.load %arg13[%c24, %c129_23] : memref<72x1408xf32, #tpu.memory_space<vmem>>, vector<4x1152xf32>
    tpu.vector_store %arg13[%c24, %c129_23], %18 {strides = array<i32>} : memref<72x1408xf32, #tpu.memory_space<vmem>>, vector<4x1152xf32>,
    %c28 = arith.constant 28 : index
    %c129_24 = arith.constant 129 : index
    %26 = vector.load %arg13[%c28, %c129_24] : memref<72x1408xf32, #tpu.memory_space<vmem>>, vector<4x1152xf32>
    tpu.vector_store %arg13[%c28, %c129_24], %17 {strides = array<i32>} : memref<72x1408xf32, #tpu.memory_space<vmem>>, vector<4x1152xf32>,
    %c32 = arith.constant 32 : index
    %c128_25 = arith.constant 128 : index
    %27 = vector.load %arg13[%c32, %c128_25] : memref<72x1408xf32, #tpu.memory_space<vmem>>, vector<4x1152xf32>
    tpu.vector_store %arg13[%c32, %c128_25], %18 {strides = array<i32>} : memref<72x1408xf32, #tpu.memory_space<vmem>>, vector<4x1152xf32>,
    %c36 = arith.constant 36 : index
    %c128_26 = arith.constant 128 : index
    %28 = vector.load %arg13[%c36, %c128_26] : memref<72x1408xf32, #tpu.memory_space<vmem>>, vector<4x1152xf32>
    tpu.vector_store %arg13[%c36, %c128_26], %17 {strides = array<i32>} : memref<72x1408xf32, #tpu.memory_space<vmem>>, vector<4x1152xf32>,
    %c40 = arith.constant 40 : index
    %c127 = arith.constant 127 : index
    %29 = vector.load %arg13[%c40, %c127] : memref<72x1408xf32, #tpu.memory_space<vmem>>, vector<4x1152xf32>
    tpu.vector_store %arg13[%c40, %c127], %18 {strides = array<i32>} : memref<72x1408xf32, #tpu.memory_space<vmem>>, vector<4x1152xf32>,
    %c44 = arith.constant 44 : index
    %c127_27 = arith.constant 127 : index
    %30 = vector.load %arg13[%c44, %c127_27] : memref<72x1408xf32, #tpu.memory_space<vmem>>, vector<4x1152xf32>
    tpu.vector_store %arg13[%c44, %c127_27], %17 {strides = array<i32>} : memref<72x1408xf32, #tpu.memory_space<vmem>>, vector<4x1152xf32>,
    %c48 = arith.constant 48 : index
    %c97 = arith.constant 97 : index
    %31 = vector.load %arg13[%c48, %c97] : memref<72x1408xf32, #tpu.memory_space<vmem>>, vector<4x1152xf32>
    tpu.vector_store %arg13[%c48, %c97], %18 {strides = array<i32>} : memref<72x1408xf32, #tpu.memory_space<vmem>>, vector<4x1152xf32>,
    %c52 = arith.constant 52 : index
    %c97_28 = arith.constant 97 : index
    %32 = vector.load %arg13[%c52, %c97_28] : memref<72x1408xf32, #tpu.memory_space<vmem>>, vector<4x1152xf32>
    tpu.vector_store %arg13[%c52, %c97_28], %17 {strides = array<i32>} : memref<72x1408xf32, #tpu.memory_space<vmem>>, vector<4x1152xf32>,
    %c56 = arith.constant 56 : index
    %c96 = arith.constant 96 : index
    %33 = vector.load %arg13[%c56, %c96] : memref<72x1408xf32, #tpu.memory_space<vmem>>, vector<4x1152xf32>
    tpu.vector_store %arg13[%c56, %c96], %18 {strides = array<i32>} : memref<72x1408xf32, #tpu.memory_space<vmem>>, vector<4x1152xf32>,
    %c60 = arith.constant 60 : index
    %c96_29 = arith.constant 96 : index
    %34 = vector.load %arg13[%c60, %c96_29] : memref<72x1408xf32, #tpu.memory_space<vmem>>, vector<4x1152xf32>
    tpu.vector_store %arg13[%c60, %c96_29], %17 {strides = array<i32>} : memref<72x1408xf32, #tpu.memory_space<vmem>>, vector<4x1152xf32>,
    %c64 = arith.constant 64 : index
    %c95 = arith.constant 95 : index
    %35 = vector.load %arg13[%c64, %c95] : memref<72x1408xf32, #tpu.memory_space<vmem>>, vector<4x1152xf32>
    tpu.vector_store %arg13[%c64, %c95], %18 {strides = array<i32>} : memref<72x1408xf32, #tpu.memory_space<vmem>>, vector<4x1152xf32>,
    %c68 = arith.constant 68 : index
    %c95_30 = arith.constant 95 : index
    %36 = vector.load %arg13[%c68, %c95_30] : memref<72x1408xf32, #tpu.memory_space<vmem>>, vector<4x1152xf32>
    tpu.vector_store %arg13[%c68, %c95_30], %17 {strides = array<i32>} : memref<72x1408xf32, #tpu.memory_space<vmem>>, vector<4x1152xf32>,
    %c0_31 = arith.constant 0 : index
    %c0_32 = arith.constant 0 : index
    %37 = vector.load %arg6[%c0_31, %c0_32] : memref<8x72xf32, #tpu.memory_space<vmem>>, vector<8x72xf32>
    %c0_33 = arith.constant 0 : index
    %c128_34 = arith.constant 128 : index
    %38 = vector.load %arg13[%c0_33, %c128_34] : memref<72x1408xf32, #tpu.memory_space<vmem>>, vector<72x1152xf32>
    %cst_35 = arith.constant dense<0.000000e+00> : vector<8x1152xf32>
    %39 = tpu.matmul %37, %38, %cst_35 {dimension_numbers = #tpu.dot_dimension_numbers<[1], [0], [0], [1], [0, 0, 1, 1], [], []>} : vector<8x72xf32>, vector<72x1152xf32>, vector<8x1152xf32> -> vector<8x1152xf32>
    %cst_36 = arith.constant 0.000000e+00 : f32
    %40 = vector.shape_cast %2 : vector<1x1152xi1> to vector<1x1152xi1>
    %41 = vector.broadcast %40 : vector<1x1152xi1> to vector<8x1152xi1>
    %42 = vector.broadcast %cst_36 : f32 to vector<8x1152xf32>
    %43 = arith.select %41, %39, %42 : vector<8x1152xi1>, vector<8x1152xf32>
    %cst_37 = arith.constant dense<0.000000e+00> : vector<8xf32>
    %44 = vector.multi_reduction <add>, %43, %cst_37 [1] : vector<8x1152xf32> to vector<8xf32>
    %45 = vector.shape_cast %44 : vector<8xf32> to vector<8x1xf32>
    %cst_38 = arith.constant 0.001953125 : f32
    %46 = vector.broadcast %cst_38 : f32 to vector<8x1xf32>
    %47 = arith.mulf %45, %46 : vector<8x1xf32>
    %48 = vector.broadcast %47 : vector<8x1xf32> to vector<8x1152xf32>
    %49 = arith.subf %39, %48 : vector<8x1152xf32>
    %50 = arith.mulf %49, %49 : vector<8x1152xf32>
    %cst_39 = arith.constant 0.000000e+00 : f32
    %51 = vector.shape_cast %2 : vector<1x1152xi1> to vector<1x1152xi1>
    %52 = vector.broadcast %51 : vector<1x1152xi1> to vector<8x1152xi1>
    %53 = vector.broadcast %cst_39 : f32 to vector<8x1152xf32>
    %54 = arith.select %52, %50, %53 : vector<8x1152xi1>, vector<8x1152xf32>
    %cst_40 = arith.constant dense<0.000000e+00> : vector<8xf32>
    %55 = vector.multi_reduction <add>, %54, %cst_40 [1] : vector<8x1152xf32> to vector<8xf32>
    %56 = vector.shape_cast %55 : vector<8xf32> to vector<8x1xf32>
    %cst_41 = arith.constant 0.001953125 : f32
    %57 = vector.broadcast %cst_41 : f32 to vector<8x1xf32>
    %58 = arith.mulf %56, %57 : vector<8x1xf32>
    %c0_42 = arith.constant 0 : index
    %c0_43 = arith.constant 0 : index
    %59 = vector.load %arg7[%c0_42, %c0_43] : memref<8x1xf32, #tpu.memory_space<vmem>>, vector<8x1xf32>
    %cst_44 = arith.constant 9.99999974E-6 : f32
    %60 = vector.broadcast %cst_44 : f32 to vector<8x1xf32>
    %61 = arith.addf %58, %60 : vector<8x1xf32>
    %62 = math.rsqrt %61 : vector<8x1xf32>
    %63 = arith.mulf %59, %62 : vector<8x1xf32>
    %64 = vector.broadcast %63 : vector<8x1xf32> to vector<8x1152xf32>
    %65 = arith.mulf %49, %64 : vector<8x1152xf32>
    %c0_45 = arith.constant 0 : index
    %c0_46 = arith.constant 0 : index
    %66 = vector.load %arg8[%c0_45, %c0_46] : memref<8x1xf32, #tpu.memory_space<vmem>>, vector<8x1xf32>
    %67 = vector.broadcast %66 : vector<8x1xf32> to vector<8x1152xf32>
    %68 = arith.addf %65, %67 : vector<8x1152xf32>
    %cst_47 = arith.constant 0.000000e+00 : f32
    %69 = vector.broadcast %cst_47 : f32 to vector<8x1152xf32>
    %70 = arith.maximumf %68, %69 : vector<8x1152xf32>
    %cst_48 = arith.constant 0.000000e+00 : f32
    %71 = vector.shape_cast %2 : vector<1x1152xi1> to vector<1x1152xi1>
    %72 = vector.broadcast %71 : vector<1x1152xi1> to vector<8x1152xi1>
    %73 = vector.broadcast %cst_48 : f32 to vector<8x1152xf32>
    %74 = arith.select %72, %70, %73 : vector<8x1152xi1>, vector<8x1152xf32>
    %c0_49 = arith.constant 0 : index
    %c161_50 = arith.constant 161 : index
    %75 = vector.load %arg13[%c0_49, %c161_50] : memref<72x1408xf32, #tpu.memory_space<vmem>>, vector<8x1152xf32>
    tpu.vector_store %arg13[%c0_49, %c161_50], %74 {strides = array<i32>} : memref<72x1408xf32, #tpu.memory_space<vmem>>, vector<8x1152xf32>,
    %c8_51 = arith.constant 8 : index
    %c160_52 = arith.constant 160 : index
    %76 = vector.load %arg13[%c8_51, %c160_52] : memref<72x1408xf32, #tpu.memory_space<vmem>>, vector<8x1152xf32>
    tpu.vector_store %arg13[%c8_51, %c160_52], %74 {strides = array<i32>} : memref<72x1408xf32, #tpu.memory_space<vmem>>, vector<8x1152xf32>,
    %c16_53 = arith.constant 16 : index
    %c159_54 = arith.constant 159 : index
    %77 = vector.load %arg13[%c16_53, %c159_54] : memref<72x1408xf32, #tpu.memory_space<vmem>>, vector<8x1152xf32>
    tpu.vector_store %arg13[%c16_53, %c159_54], %74 {strides = array<i32>} : memref<72x1408xf32, #tpu.memory_space<vmem>>, vector<8x1152xf32>,
    %c24_55 = arith.constant 24 : index
    %c129_56 = arith.constant 129 : index
    %78 = vector.load %arg13[%c24_55, %c129_56] : memref<72x1408xf32, #tpu.memory_space<vmem>>, vector<8x1152xf32>
    tpu.vector_store %arg13[%c24_55, %c129_56], %74 {strides = array<i32>} : memref<72x1408xf32, #tpu.memory_space<vmem>>, vector<8x1152xf32>,
    %c32_57 = arith.constant 32 : index
    %c128_58 = arith.constant 128 : index
    %79 = vector.load %arg13[%c32_57, %c128_58] : memref<72x1408xf32, #tpu.memory_space<vmem>>, vector<8x1152xf32>
    tpu.vector_store %arg13[%c32_57, %c128_58], %74 {strides = array<i32>} : memref<72x1408xf32, #tpu.memory_space<vmem>>, vector<8x1152xf32>,
    %c40_59 = arith.constant 40 : index
    %c127_60 = arith.constant 127 : index
    %80 = vector.load %arg13[%c40_59, %c127_60] : memref<72x1408xf32, #tpu.memory_space<vmem>>, vector<8x1152xf32>
    tpu.vector_store %arg13[%c40_59, %c127_60], %74 {strides = array<i32>} : memref<72x1408xf32, #tpu.memory_space<vmem>>, vector<8x1152xf32>,
    %c48_61 = arith.constant 48 : index
    %c97_62 = arith.constant 97 : index
    %81 = vector.load %arg13[%c48_61, %c97_62] : memref<72x1408xf32, #tpu.memory_space<vmem>>, vector<8x1152xf32>
    tpu.vector_store %arg13[%c48_61, %c97_62], %74 {strides = array<i32>} : memref<72x1408xf32, #tpu.memory_space<vmem>>, vector<8x1152xf32>,
    %c56_63 = arith.constant 56 : index
    %c96_64 = arith.constant 96 : index
    %82 = vector.load %arg13[%c56_63, %c96_64] : memref<72x1408xf32, #tpu.memory_space<vmem>>, vector<8x1152xf32>
    tpu.vector_store %arg13[%c56_63, %c96_64], %74 {strides = array<i32>} : memref<72x1408xf32, #tpu.memory_space<vmem>>, vector<8x1152xf32>,
    %c64_65 = arith.constant 64 : index
    %c95_66 = arith.constant 95 : index
    %83 = vector.load %arg13[%c64_65, %c95_66] : memref<72x1408xf32, #tpu.memory_space<vmem>>, vector<8x1152xf32>
    tpu.vector_store %arg13[%c64_65, %c95_66], %74 {strides = array<i32>} : memref<72x1408xf32, #tpu.memory_space<vmem>>, vector<8x1152xf32>,
    %c0_67 = arith.constant 0 : index
    %c0_68 = arith.constant 0 : index
    %84 = vector.load %arg9[%c0_67, %c0_68] : memref<8x72xf32, #tpu.memory_space<vmem>>, vector<8x72xf32>
    %c0_69 = arith.constant 0 : index
    %c128_70 = arith.constant 128 : index
    %85 = vector.load %arg13[%c0_69, %c128_70] : memref<72x1408xf32, #tpu.memory_space<vmem>>, vector<72x1152xf32>
    %cst_71 = arith.constant dense<0.000000e+00> : vector<8x1152xf32>
    %86 = tpu.matmul %84, %85, %cst_71 {dimension_numbers = #tpu.dot_dimension_numbers<[1], [0], [0], [1], [0, 0, 1, 1], [], []>} : vector<8x72xf32>, vector<72x1152xf32>, vector<8x1152xf32> -> vector<8x1152xf32>
    %cst_72 = arith.constant 0.000000e+00 : f32
    %87 = vector.shape_cast %2 : vector<1x1152xi1> to vector<1x1152xi1>
    %88 = vector.broadcast %87 : vector<1x1152xi1> to vector<8x1152xi1>
    %89 = vector.broadcast %cst_72 : f32 to vector<8x1152xf32>
    %90 = arith.select %88, %86, %89 : vector<8x1152xi1>, vector<8x1152xf32>
    %cst_73 = arith.constant dense<0.000000e+00> : vector<8xf32>
    %91 = vector.multi_reduction <add>, %90, %cst_73 [1] : vector<8x1152xf32> to vector<8xf32>
    %92 = vector.shape_cast %91 : vector<8xf32> to vector<8x1xf32>
    %cst_74 = arith.constant 0.001953125 : f32
    %93 = vector.broadcast %cst_74 : f32 to vector<8x1xf32>
    %94 = arith.mulf %92, %93 : vector<8x1xf32>
    %95 = vector.broadcast %94 : vector<8x1xf32> to vector<8x1152xf32>
    %96 = arith.subf %86, %95 : vector<8x1152xf32>
    %97 = arith.mulf %96, %96 : vector<8x1152xf32>
    %cst_75 = arith.constant 0.000000e+00 : f32
    %98 = vector.shape_cast %2 : vector<1x1152xi1> to vector<1x1152xi1>
    %99 = vector.broadcast %98 : vector<1x1152xi1> to vector<8x1152xi1>
    %100 = vector.broadcast %cst_75 : f32 to vector<8x1152xf32>
    %101 = arith.select %99, %97, %100 : vector<8x1152xi1>, vector<8x1152xf32>
    %cst_76 = arith.constant dense<0.000000e+00> : vector<8xf32>
    %102 = vector.multi_reduction <add>, %101, %cst_76 [1] : vector<8x1152xf32> to vector<8xf32>
    %103 = vector.shape_cast %102 : vector<8xf32> to vector<8x1xf32>
    %cst_77 = arith.constant 0.001953125 : f32
    %104 = vector.broadcast %cst_77 : f32 to vector<8x1xf32>
    %105 = arith.mulf %103, %104 : vector<8x1xf32>
    %c0_78 = arith.constant 0 : index
    %c0_79 = arith.constant 0 : index
    %106 = vector.load %arg10[%c0_78, %c0_79] : memref<8x1xf32, #tpu.memory_space<vmem>>, vector<8x1xf32>
    %cst_80 = arith.constant 9.99999974E-6 : f32
    %107 = vector.broadcast %cst_80 : f32 to vector<8x1xf32>
    %108 = arith.addf %105, %107 : vector<8x1xf32>
    %109 = math.rsqrt %108 : vector<8x1xf32>
    %110 = arith.mulf %106, %109 : vector<8x1xf32>
    %111 = vector.broadcast %110 : vector<8x1xf32> to vector<8x1152xf32>
    %112 = arith.mulf %96, %111 : vector<8x1152xf32>
    %c0_81 = arith.constant 0 : index
    %c0_82 = arith.constant 0 : index
    %113 = vector.load %arg11[%c0_81, %c0_82] : memref<8x1xf32, #tpu.memory_space<vmem>>, vector<8x1xf32>
    %114 = vector.broadcast %113 : vector<8x1xf32> to vector<8x1152xf32>
    %115 = arith.addf %112, %114 : vector<8x1152xf32>
    %cst_83 = arith.constant 0.000000e+00 : f32
    %116 = vector.broadcast %cst_83 : f32 to vector<8x1152xf32>
    %117 = arith.maximumf %115, %116 : vector<8x1152xf32>
    %cst_84 = arith.constant 0.000000e+00 : f32
    %118 = vector.shape_cast %2 : vector<1x1152xi1> to vector<1x1152xi1>
    %119 = vector.broadcast %118 : vector<1x1152xi1> to vector<8x1152xi1>
    %120 = vector.broadcast %cst_84 : f32 to vector<8x1152xf32>
    %121 = arith.select %119, %117, %120 : vector<8x1152xi1>, vector<8x1152xf32>
    %c0_85 = arith.constant 0 : index
    %c0_86 = arith.constant 0 : index
    %122 = vector.load %arg12[%c0_85, %c0_86] : memref<8x1152xf32, #tpu.memory_space<vmem>>, vector<8x1152xf32>
    tpu.vector_store %arg12[%c0_85, %c0_86], %121 {strides = array<i32>} : memref<8x1152xf32, #tpu.memory_space<vmem>>, vector<8x1152xf32>,
    return
  }
  func.func @transform_0(%arg0: i32) -> (i32, i32) {
    %c0_i32 = arith.constant 0 : i32
    %c0_i32_0 = arith.constant 0 : i32
    %c0_i32_1 = arith.constant 0 : i32
    return %c0_i32, %c0_i32_0 : i32, i32
  }
  func.func @transform_1(%arg0: i32) -> (i32, i32) {
    %c0_i32 = arith.constant 0 : i32
    %c0_i32_0 = arith.constant 0 : i32
    %c0_i32_1 = arith.constant 0 : i32
    return %c0_i32, %c0_i32_0 : i32, i32
  }
  func.func @transform_2(%arg0: i32) -> (i32, i32) {
    %c0_i32 = arith.constant 0 : i32
    %c0_i32_0 = arith.constant 0 : i32
    %c0_i32_1 = arith.constant 0 : i32
    return %c0_i32, %c0_i32_0 : i32, i32
  }
  func.func @transform_3(%arg0: i32) -> (i32, i32) {
    %c0_i32 = arith.constant 0 : i32
    %c0_i32_0 = arith.constant 0 : i32
    %c0_i32_1 = arith.constant 0 : i32
    return %c0_i32, %c0_i32_0 : i32, i32
  }
  func.func @transform_4(%arg0: i32) -> (i32, i32) {
    %c0_i32 = arith.constant 0 : i32
    %c0_i32_0 = arith.constant 0 : i32
    %c0_i32_1 = arith.constant 0 : i32
    return %c0_i32, %c0_i32_0 : i32, i32
  }
  func.func @transform_5(%arg0: i32) -> (i32, i32) {
    %c0_i32 = arith.constant 0 : i32
    %c0_i32_0 = arith.constant 0 : i32
    %c0_i32_1 = arith.constant 0 : i32
    return %c0_i32, %c0_i32_0 : i32, i32
  }
  func.func @transform_6(%arg0: i32) -> (i32, i32) {
    %c0_i32 = arith.constant 0 : i32
    %c0_i32_0 = arith.constant 0 : i32
    %c0_i32_1 = arith.constant 0 : i32
    return %c0_i32, %c0_i32_0 : i32, i32
  }
  func.func @transform_7(%arg0: i32) -> (i32, i32) {
    %c0_i32 = arith.constant 0 : i32
    %c0_i32_0 = arith.constant 0 : i32
    %c0_i32_1 = arith.constant 0 : i32
    return %c0_i32, %c0_i32_0 : i32, i32
  }
  func.func @transform_8(%arg0: i32) -> (i32, i32) {
    %c0_i32 = arith.constant 0 : i32
    %c0_i32_0 = arith.constant 0 : i32
    %c0_i32_1 = arith.constant 0 : i32
    return %c0_i32, %c0_i32_0 : i32, i32
  }
  func.func @transform_9(%arg0: i32) -> (i32, i32) {
    %c0_i32 = arith.constant 0 : i32
    %c0_i32_0 = arith.constant 0 : i32
    %c0_i32_1 = arith.constant 0 : i32
    return %c0_i32, %c0_i32_0 : i32, i32
  }
  func.func @transform_10(%arg0: i32) -> (i32, i32) {
    %c0_i32 = arith.constant 0 : i32
    %c0_i32_0 = arith.constant 0 : i32
    %c0_i32_1 = arith.constant 0 : i32
    return %c0_i32, %c0_i32_0 : i32, i32
  }
  func.func @transform_11(%arg0: i32) -> (i32, i32) {
    %c0_i32 = arith.constant 0 : i32
    %c0_i32_0 = arith.constant 0 : i32
    %c0_i32_1 = arith.constant 0 : i32
    return %c0_i32, %c0_i32_0 : i32, i32
  }
}

</mosaic_0001>

<bundles_post_ra>
// kernel: up_forward.1
= control target key start
LH: loop header
LB: loop body
LE: loop exit
PB: predicated region body
PF: predicated region fallthrough
CT: control target
= control target key end

     0   :  { %s3120_s23 = smov 33   ;;  %s3121_s24 = smov 32   ;;  %v3122_v10 = vmov 0.0   ;;  %v3124_v21 = vmov 0   ;;  %vm160_vm0 = vcmask 1043712   ;;  %vm190_vm1 = vcmask 269312   ;;  %s4510_s1 = inlined_call_operand.vmem [shape: f32[4,1152], index: 1, kind: input, shape index: {}]   ;;  %s4511_s0 = inlined_call_operand.vmem [shape: f32[4,1152], index: 0, kind: input, shape index: {}]   ;;  %s4512_s4 = inlined_call_operand.vmem [shape: f32[4,1], index: 4, kind: input, shape index: {}]   ;;  %s4513_s3 = inlined_call_operand.vmem [shape: f32[4,16], index: 3, kind: input, shape index: {}]   ;;  %s4514_s2 = inlined_call_operand.vmem [shape: f32[1,1152], index: 2, kind: input, shape index: {}]   ;;  %s4515_s5 = inlined_call_operand.vmem [shape: f32[8,72], index: 5, kind: input, shape index: {}]   ;;  %s4516_s7 = inlined_call_operand.vmem [shape: f32[8,1], index: 7, kind: input, shape index: {}]   ;;  %s4517_s6 = inlined_call_operand.vmem [shape: f32[8,1], index: 6, kind: input, shape index: {}]   ;;  %s4518_s8 = inlined_call_operand.vmem [shape: f32[8,72], index: 8, kind: input, shape index: {}]   ;;  %s4519_s10 = inlined_call_operand.vmem [shape: f32[8,1], index: 10, kind: input, shape index: {}]   ;;  %s4520_s9 = inlined_call_operand.vmem [shape: f32[8,1], index: 9, kind: input, shape index: {}]   ;;  %s4521_s11 = inlined_call_operand.vmem [shape: f32[8,1152], index: 11, kind: output, shape index: {}]  }
   0x1   :  { %v42_v0 = vld [vmem:[%s4510_s1] sm:$0xff]  ;;  %v43_v1 = vld [vmem:[%s4510_s1 + $0x8] sm:$0xff]  ;;  %v44_v2 = vld [vmem:[%s4510_s1 + $0x10] sm:$0xff]  ;;  %314 = vmatprep.mubr.f32.mxu0 %v3122_v10  ;;  %385 = vmatprep.mubr.f32.mxu1 %v3122_v10  ;;  %s3123_s29 = smov 1   ;;  %s3126_s20 = smov 96   ;;  %vm209_vm2 = vcmask 1047820  }
   0x2   :  { %174 = vrot.lane.b32.xlu1 %v42_v0, %s3120_s23  ;;  %60 = vst [vmem:[#allocation2 + $0x8] sm:$0xf] %v42_v0  ;;  %123 = vrot.lane.b32.xlu0 %v42_v0, %s3121_s24  ;;  %v69_v3 = vcombine.low %v42_v0, %v42_v0  ;;  %v52_v4 = vcombine.high %v42_v0, %v42_v0  ;;  %62 = vst [vmem:[#allocation2 + $0x18] sm:$0xf] %v43_v1  ;;  %v45_v6 = vld [vmem:[%s4510_s1 + $0x18] sm:$0xff]  ;;  %v3223_v12 = vld [vmem:[%s4511_s0] sm:$0xff] }
   0x3   :  { %v53_v5 = vcombine.high %v43_v1, %v43_v1  ;;  %64 = vst [vmem:[#allocation2 + $0x28] sm:$0xf] %v44_v2  ;;  %v46_v7 = vld [vmem:[%s4510_s1 + $0x20] sm:$0xf]  ;;  %v54_v8 = vcombine.high %v44_v2, %v44_v2  ;;  %v55_v9 = vcombine.high %v45_v6, %v45_v6  ;;  %66 = vst [vmem:[#allocation2 + $0x38] sm:$0xf] %v45_v6  ;;  %3092 = vset.pattern.permute.xlu1 %v3124_v21 }
   0x4   :  { %68 = vst [vmem:[#allocation2 + $0x48] sm:$0xf] %v46_v7  ;;  %61 = vst [vmem:[#allocation2 + $0x10] sm:$0xf] %v52_v4  ;;  %v70_v11 = vcombine.low %v43_v1, %v43_v1  ;;  %v670_v13 = vcombine.high %v3223_v12, %v3223_v12  ;;  %v71_v14 = vcombine.low %v44_v2, %v44_v2  ;;  %v3245_v17 = vld [vmem:[%s4511_s0 + $0x8] sm:$0xff]  ;;  %v3250_v18 = vld [vmem:[%s4511_s0 + $0x10] sm:$0xff]  ;;  %3093 = vset.pattern.permute.xlu0 %v3124_v21 }
   0x5   :  { %63 = vst [vmem:[#allocation2 + $0x20] sm:$0xf] %v53_v5  ;;  %65 = vst [vmem:[#allocation2 + $0x30] sm:$0xf] %v54_v8  ;;  %v72_v15 = vcombine.low %v45_v6, %v45_v6  ;;  %v73_v16 = vcombine.low %v46_v7, %v46_v7  ;;  %v3255_v19 = vld [vmem:[%s4511_s0 + $0x18] sm:$0xff]  ;;  %v3259_v20 = vcombine.high %v3245_v17, %v3245_v17  ;;  %s3127_s21 = smov 97  }
   0x6   :  { %67 = vst [vmem:[#allocation2 + $0x40] sm:$0xf] %v55_v9  ;;  %172 = vrot.lane.b32.xlu1 %v69_v3, %s3120_s23  ;;  %125 = vrot.lane.b32.xlu0 %v52_v4, %s3121_s24  ;;  %1075 = vst [vmem:[#allocation2 + $0x168] sm:$0xf] %v3223_v12  ;;  %v240_v22 = vld [vmem:[%s4512_s4] sm:$0xf]  ;;  %v3268_v23 = vcombine.high %v3250_v18, %v3250_v18  ;;  %v3274_v24 = vcombine.high %v3255_v19, %v3255_v19 }
   0x7   :  { %1076 = vst [vmem:[#allocation2 + $0x170] sm:$0xf] %v670_v13  ;;  %1077 = vst [vmem:[#allocation2 + $0x178] sm:$0xf] %v3245_v17  ;;  %s3125_s4 = smov 95   ;;  %s3128_s22 = smov 127  }
   0x8   :  { %1079 = vst [vmem:[#allocation2 + $0x188] sm:$0xf] %v3250_v18  ;;  %1081 = vst [vmem:[#allocation2 + $0x198] sm:$0xf] %v3255_v19  ;;  %s3129_s25 = smov 31   ;;  %vm141_vm3 = vcmask 261120  }
   0x9   :  { %1078 = vst [vmem:[#allocation2 + $0x180] sm:$0xf] %v3259_v20  ;;  %1080 = vst [vmem:[#allocation2 + $0x190] sm:$0xf] %v3268_v23  ;;  %v3305_v25 = vld [vmem:[%s4511_s0 + $0x20] sm:$0xf] }
   0xa   :  { %76 = vrot.lane.b32.xlu1 %v42_v0, %s3123_s29  ;;  %74 = vrot.lane.b32.xlu0 %v69_v3, %s3123_s29  ;;  %1082 = vst [vmem:[#allocation2 + $0x1a0] sm:$0xf] %v3274_v24  ;;  %1083 = vst [vmem:[#allocation2 + $0x1a8] sm:$0xf] %v3305_v25  ;;  %vm92_vm4 = vcmask 7168   ;;  %vm111_vm5 = vcmask 1047564  }
   0xb   :  { %v3368_v46 = vld [vmem:[%s4513_s3] sm:$0xf]  ;;  %vm246_vm6 = vcmask 130048   ;;  %vm4528_vm7 = vmmov 0   ;;  %vm1411_vm8 = vcmask 777216   ;;  %vm1314_vm9 = vcmask 785408  }
   0xc   :  { %vm1217_vm10 = vcmask 793600   ;;  %vm1120_vm11 = vcmask 1039360   ;;  %vm1013_vm12 = vcmask 1043464   ;;  %vm917_vm13 = vcmask 1043704  }
   0xd   :  { %vm710_vm14 = vcmask 1043720   ;;  %vm898_vm15 = vcmask 252928  }
   0xe   :  { %129 = vrot.lane.b32.xlu1 %v53_v5, %s3121_s24  ;;  %127 = vrot.lane.b32.xlu0 %v43_v1, %s3121_s24 }
  0x12   :  { %178 = vrot.lane.b32.xlu1 %v43_v1, %s3120_s23  ;;  %176 = vrot.lane.b32.xlu0 %v70_v11, %s3120_s23 }
  0x16   :  { %80 = vrot.lane.b32.xlu1 %v43_v1, %s3123_s29  ;;  %78 = vrot.lane.b32.xlu0 %v70_v11, %s3123_s29 }
  0x1a   :  { %133 = vrot.lane.b32.xlu1 %v54_v8, %s3121_s24  ;;  %131 = vrot.lane.b32.xlu0 %v44_v2, %s3121_s24 }
  0x1e   :  { %182 = vrot.lane.b32.xlu1 %v44_v2, %s3120_s23  ;;  %180 = vrot.lane.b32.xlu0 %v71_v14, %s3120_s23 }
  0x22   :  { %84 = vrot.lane.b32.xlu1 %v44_v2, %s3123_s29  ;;  %82 = vrot.lane.b32.xlu0 %v71_v14, %s3123_s29 }
  0x26   :  { %137 = vrot.lane.b32.xlu1 %v55_v9, %s3121_s24  ;;  %135 = vrot.lane.b32.xlu0 %v45_v6, %s3121_s24 }
  0x2a   :  { %186 = vrot.lane.b32.xlu1 %v45_v6, %s3120_s23  ;;  %184 = vrot.lane.b32.xlu0 %v72_v15, %s3120_s23 }
  0x2e   :  { %88 = vrot.lane.b32.xlu1 %v45_v6, %s3123_s29  ;;  %86 = vrot.lane.b32.xlu0 %v72_v15, %s3123_s29 }
  0x32   :  { %139 = vrot.lane.b32.xlu0 %v46_v7, %s3121_s24  ;;  %188 = vrot.lane.b32.xlu1 %v73_v16, %s3120_s23 }
  0x36   :  { %90 = vrot.lane.b32.xlu0 %v73_v16, %s3123_s29  ;;  %243 = vperm.xlu1 %3092, %v240_v22  }
  0x3a   :  { %1395 = vrot.lane.b32.xlu0 %v670_v13, %s3125_s4  ;;  %1397 = vrot.lane.b32.xlu1 %v3245_v17, %s3125_s4 }
  0x3e   :  { %1393 = vrot.lane.b32.xlu0 %v3223_v12, %s3125_s4  ;;  %1300 = vrot.lane.b32.xlu1 %v3245_v17, %s3126_s20 }
  0x42   :  { %1298 = vrot.lane.b32.xlu0 %v670_v13, %s3126_s20  ;;  %1203 = vrot.lane.b32.xlu1 %v3245_v17, %s3127_s21 }
  0x46   :  { %1296 = vrot.lane.b32.xlu0 %v3223_v12, %s3126_s20  ;;  %1106 = vrot.lane.b32.xlu1 %v3245_v17, %s3128_s22 }
  0x4a   :  { %1201 = vrot.lane.b32.xlu0 %v670_v13, %s3127_s21  ;;  %979 = vrot.lane.b32.xlu1 %v670_v13, %s3123_s29 }
  0x4e   :  { %1199 = vrot.lane.b32.xlu0 %v3223_v12, %s3127_s21  ;;  %882 = vrot.lane.b32.xlu1 %v670_v13, %s3129_s25 }
  0x52   :  { %1104 = vrot.lane.b32.xlu0 %v670_v13, %s3128_s22  ;;  %788 = vrot.lane.b32.xlu1 %v670_v13, %s3121_s24 }
  0x56   :  { %1102 = vrot.lane.b32.xlu0 %v3223_v12, %s3128_s22  ;;  %1401 = vrot.lane.b32.xlu1 %v3250_v18, %s3125_s4 }
  0x5a   :  { %977 = vrot.lane.b32.xlu0 %v3223_v12, %s3123_s29  ;;  %676 = vrot.lane.b32.xlu1 %v670_v13, %s3120_s23 }
  0x5e   :  { %880 = vrot.lane.b32.xlu0 %v3223_v12, %s3129_s25  ;;  %1304 = vrot.lane.b32.xlu1 %v3250_v18, %s3126_s20 }
  0x62   :  { %786 = vrot.lane.b32.xlu0 %v3223_v12, %s3121_s24  ;;  %1207 = vrot.lane.b32.xlu1 %v3250_v18, %s3127_s21 }
  0x66   :  { %1399 = vrot.lane.b32.xlu0 %v3259_v20, %s3125_s4  ;;  %1405 = vrot.lane.b32.xlu1 %v3255_v19, %s3125_s4 }
  0x6a   :  { %674 = vrot.lane.b32.xlu0 %v3223_v12, %s3120_s23  ;;  %1110 = vrot.lane.b32.xlu1 %v3250_v18, %s3128_s22 }
  0x6e   :  { %1302 = vrot.lane.b32.xlu0 %v3259_v20, %s3126_s20  ;;  %1308 = vrot.lane.b32.xlu1 %v3255_v19, %s3126_s20 }
  0x72   :  { %1205 = vrot.lane.b32.xlu0 %v3259_v20, %s3127_s21  ;;  %1211 = vrot.lane.b32.xlu1 %v3255_v19, %s3127_s21 }
  0x74   :  { %v175_v26 = vpop.permute.xlu1 %174  ;;  %v124_v27 = vpop.permute.xlu0 %123 }
  0x75   :  { %161 = vst.msk [vmem:[#allocation2 + $0x60] sm:$0xf] %vm160_vm0, %v124_v27 }
  0x76   :  { %1403 = vrot.lane.b32.xlu0 %v3268_v23, %s3125_s4  ;;  %983 = vrot.lane.b32.xlu1 %v3259_v20, %s3123_s29 }
  0x78   :  { %v173_v28 = vpop.permute.xlu1 %172  ;;  %v126_v29 = vpop.permute.xlu0 %125 }
  0x79   :  { %v191_v30 = vsel %vm190_vm1, %v173_v28, %v175_v26  ;;  %210 = vst.msk [vmem:[#allocation2 + $0x60] sm:$0xf0] %vm209_vm2, %v173_v28  ;;  %v142_v31 = vsel %vm141_vm3, %v124_v27, %v126_v29 }
  0x7a   :  { %211 = vst [vmem:[#allocation2 + $0x68] sm:$0xf0] %v191_v30  ;;  %162 = vst [vmem:[#allocation2 + $0x68] sm:$0xf] %v142_v31  ;;  %1108 = vrot.lane.b32.xlu0 %v3259_v20, %s3128_s22  ;;  %1114 = vrot.lane.b32.xlu1 %v3255_v19, %s3128_s22 }
  0x7c   :  { %v77_v32 = vpop.permute.xlu1 %76  ;;  %v75_v33 = vpop.permute.xlu0 %74 }
  0x7d   :  { %v93_v34 = vsel %vm92_vm4, %v75_v33, %v77_v32  ;;  %112 = vst.msk [vmem:[#allocation2 + $0x8] sm:$0xf0] %vm111_vm5, %v75_v33 }
  0x7e   :  { %113 = vst [vmem:[#allocation2 + $0x10] sm:$0xf0] %v93_v34  ;;  %1306 = vrot.lane.b32.xlu0 %v3268_v23, %s3126_s20  ;;  %886 = vrot.lane.b32.xlu1 %v3259_v20, %s3129_s25 }
  0x80   :  { %v130_v35 = vpop.permute.xlu1 %129  ;;  %v128_v36 = vpop.permute.xlu0 %127  ;;  %v231_v40 = vld [vmem:[#allocation2 + $0x60] sm:$0xff] }
  0x81   :  { %v143_v37 = vsel %vm141_vm3, %v126_v29, %v128_v36  ;;  %v144_v38 = vsel %vm141_vm3, %v128_v36, %v130_v35  ;;  %v232_v39 = vld [vmem:[#allocation2 + $0x68] sm:$0xff] }
  0x82   :  { %163 = vst [vmem:[#allocation2 + $0x70] sm:$0xf] %v143_v37  ;;  %164 = vst [vmem:[#allocation2 + $0x78] sm:$0xf] %v144_v38  ;;  %278 = vmatprep.subr.mxu0 %v232_v39  ;;  %1209 = vrot.lane.b32.xlu0 %v3268_v23, %s3127_s21 }
  0x83   :  { %279 = vmatpush1.msra.mxu0 %v231_v40  ;;  %792 = vrot.lane.b32.xlu1 %v3259_v20, %s3121_s24 }
  0x84   :  { %v179_v41 = vpop.permute.xlu1 %178  ;;  %v177_v42 = vpop.permute.xlu0 %176  ;;  %v222_v47 = vld [vmem:[#allocation2 + $0x8] sm:$0xff] }
  0x85   :  { %v192_v43 = vsel %vm190_vm1, %v175_v26, %v177_v42  ;;  %v193_v44 = vsel %vm190_vm1, %v177_v42, %v179_v41  ;;  %v223_v45 = vld [vmem:[#allocation2 + $0x10] sm:$0xff] }
  0x86   :  { %212 = vst [vmem:[#allocation2 + $0x70] sm:$0xf0] %v192_v43  ;;  %213 = vst [vmem:[#allocation2 + $0x78] sm:$0xf0] %v193_v44  ;;  %280 = vmatprep.subr.mxu0 %v223_v45  ;;  %981 = vrot.lane.b32.xlu0 %v3245_v17, %s3123_s29 }
  0x87   :  { %281 = vmatpush1.msra.mxu0 %v222_v47  ;;  %987 = vrot.lane.b32.xlu1 %v3268_v23, %s3123_s29 }
  0x88   :  { %v81_v48 = vpop.permute.xlu1 %80  ;;  %v79_v49 = vpop.permute.xlu0 %78  ;;  %2994 = vmatmul.mubr.msk.f32.vlgmr.msra.gmra.mxu0 %vm246_vm6, %v3368_v46 }
  0x89   :  { %v94_v50 = vsel %vm92_vm4, %v77_v32, %v79_v49  ;;  %v95_v51 = vsel %vm92_vm4, %v79_v49, %v81_v48  ;;  %456 = vmatprep.mubr.f32.mxu0 %v3122_v10 }
  0x8a   :  { %114 = vst [vmem:[#allocation2 + $0x18] sm:$0xf0] %v94_v50  ;;  %115 = vst [vmem:[#allocation2 + $0x20] sm:$0xf0] %v95_v51  ;;  %1112 = vrot.lane.b32.xlu0 %v3268_v23, %s3128_s22 }
  0x8b   :  { %680 = vrot.lane.b32.xlu1 %v3259_v20, %s3120_s23 }
  0x8c   :  { %v134_v52 = vpop.permute.xlu1 %133  ;;  %v132_v53 = vpop.permute.xlu0 %131 }
  0x8d   :  { %v145_v54 = vsel %vm141_vm3, %v130_v35, %v132_v53  ;;  %v146_v55 = vsel %vm141_vm3, %v132_v53, %v134_v52  ;;  %v234_v56 = vld [vmem:[#allocation2 + $0x78] sm:$0xff]  ;;  %v233_v57 = vld [vmem:[#allocation2 + $0x70] sm:$0xff] }
  0x8e   :  { %165 = vst [vmem:[#allocation2 + $0x80] sm:$0xf] %v145_v54  ;;  %166 = vst [vmem:[#allocation2 + $0x88] sm:$0xf] %v146_v55  ;;  %349 = vmatprep.subr.mxu1 %v234_v56  ;;  %884 = vrot.lane.b32.xlu0 %v3245_v17, %s3129_s25 }
  0x8f   :  { %350 = vmatpush1.msra.mxu1 %v233_v57  ;;  %890 = vrot.lane.b32.xlu1 %v3268_v23, %s3129_s25 }
  0x90   :  { %v183_v58 = vpop.permute.xlu1 %182  ;;  %v181_v59 = vpop.permute.xlu0 %180 }
  0x91   :  { %v194_v60 = vsel %vm190_vm1, %v179_v41, %v181_v59  ;;  %v195_v61 = vsel %vm190_vm1, %v181_v59, %v183_v58  ;;  %v225_v62 = vld [vmem:[#allocation2 + $0x20] sm:$0xff]  ;;  %v224_v63 = vld [vmem:[#allocation2 + $0x18] sm:$0xff] }
  0x92   :  { %214 = vst [vmem:[#allocation2 + $0x80] sm:$0xf0] %v194_v60  ;;  %215 = vst [vmem:[#allocation2 + $0x88] sm:$0xf0] %v195_v61  ;;  %351 = vmatprep.subr.mxu1 %v225_v62  ;;  %790 = vrot.lane.b32.xlu0 %v3245_v17, %s3121_s24 }
  0x93   :  { %352 = vmatpush1.msra.mxu1 %v224_v63  ;;  %796 = vrot.lane.b32.xlu1 %v3268_v23, %s3121_s24 }
  0x94   :  { %v85_v0 = vpop.permute.xlu1 %84  ;;  %2995 = vmatmul.mubr.msk.f32.vlgmr.msra.gmra.mxu1 %vm246_vm6, %v3368_v46  ;;  %v83_v1 = vpop.permute.xlu0 %82 }
  0x95   :  { %v96_v2 = vsel %vm92_vm4, %v81_v48, %v83_v1  ;;  %v97_v3 = vsel %vm92_vm4, %v83_v1, %v85_v0  ;;  %527 = vmatprep.mubr.f32.mxu1 %v3122_v10 }
  0x96   :  { %116 = vst [vmem:[#allocation2 + $0x28] sm:$0xf0] %v96_v2  ;;  %117 = vst [vmem:[#allocation2 + $0x30] sm:$0xf0] %v97_v3  ;;  %985 = vrot.lane.b32.xlu0 %v3250_v18, %s3123_s29 }
  0x97   :  { %1409 = vrot.lane.b32.xlu1 %v3305_v25, %s3125_s4 }
  0x98   :  { %v138_v4 = vpop.permute.xlu1 %137  ;;  %v136_v5 = vpop.permute.xlu0 %135 }
  0x99   :  { %v147_v6 = vsel %vm141_vm3, %v134_v52, %v136_v5  ;;  %v148_v7 = vsel %vm141_vm3, %v136_v5, %v138_v4  ;;  %v236_v8 = vld [vmem:[#allocation2 + $0x88] sm:$0xff]  ;;  %v235_v9 = vld [vmem:[#allocation2 + $0x80] sm:$0xff] }
  0x9a   :  { %167 = vst [vmem:[#allocation2 + $0x90] sm:$0xf] %v147_v6  ;;  %168 = vst [vmem:[#allocation2 + $0x98] sm:$0xf] %v148_v7  ;;  %420 = vmatprep.subr.mxu0 %v236_v8  ;;  %678 = vrot.lane.b32.xlu0 %v3245_v17, %s3120_s23 }
  0x9b   :  { %421 = vmatpush1.msra.mxu0 %v235_v9  ;;  %684 = vrot.lane.b32.xlu1 %v3268_v23, %s3120_s23 }
  0x9c   :  { %v187_v11 = vpop.permute.xlu1 %186  ;;  %v185_v12 = vpop.permute.xlu0 %184 }
  0x9d   :  { %v196_v13 = vsel %vm190_vm1, %v183_v58, %v185_v12  ;;  %v197_v14 = vsel %vm190_vm1, %v185_v12, %v187_v11  ;;  %v227_v15 = vld [vmem:[#allocation2 + $0x30] sm:$0xff]  ;;  %v226_v16 = vld [vmem:[#allocation2 + $0x28] sm:$0xff] }
  0x9e   :  { %216 = vst [vmem:[#allocation2 + $0x90] sm:$0xf0] %v196_v13  ;;  %217 = vst [vmem:[#allocation2 + $0x98] sm:$0xf0] %v197_v14  ;;  %422 = vmatprep.subr.mxu0 %v227_v15  ;;  %888 = vrot.lane.b32.xlu0 %v3250_v18, %s3129_s25 }
  0x9f   :  { %423 = vmatpush1.msra.mxu0 %v226_v16  ;;  %1312 = vrot.lane.b32.xlu1 %v3305_v25, %s3126_s20 }
  0xa0   :  { %v89_v17 = vpop.permute.xlu1 %88  ;;  %v87_v20 = vpop.permute.xlu0 %86  ;;  %2996 = vmatmul.mubr.msk.f32.vlgmr.msra.gmra.mxu0 %vm246_vm6, %v3368_v46  ;;  %3032 = vmatprep.subr.mxu0 %v3122_v10 }
  0xa1   :  { %v98_v22 = vsel %vm92_vm4, %v85_v0, %v87_v20  ;;  %v99_v23 = vsel %vm92_vm4, %v87_v20, %v89_v17  ;;  %3036 = vmatprep.mubr.msk.f32.mxu0 %vm4528_vm7, %v3122_v10 }
  0xa2   :  { %118 = vst [vmem:[#allocation2 + $0x38] sm:$0xf0] %v98_v22  ;;  %119 = vst [vmem:[#allocation2 + $0x40] sm:$0xf0] %v99_v23  ;;  %794 = vrot.lane.b32.xlu0 %v3250_v18, %s3121_s24 }
  0xa3   :  { %1215 = vrot.lane.b32.xlu1 %v3305_v25, %s3127_s21 }
  0xa4   :  { %v140_v26 = vpop.permute.xlu0 %139  ;;  %v189_v27 = vpop.permute.xlu1 %188 }
  0xa5   :  { %v149_v28 = vsel %vm141_vm3, %v138_v4, %v140_v26  ;;  %v198_v29 = vsel %vm190_vm1, %v187_v11, %v189_v27  ;;  %v238_v30 = vld [vmem:[#allocation2 + $0x98] sm:$0xff]  ;;  %v237_v31 = vld [vmem:[#allocation2 + $0x90] sm:$0xff] }
  0xa6   :  { %169 = vst [vmem:[#allocation2 + $0xa0] sm:$0xf] %v149_v28  ;;  %218 = vst [vmem:[#allocation2 + $0xa0] sm:$0xf0] %v198_v29  ;;  %491 = vmatprep.subr.mxu1 %v238_v30  ;;  %1407 = vrot.lane.b32.xlu0 %v3274_v24, %s3125_s4 }
  0xa7   :  { %492 = vmatpush1.msra.mxu1 %v237_v31  ;;  %1118 = vrot.lane.b32.xlu1 %v3305_v25, %s3128_s22 }
  0xa8   :  { %v91_v32 = vpop.permute.xlu0 %90 }
  0xa9   :  { %v100_v33 = vsel %vm92_vm4, %v89_v17, %v91_v32  ;;  %v229_v34 = vld [vmem:[#allocation2 + $0x40] sm:$0xff]  ;;  %v228_v35 = vld [vmem:[#allocation2 + $0x38] sm:$0xff] }
  0xaa   :  { %120 = vst [vmem:[#allocation2 + $0x48] sm:$0xf0] %v100_v33  ;;  %493 = vmatprep.subr.mxu1 %v229_v34  ;;  %682 = vrot.lane.b32.xlu0 %v3250_v18, %s3120_s23 }
  0xab   :  { %494 = vmatpush1.msra.mxu1 %v228_v35  ;;  %991 = vrot.lane.b32.xlu1 %v3274_v24, %s3123_s29 }
  0xac   :  { %2997 = vmatmul.mubr.msk.f32.vlgmr.msra.gmra.mxu1 %vm246_vm6, %v3368_v46  ;;  %v1396_v36 = vpop.permute.xlu0 %1395 }
  0xad   :  { %v239_v37 = vld [vmem:[#allocation2 + $0xa0] sm:$0xff]  ;;  %1640 = vmatprep.mubr.f32.mxu1 %v3122_v10 }
  0xae   :  { %3033 = vmatpush3.msra.mxu0 %v239_v37  ;;  %1310 = vrot.lane.b32.xlu0 %v3274_v24, %s3126_s20 }
  0xaf   :  { %3034 = vmatprep.subr.mxu0 %v3122_v10  ;;  %894 = vrot.lane.b32.xlu1 %v3274_v24, %s3129_s25 }
  0xb0   :  { %v1394_v18 = vpop.permute.xlu0 %1393 }
  0xb1   :  { %v230_v38 = vld [vmem:[#allocation2 + $0x48] sm:$0xff]  ;;  %v1412_v39 = vsel %vm1411_vm8, %v1394_v18, %v1396_v36 }
  0xb2   :  { %3035 = vmatpush3.msra.mxu0 %v230_v38  ;;  %1432 = vst [vmem:[#allocation2 + $0x2c8] sm:$0xf] %v1412_v39  ;;  %1213 = vrot.lane.b32.xlu0 %v3274_v24, %s3127_s21 }
  0xb3   :  { %3037 = vmatmul.mubr.msk.f32.vlgmr.msra.gmra.mxu0 %vm246_vm6, %v3368_v46  ;;  %800 = vrot.lane.b32.xlu1 %v3274_v24, %s3121_s24  ;;  %v3468_v46 = vpop.permute.xlu1 %243  ;;  %vm1343_vm6 = vcmask 781312  }
  0xb4   :  { %v1299_v40 = vpop.permute.xlu0 %1298  ;;  %1711 = vmatprep.mubr.f32.mxu0 %v3122_v10 }
  0xb6   :  { %1116 = vrot.lane.b32.xlu0 %v3274_v24, %s3128_s22 }
  0xb7   :  { %688 = vrot.lane.b32.xlu1 %v3274_v24, %s3120_s23  ;;  %v1398_v50 = vpop.permute.xlu1 %1397 }
  0xb8   :  { %v1297_v41 = vpop.permute.xlu0 %1296  ;;  %v1413_v51 = vsel %vm1411_vm8, %v1396_v36, %v1398_v50 }
  0xb9   :  { %v1315_v42 = vsel %vm1314_vm9, %v1297_v41, %v1299_v40  ;;  %1433 = vst [vmem:[#allocation2 + $0x2d0] sm:$0xf] %v1413_v51 }
  0xba   :  { %1335 = vst [vmem:[#allocation2 + $0x270] sm:$0xf] %v1315_v42  ;;  %989 = vrot.lane.b32.xlu0 %v3255_v19, %s3123_s29 }
  0xbb   :  { %v1301_v53 = vpop.permute.xlu1 %1300 }
  0xbc   :  { %v1202_v43 = vpop.permute.xlu0 %1201  ;;  %v1316_v54 = vsel %vm1314_vm9, %v1299_v40, %v1301_v53 }
  0xbd   :  { %1336 = vst [vmem:[#allocation2 + $0x278] sm:$0xf] %v1316_v54 }
  0xbe   :  { %892 = vrot.lane.b32.xlu0 %v3255_v19, %s3129_s25 }
  0xbf   :  { %v1204_v56 = vpop.permute.xlu1 %1203 }
  0xc0   :  { %v1200_v44 = vpop.permute.xlu0 %1199  ;;  %v1219_v57 = vsel %vm1217_vm10, %v1202_v43, %v1204_v56 }
  0xc1   :  { %v1218_v45 = vsel %vm1217_vm10, %v1200_v44, %v1202_v43  ;;  %1239 = vst [vmem:[#allocation2 + $0x220] sm:$0xf] %v1219_v57 }
  0xc2   :  { %1238 = vst [vmem:[#allocation2 + $0x218] sm:$0xf] %v1218_v45  ;;  %798 = vrot.lane.b32.xlu0 %v3255_v19, %s3121_s24 }
  0xc3   :  { %v1107_v58 = vpop.permute.xlu1 %1106 }
  0xc4   :  { %v1105_v24 = vpop.permute.xlu0 %1104 }
  0xc5   :  { %v1122_v60 = vsel %vm1120_vm11, %v1105_v24, %v1107_v58 }
  0xc6   :  { %993 = vrot.lane.b32.xlu0 %v3305_v25, %s3123_s29  ;;  %1142 = vst [vmem:[#allocation2 + $0x1c8] sm:$0xf] %v1122_v60 }
  0xc7   :  { %v980_v62 = vpop.permute.xlu1 %979 }
  0xc8   :  { %v1103_v47 = vpop.permute.xlu0 %1102 }
  0xc9   :  { %v1121_v48 = vsel %vm1120_vm11, %v1103_v47, %v1105_v24 }
  0xca   :  { %1141 = vst [vmem:[#allocation2 + $0x1c0] sm:$0xf] %v1121_v48  ;;  %686 = vrot.lane.b32.xlu0 %v3255_v19, %s3120_s23 }
  0xcb   :  { %v883_v1 = vpop.permute.xlu1 %882 }
  0xcc   :  { %v978_v49 = vpop.permute.xlu0 %977 }
  0xcd   :  { %1014 = vst.msk [vmem:[#allocation2 + $0x110] sm:$0xf] %vm1013_vm12, %v978_v49  ;;  %v995_v63 = vsel %vm92_vm4, %v978_v49, %v980_v62  ;;  %vm1246_vm12 = vcmask 789504  }
  0xce   :  { %1015 = vst [vmem:[#allocation2 + $0x118] sm:$0xf] %v995_v63 }
  0xcf   :  { %v789_v5 = vpop.permute.xlu1 %788 }
  0xd0   :  { %v881_v52 = vpop.permute.xlu0 %880 }
  0xd1   :  { %918 = vst.msk [vmem:[#allocation2 + $0xb8] sm:$0xf] %vm917_vm13, %v881_v52  ;;  %v899_v3 = vsel %vm898_vm15, %v881_v52, %v883_v1  ;;  %vm1149_vm13 = vcmask 1035264  }
  0xd2   :  { %919 = vst [vmem:[#allocation2 + $0xc0] sm:$0xf] %v899_v3 }
  0xd3   :  { %v1402_v9 = vpop.permute.xlu1 %1401 }
  0xd4   :  { %v787_v55 = vpop.permute.xlu0 %786 }
  0xd5   :  { %822 = vst.msk [vmem:[#allocation2 + $0x60] sm:$0xf] %vm160_vm0, %v787_v55  ;;  %v804_v7 = vsel %vm141_vm3, %v787_v55, %v789_v5  ;;  %vm1440_vm0 = vcmask 773120  }
  0xd6   :  { %823 = vst [vmem:[#allocation2 + $0x68] sm:$0xf] %v804_v7 }
  0xd7   :  { %v677_v14 = vpop.permute.xlu1 %676 }
  0xd8   :  { %v1400_v19 = vpop.permute.xlu0 %1399 }
  0xd9   :  { %v1414_v59 = vsel %vm1411_vm8, %v1398_v50, %v1400_v19  ;;  %v1415_v11 = vsel %vm1411_vm8, %v1400_v19, %v1402_v9 }
  0xda   :  { %1434 = vst [vmem:[#allocation2 + $0x2d8] sm:$0xf] %v1414_v59  ;;  %1435 = vst [vmem:[#allocation2 + $0x2e0] sm:$0xf] %v1415_v11 }
  0xdb   :  { %v1305_v20 = vpop.permute.xlu1 %1304 }
  0xdc   :  { %v675_v61 = vpop.permute.xlu0 %674 }
  0xdd   :  { %711 = vst.msk [vmem:[#allocation2 + $0x8] sm:$0xf] %vm710_vm14, %v675_v61  ;;  %v692_v16 = vsel %vm190_vm1, %v675_v61, %v677_v14 }
  0xde   :  { %712 = vst [vmem:[#allocation2 + $0x10] sm:$0xf] %v692_v16 }
  0xdf   :  { %v1208_v27 = vpop.permute.xlu1 %1207 }
  0xe0   :  { %v1303_v0 = vpop.permute.xlu0 %1302 }
  0xe1   :  { %v1317_v2 = vsel %vm1314_vm9, %v1301_v53, %v1303_v0  ;;  %v1318_v22 = vsel %vm1314_vm9, %v1303_v0, %v1305_v20 }
  0xe2   :  { %1337 = vst [vmem:[#allocation2 + $0x280] sm:$0xf] %v1317_v2  ;;  %1338 = vst [vmem:[#allocation2 + $0x288] sm:$0xf] %v1318_v22 }
  0xe3   :  { %v1406_v31 = vpop.permute.xlu1 %1405 }
  0xe4   :  { %v1206_v4 = vpop.permute.xlu0 %1205 }
  0xe5   :  { %v1220_v6 = vsel %vm1217_vm10, %v1204_v56, %v1206_v4  ;;  %v1221_v28 = vsel %vm1217_vm10, %v1206_v4, %v1208_v27 }
  0xe6   :  { %1240 = vst [vmem:[#allocation2 + $0x228] sm:$0xf] %v1220_v6  ;;  %1241 = vst [vmem:[#allocation2 + $0x230] sm:$0xf] %v1221_v28 }
  0xe7   :  { %v1111_v35 = vpop.permute.xlu1 %1110 }
  0xe8   :  { %v1404_v8 = vpop.permute.xlu0 %1403 }
  0xe9   :  { %v1416_v12 = vsel %vm1411_vm8, %v1402_v9, %v1404_v8  ;;  %v1417_v33 = vsel %vm1411_vm8, %v1404_v8, %v1406_v31 }
  0xea   :  { %1436 = vst [vmem:[#allocation2 + $0x2e8] sm:$0xf] %v1416_v12  ;;  %1437 = vst [vmem:[#allocation2 + $0x2f0] sm:$0xf] %v1417_v33 }
  0xeb   :  { %v1309_v38 = vpop.permute.xlu1 %1308 }
  0xec   :  { %v1109_v13 = vpop.permute.xlu0 %1108 }
  0xed   :  { %v1123_v15 = vsel %vm1120_vm11, %v1107_v58, %v1109_v13  ;;  %v1124_v36 = vsel %vm1120_vm11, %v1109_v13, %v1111_v35 }
  0xee   :  { %1143 = vst [vmem:[#allocation2 + $0x1d0] sm:$0xf] %v1123_v15  ;;  %1144 = vst [vmem:[#allocation2 + $0x1d8] sm:$0xf] %v1124_v36 }
  0xef   :  { %v1212_v42 = vpop.permute.xlu1 %1211 }
  0xf0   :  { %v1307_v17 = vpop.permute.xlu0 %1306 }
  0xf1   :  { %v1319_v23 = vsel %vm1314_vm9, %v1305_v20, %v1307_v17  ;;  %v1320_v40 = vsel %vm1314_vm9, %v1307_v17, %v1309_v38 }
  0xf2   :  { %1339 = vst [vmem:[#allocation2 + $0x290] sm:$0xf] %v1319_v23  ;;  %1340 = vst [vmem:[#allocation2 + $0x298] sm:$0xf] %v1320_v40 }
  0xf3   :  { %v984_v24 = vpop.permute.xlu1 %983 }
  0xf4   :  { %v1210_v26 = vpop.permute.xlu0 %1209 }
  0xf5   :  { %v1222_v29 = vsel %vm1217_vm10, %v1208_v27, %v1210_v26  ;;  %v1223_v44 = vsel %vm1217_vm10, %v1210_v26, %v1212_v42 }
  0xf6   :  { %1242 = vst [vmem:[#allocation2 + $0x238] sm:$0xf] %v1222_v29  ;;  %1243 = vst [vmem:[#allocation2 + $0x240] sm:$0xf] %v1223_v44 }
  0xf7   :  { %v1115_v50 = vpop.permute.xlu1 %1114 }
  0xf8   :  { %v982_v30 = vpop.permute.xlu0 %981 }
  0xf9   :  { %v996_v32 = vsel %vm92_vm4, %v980_v62, %v982_v30  ;;  %v997_v47 = vsel %vm92_vm4, %v982_v30, %v984_v24 }
  0xfa   :  { %1016 = vst [vmem:[#allocation2 + $0x120] sm:$0xf] %v996_v32  ;;  %1017 = vst [vmem:[#allocation2 + $0x128] sm:$0xf] %v997_v47 }
  0xfb   :  { %v887_v54 = vpop.permute.xlu1 %886 }
  0xfc   :  { %v1113_v34 = vpop.permute.xlu0 %1112 }
  0xfd   :  { %v1125_v37 = vsel %vm1120_vm11, %v1111_v35, %v1113_v34  ;;  %v1126_v52 = vsel %vm1120_vm11, %v1113_v34, %v1115_v50  ;;  %v606_v34 = vlaneseq }
  0xfe   :  { %1145 = vst [vmem:[#allocation2 + $0x1e0] sm:$0xf] %v1125_v37  ;;  %1146 = vst [vmem:[#allocation2 + $0x1e8] sm:$0xf] %v1126_v52 }
  0xff   :  { %v793_v19 = vpop.permute.xlu1 %792 }
 0x100   :  { %v885_v18 = vpop.permute.xlu0 %884 }
 0x101   :  { %v900_v39 = vsel %vm898_vm15, %v883_v1, %v885_v18  ;;  %v901_v55 = vsel %vm898_vm15, %v885_v18, %v887_v54  ;;  %v38_v18 = vld [vmem:[%s4514_s2] sm:$0xff] }
 0x102   :  { %920 = vst [vmem:[#allocation2 + $0xc8] sm:$0xf] %v900_v39  ;;  %921 = vst [vmem:[#allocation2 + $0xd0] sm:$0xf] %v901_v55  ;;  %vm40_vm14 = vcmp.gt.f32.partialorder %v38_v18, 0.5 }
 0x103   :  { %v988_v61 = vpop.permute.xlu1 %987 }
 0x104   :  { %v791_v41 = vpop.permute.xlu0 %790 }
 0x105   :  { %v805_v43 = vsel %vm141_vm3, %v789_v5, %v791_v41  ;;  %v806_v58 = vsel %vm141_vm3, %v791_v41, %v793_v19 }
 0x106   :  { %824 = vst [vmem:[#allocation2 + $0x70] sm:$0xf] %v805_v43  ;;  %825 = vst [vmem:[#allocation2 + $0x78] sm:$0xf] %v806_v58 }
 0x107   :  { %v681_v1 = vpop.permute.xlu1 %680 }
 0x108   :  { %v986_v45 = vpop.permute.xlu0 %985 }
 0x109   :  { %v998_v48 = vsel %vm92_vm4, %v984_v24, %v986_v45  ;;  %v999_v63 = vsel %vm92_vm4, %v986_v45, %v988_v61  ;;  %v3537_v24 = vsel %vm40_vm14, 1, %v3124_v21 }
 0x10a   :  { %1018 = vst [vmem:[#allocation2 + $0x130] sm:$0xf] %v998_v48  ;;  %1019 = vst [vmem:[#allocation2 + $0x138] sm:$0xf] %v999_v63 }
 0x10b   :  { %v891_v5 = vpop.permute.xlu1 %890 }
 0x10c   :  { %v679_v49 = vpop.permute.xlu0 %678 }
 0x10d   :  { %v693_v51 = vsel %vm190_vm1, %v677_v14, %v679_v49  ;;  %v694_v2 = vsel %vm190_vm1, %v679_v49, %v681_v1 }
 0x10e   :  { %713 = vst [vmem:[#allocation2 + $0x18] sm:$0xf] %v693_v51  ;;  %714 = vst [vmem:[#allocation2 + $0x20] sm:$0xf] %v694_v2 }
 0x10f   :  { %v797_v9 = vpop.permute.xlu1 %796 }
 0x110   :  { %v889_v53 = vpop.permute.xlu0 %888 }
 0x111   :  { %v902_v56 = vsel %vm898_vm15, %v887_v54, %v889_v53  ;;  %v903_v7 = vsel %vm898_vm15, %v889_v53, %v891_v5 }
 0x112   :  { %922 = vst [vmem:[#allocation2 + $0xd8] sm:$0xf] %v902_v56  ;;  %923 = vst [vmem:[#allocation2 + $0xe0] sm:$0xf] %v903_v7 }
 0x113   :  { %v1410_v14 = vpop.permute.xlu1 %1409 }
 0x114   :  { %v795_v57 = vpop.permute.xlu0 %794  ;;  %1441 = vst.msk [vmem:[#allocation2 + $0x308] sm:$0xf] %vm1440_vm0, %v1410_v14 }
 0x115   :  { %v807_v59 = vsel %vm141_vm3, %v793_v19, %v795_v57  ;;  %v808_v12 = vsel %vm141_vm3, %v795_v57, %v797_v9 }
 0x116   :  { %826 = vst [vmem:[#allocation2 + $0x80] sm:$0xf] %v807_v59  ;;  %827 = vst [vmem:[#allocation2 + $0x88] sm:$0xf] %v808_v12 }
 0x117   :  { %v685_v20 = vpop.permute.xlu1 %684 }
 0x118   :  { %v1408_v60 = vpop.permute.xlu0 %1407 }
 0x119   :  { %v1418_v62 = vsel %vm1411_vm8, %v1406_v31, %v1408_v60  ;;  %v1419_v16 = vsel %vm1411_vm8, %v1408_v60, %v1410_v14 }
 0x11a   :  { %1438 = vst [vmem:[#allocation2 + $0x2f8] sm:$0xf] %v1418_v62  ;;  %1439 = vst [vmem:[#allocation2 + $0x300] sm:$0xf] %v1419_v16 }
 0x11b   :  { %v1313_v27 = vpop.permute.xlu1 %1312 }
 0x11c   :  { %v683_v0 = vpop.permute.xlu0 %682  ;;  %1344 = vst.msk [vmem:[#allocation2 + $0x2b0] sm:$0xf] %vm1343_vm6, %v1313_v27 }
 0x11d   :  { %v695_v3 = vsel %vm190_vm1, %v681_v1, %v683_v0  ;;  %v696_v23 = vsel %vm190_vm1, %v683_v0, %v685_v20 }
 0x11e   :  { %715 = vst [vmem:[#allocation2 + $0x28] sm:$0xf] %v695_v3  ;;  %716 = vst [vmem:[#allocation2 + $0x30] sm:$0xf] %v696_v23 }
 0x11f   :  { %v1216_v31 = vpop.permute.xlu1 %1215 }
 0x120   :  { %v1311_v4 = vpop.permute.xlu0 %1310  ;;  %1247 = vst.msk [vmem:[#allocation2 + $0x258] sm:$0xf] %vm1246_vm12, %v1216_v31 }
 0x121   :  { %v1321_v6 = vsel %vm1314_vm9, %v1309_v38, %v1311_v4  ;;  %v1322_v29 = vsel %vm1314_vm9, %v1311_v4, %v1313_v27  ;;  %v3528_v38 = vshrl.u32 %v606_v34, 7 }
 0x122   :  { %1341 = vst [vmem:[#allocation2 + $0x2a0] sm:$0xf] %v1321_v6  ;;  %1342 = vst [vmem:[#allocation2 + $0x2a8] sm:$0xf] %v1322_v29 }
 0x123   :  { %v1119_v36 = vpop.permute.xlu1 %1118  ;;  %v608_v44 = vsub.s32 0, %v3528_v38  ;;  %v612_v48 = vsub.s32 1, %v3528_v38  ;;  %v616_v60 = vsub.s32 2, %v3528_v38  ;;  %v620_v63 = vsub.s32 3, %v3528_v38 }
 0x124   :  { %v1214_v8 = vpop.permute.xlu0 %1213  ;;  %1150 = vst.msk [vmem:[#allocation2 + $0x200] sm:$0xf] %vm1149_vm13, %v1119_v36  ;;  %v628_v12 = vsub.s32 5, %v3528_v38 }
 0x125   :  { %v1224_v11 = vsel %vm1217_vm10, %v1212_v42, %v1214_v8  ;;  %v1225_v33 = vsel %vm1217_vm10, %v1214_v8, %v1216_v31  ;;  %v3545_v49 = vrot.slane %v3537_v24, %v608_v44  ;;  %v3552_v52 = vrot.slane %v3537_v24, %v612_v48 }
 0x126   :  { %1244 = vst [vmem:[#allocation2 + $0x248] sm:$0xf] %v1224_v11  ;;  %1245 = vst [vmem:[#allocation2 + $0x250] sm:$0xf] %v1225_v33  ;;  %v3577_v0 = vrot.slane %v3537_v24, %v616_v60  ;;  %v3582_v1 = vrot.slane %v3537_v24, %v620_v63  ;;  %v624_v8 = vsub.s32 4, %v3528_v38  ;;  %v3609_v14 = vrot.slane %v3537_v24, %v628_v12 }
 0x127   :  { %v992_v40 = vpop.permute.xlu1 %991  ;;  %vm642_vm0 = vcmp.eq.s32.totalorder %v3545_v49, 1  ;;  %vm643_vm6 = vcmp.eq.s32.totalorder %v3552_v52, 1 }
 0x128   :  { %v1117_v13 = vpop.permute.xlu0 %1116  ;;  %vm4525_vm12 = vcmp.eq.s32.totalorder %v3577_v0, 1  ;;  %vm4522_vm13 = vcmp.eq.s32.totalorder %v3582_v1, 1 }
 0x129   :  { %v1127_v15 = vsel %vm1120_vm11, %v1115_v50, %v1117_v13  ;;  %v1128_v37 = vsel %vm1120_vm11, %v1117_v13, %v1119_v36  ;;  %v3603_v13 = vrot.slane %v3537_v24, %v624_v8 }
 0x12a   :  { %1147 = vst [vmem:[#allocation2 + $0x1f0] sm:$0xf] %v1127_v15  ;;  %1148 = vst [vmem:[#allocation2 + $0x1f8] sm:$0xf] %v1128_v37 }
 0x12b   :  { %v3534_v45 = vpop.permute.xlu1 %894  ;;  %vm4524_vm14 = vcmp.eq.s32.totalorder %v3603_v13, 1 }
 0x12c   :  { %v990_v17 = vpop.permute.xlu0 %989 }
 0x12d   :  { %v1000_v22 = vsel %vm92_vm4, %v988_v61, %v990_v17  ;;  %v1001_v42 = vsel %vm92_vm4, %v990_v17, %v992_v40 }
 0x12e   :  { %1020 = vst [vmem:[#allocation2 + $0x140] sm:$0xf] %v1000_v22  ;;  %1021 = vst [vmem:[#allocation2 + $0x148] sm:$0xf] %v1001_v42 }
 0x12f   :  { %v3547_v50 = vpop.permute.xlu1 %800 }
 0x130   :  { %v893_v26 = vpop.permute.xlu0 %892 }
 0x131   :  { %v904_v28 = vsel %vm898_vm15, %v891_v5, %v893_v26  ;;  %v905_v47 = vsel %vm898_vm15, %v893_v26, %v3534_v45  ;;  %v632_v26 = vsub.s32 6, %v3528_v38 }
 0x132   :  { %924 = vst [vmem:[#allocation2 + $0xe8] sm:$0xf] %v904_v28  ;;  %925 = vst [vmem:[#allocation2 + $0xf0] sm:$0xf] %v905_v47  ;;  %v39_v28 = vld [vmem:[%s4514_s2 + $0x8] sm:$0x1] }
 0x133   :  { %v3555_v54 = vpop.permute.xlu1 %688  ;;  %v3636_v31 = vrot.slane %v3537_v24, %v632_v26 }
 0x134   :  { %v799_v30 = vpop.permute.xlu0 %798 }
 0x135   :  { %v809_v32 = vsel %vm141_vm3, %v797_v9, %v799_v30  ;;  %v810_v51 = vsel %vm141_vm3, %v799_v30, %v3547_v50  ;;  %v636_v30 = vsub.s32 7, %v3528_v38 }
 0x136   :  { %828 = vst [vmem:[#allocation2 + $0x90] sm:$0xf] %v809_v32  ;;  %829 = vst [vmem:[#allocation2 + $0x98] sm:$0xf] %v810_v51 }
 0x137   :  { %v3641_v32 = vrot.slane %v3537_v24, %v636_v30 }
 0x138   :  { %v994_v35 = vpop.permute.xlu0 %993 }
 0x139   :  { %v1002_v43 = vsel %vm92_vm4, %v992_v40, %v994_v35 }
 0x13a   :  { %1022 = vst [vmem:[#allocation2 + $0x150] sm:$0xf] %v1002_v43 }
 0x13c   :  { %v687_v39 = vpop.permute.xlu0 %686 }
 0x13d   :  { %v697_v41 = vsel %vm190_vm1, %v685_v20, %v687_v39  ;;  %v698_v56 = vsel %vm190_vm1, %v687_v39, %v3555_v54 }
 0x13e   :  { %717 = vst [vmem:[#allocation2 + $0x38] sm:$0xf] %v697_v41  ;;  %718 = vst [vmem:[#allocation2 + $0x40] sm:$0xf] %v698_v56 }
 0x148   :  { %v316_v53 = vpop.f32.mrf.mxu0 }
 0x149   :  { %v317_v55 = vadd.f32 %v316_v53, %v3468_v46 }
 0x14a   :  { %v318_v57 = vpop.f32.mrf.mxu0 }
 0x14b   :  { %v651_v19 = vsel %vm642_vm0, %v317_v55, 0.0  ;;  %v319_v58 = vadd.f32 %v318_v57, %v3468_v46 }
 0x14c   :  { %v3564_v59 = vrot.slane %v651_v19, 4 }
 0x14d   :  { %v652_v61 = vsel %vm643_vm6, %v319_v58, 0.0 }
 0x14e   :  { %1093 = vst [vmem:[#allocation2 + $0x168] sm:$0xf0] %v3564_v59  ;;  %v3570_v62 = vrot.slane %v652_v61, 4  ;;  %1025 = vrot.lane.b32.xlu0 %v3564_v59, %s3123_s29 }
 0x150   :  { %1094 = vst [vmem:[#allocation2 + $0x170] sm:$0xf0] %v3570_v62 }
 0x152   :  { %929 = vrot.lane.b32.xlu0 %v3564_v59, %s3129_s25 }
 0x154   :  { %v387_v2 = vpop.f32.mrf.mxu1 }
 0x155   :  { %v388_v3 = vadd.f32 %v387_v2, %v3468_v46 }
 0x156   :  { %v389_v4 = vpop.f32.mrf.mxu1  ;;  %832 = vrot.lane.b32.xlu0 %v3564_v59, %s3121_s24 }
 0x157   :  { %v653_v5 = vsel %vm4525_vm12, %v388_v3, 0.0  ;;  %v390_v6 = vadd.f32 %v389_v4, %v3468_v46  ;;  %vm4527_vm12 = vcmp.eq.s32.totalorder %v3641_v32, 1 }
 0x158   :  { %v733_v7 = vrot.slane %v653_v5, 4 }
 0x159   :  { %v654_v9 = vsel %vm4522_vm13, %v390_v6, 0.0  ;;  %vm4523_vm13 = vcmp.eq.s32.totalorder %v3609_v14, 1 }
 0x15a   :  { %1095 = vst [vmem:[#allocation2 + $0x178] sm:$0xf0] %v733_v7  ;;  %v3595_v11 = vrot.slane %v654_v9, 4  ;;  %1446 = vrot.lane.b32.xlu1 %v733_v7, %s3125_s4  ;;  %740 = vrot.lane.b32.xlu0 %v3564_v59, %s3120_s23 }
 0x15c   :  { %1096 = vst [vmem:[#allocation2 + $0x180] sm:$0xf0] %v3595_v11 }
 0x15e   :  { %1442 = vrot.lane.b32.xlu1 %v3564_v59, %s3125_s4  ;;  %1029 = vrot.lane.b32.xlu0 %v733_v7, %s3123_s29 }
 0x160   :  { %v458_v15 = vpop.f32.mrf.mxu0 }
 0x161   :  { %v459_v16 = vadd.f32 %v458_v15, %v3468_v46 }
 0x162   :  { %v460_v17 = vpop.f32.mrf.mxu0  ;;  %1349 = vrot.lane.b32.xlu1 %v733_v7, %s3126_s20  ;;  %933 = vrot.lane.b32.xlu0 %v733_v7, %s3129_s25 }
 0x163   :  { %v655_v20 = vsel %vm4524_vm14, %v459_v16, 0.0  ;;  %v461_v22 = vadd.f32 %v460_v17, %v3468_v46  ;;  %vm648_vm14 = vcmp.eq.s32.totalorder %v3636_v31, 1 }
 0x164   :  { %v3619_v23 = vrot.slane %v655_v20, 4 }
 0x165   :  { %v656_v27 = vsel %vm4523_vm13, %v461_v22, 0.0  ;;  %vm41_vm13 = vcmp.gt.f32.partialorder %v39_v28, 0.5 }
 0x166   :  { %1097 = vst [vmem:[#allocation2 + $0x188] sm:$0xf0] %v3619_v23  ;;  %v3628_v29 = vrot.slane %v656_v27, 4  ;;  %1345 = vrot.lane.b32.xlu1 %v3564_v59, %s3126_s20  ;;  %836 = vrot.lane.b32.xlu0 %v733_v7, %s3121_s24  ;;  %v605_v33 = vsel %vm41_vm13, 1, %v3124_v21 }
 0x167   :  { %v3653_v37 = vrot.slane %v605_v33, %v608_v44 }
 0x168   :  { %1098 = vst [vmem:[#allocation2 + $0x190] sm:$0xf0] %v3628_v29 }
 0x169   :  { %vm4526_vm13 = vcmp.eq.s32.totalorder %v3653_v37, 1 }
 0x16a   :  { %1252 = vrot.lane.b32.xlu1 %v733_v7, %s3127_s21  ;;  %744 = vrot.lane.b32.xlu0 %v733_v7, %s3120_s23 }
 0x16c   :  { %v529_v34 = vpop.f32.mrf.mxu1 }
 0x16d   :  { %v530_v35 = vadd.f32 %v529_v34, %v3468_v46 }
 0x16e   :  { %v531_v36 = vpop.f32.mrf.mxu1  ;;  %1248 = vrot.lane.b32.xlu1 %v3564_v59, %s3127_s21  ;;  %1444 = vrot.lane.b32.xlu0 %v3570_v62, %s3125_s4 }
 0x16f   :  { %v657_v21 = vsel %vm648_vm14, %v530_v35, 0.0  ;;  %v532_v18 = vadd.f32 %v531_v36, %v3468_v46 }
 0x170   :  { %v3658_v39 = vrot.slane %v657_v21, 4 }
 0x171   :  { %v658_v40 = vsel %vm4527_vm12, %v532_v18, 0.0  ;;  %vm868_vm12 = vcmask 1047812  }
 0x172   :  { %1099 = vst [vmem:[#allocation2 + $0x198] sm:$0xf0] %v3658_v39  ;;  %v3663_v41 = vrot.slane %v658_v40, 4  ;;  %1155 = vrot.lane.b32.xlu1 %v733_v7, %s3128_s22  ;;  %1347 = vrot.lane.b32.xlu0 %v3570_v62, %s3126_s20 }
 0x173   :  { %v600_v38 = vpop.f32.mrf.mxu0 }
 0x174   :  { %1100 = vst [vmem:[#allocation2 + $0x1a0] sm:$0xf0] %v3663_v41  ;;  %v601_v42 = vadd.f32 %v600_v38, %v3468_v46 }
 0x175   :  { %v3038_v43 = vpop.f32.mrf.mxu0 }
 0x176   :  { %v659_v44 = vsel %vm4526_vm13, %v601_v42, 0.0  ;;  %1151 = vrot.lane.b32.xlu1 %v3564_v59, %s3128_s22  ;;  %1250 = vrot.lane.b32.xlu0 %v3570_v62, %s3127_s21  ;;  %vm965_vm13 = vcmask 1047804  }
 0x177   :  { %v3677_v24 = vrot.slane %v659_v44, 4  ;;  %v1528_v44 = vld [vmem:[#allocation2 + $0x170] sm:$0xff] }
 0x179   :  { %1101 = vst [vmem:[#allocation2 + $0x1a8] sm:$0xf0] %v3677_v24 }
 0x17a   :  { %1027 = vrot.lane.b32.xlu1 %v3570_v62, %s3123_s29  ;;  %1153 = vrot.lane.b32.xlu0 %v3570_v62, %s3128_s22 }
 0x17e   :  { %931 = vrot.lane.b32.xlu1 %v3570_v62, %s3129_s25  ;;  %1448 = vrot.lane.b32.xlu0 %v3595_v11, %s3125_s4 }
 0x182   :  { %834 = vrot.lane.b32.xlu1 %v3570_v62, %s3121_s24  ;;  %1351 = vrot.lane.b32.xlu0 %v3595_v11, %s3126_s20 }
 0x186   :  { %742 = vrot.lane.b32.xlu1 %v3570_v62, %s3120_s23  ;;  %1254 = vrot.lane.b32.xlu0 %v3595_v11, %s3127_s21 }
 0x18a   :  { %1031 = vrot.lane.b32.xlu1 %v3595_v11, %s3123_s29  ;;  %1157 = vrot.lane.b32.xlu0 %v3595_v11, %s3128_s22 }
 0x18e   :  { %935 = vrot.lane.b32.xlu1 %v3595_v11, %s3129_s25  ;;  %1033 = vrot.lane.b32.xlu0 %v3619_v23, %s3123_s29 }
 0x192   :  { %838 = vrot.lane.b32.xlu1 %v3595_v11, %s3121_s24  ;;  %937 = vrot.lane.b32.xlu0 %v3619_v23, %s3129_s25 }
 0x196   :  { %746 = vrot.lane.b32.xlu1 %v3595_v11, %s3120_s23  ;;  %840 = vrot.lane.b32.xlu0 %v3619_v23, %s3121_s24 }
 0x19a   :  { %1450 = vrot.lane.b32.xlu1 %v3619_v23, %s3125_s4  ;;  %748 = vrot.lane.b32.xlu0 %v3619_v23, %s3120_s23 }
 0x19e   :  { %1353 = vrot.lane.b32.xlu1 %v3619_v23, %s3126_s20  ;;  %1037 = vrot.lane.b32.xlu0 %v3658_v39, %s3123_s29 }
 0x1a2   :  { %1256 = vrot.lane.b32.xlu1 %v3619_v23, %s3127_s21  ;;  %941 = vrot.lane.b32.xlu0 %v3658_v39, %s3129_s25 }
 0x1a6   :  { %1454 = vrot.lane.b32.xlu1 %v3658_v39, %s3125_s4  ;;  %844 = vrot.lane.b32.xlu0 %v3658_v39, %s3121_s24 }
 0x1aa   :  { %1159 = vrot.lane.b32.xlu1 %v3619_v23, %s3128_s22  ;;  %1452 = vrot.lane.b32.xlu0 %v3628_v29, %s3125_s4 }
 0x1ae   :  { %1357 = vrot.lane.b32.xlu1 %v3658_v39, %s3126_s20  ;;  %1355 = vrot.lane.b32.xlu0 %v3628_v29, %s3126_s20 }
 0x1b2   :  { %1260 = vrot.lane.b32.xlu1 %v3658_v39, %s3127_s21  ;;  %1258 = vrot.lane.b32.xlu0 %v3628_v29, %s3127_s21 }
 0x1b6   :  { %1163 = vrot.lane.b32.xlu1 %v3658_v39, %s3128_s22  ;;  %1161 = vrot.lane.b32.xlu0 %v3628_v29, %s3128_s22 }
 0x1ba   :  { %1035 = vrot.lane.b32.xlu1 %v3628_v29, %s3123_s29  ;;  %1456 = vrot.lane.b32.xlu0 %v3663_v41, %s3125_s4 }
 0x1be   :  { %939 = vrot.lane.b32.xlu1 %v3628_v29, %s3129_s25  ;;  %1359 = vrot.lane.b32.xlu0 %v3663_v41, %s3126_s20 }
 0x1c0   :  { %v1026_v46 = vpop.permute.xlu0 %1025 }
 0x1c1   :  { %1061 = vst.msk [vmem:[#allocation2 + $0x110] sm:$0xf0] %vm111_vm5, %v1026_v46  ;;  %vm1488_vm5 = vcmask 777220  }
 0x1c2   :  { %842 = vrot.lane.b32.xlu1 %v3628_v29, %s3121_s24  ;;  %1262 = vrot.lane.b32.xlu0 %v3663_v41, %s3127_s21 }
 0x1c4   :  { %v3757_v47 = vpop.permute.xlu0 %929 }
 0x1c5   :  { %966 = vst.msk [vmem:[#allocation2 + $0xb8] sm:$0xf0] %vm965_vm13, %v3757_v47  ;;  %vm1294_vm13 = vcmask 793604  }
 0x1c6   :  { %750 = vrot.lane.b32.xlu1 %v3628_v29, %s3120_s23  ;;  %1165 = vrot.lane.b32.xlu0 %v3663_v41, %s3128_s22 }
 0x1c8   :  { %v3764_v48 = vpop.permute.xlu0 %832 }
 0x1c9   :  { %869 = vst.msk [vmem:[#allocation2 + $0x60] sm:$0xf0] %vm868_vm12, %v3764_v48  ;;  %vm1391_vm12 = vcmask 785412  }
 0x1ca   :  { %1039 = vrot.lane.b32.xlu1 %v3663_v41, %s3123_s29  ;;  %752 = vrot.lane.b32.xlu0 %v3658_v39, %s3120_s23 }
 0x1cc   :  { %v3771_v51 = vpop.permute.xlu1 %1446  ;;  %v3773_v53 = vpop.permute.xlu0 %740 }
 0x1cd   :  { %776 = vst.msk [vmem:[#allocation2 + $0x8] sm:$0xf0] %vm209_vm2, %v3773_v53  ;;  %vm1572_vm2 = vcmask 588800  }
 0x1ce   :  { %943 = vrot.lane.b32.xlu1 %v3663_v41, %s3129_s25  ;;  %896 = vrot.lane.b32.xlu0 %v3305_v25, %s3129_s25 }
 0x1d0   :  { %v1443_v55 = vpop.permute.xlu1 %1442  ;;  %v3781_v56 = vpop.permute.xlu0 %1029 }
 0x1d2   :  { %846 = vrot.lane.b32.xlu1 %v3663_v41, %s3121_s24  ;;  %802 = vrot.lane.b32.xlu0 %v3305_v25, %s3121_s24 }
 0x1d4   :  { %v3787_v57 = vpop.permute.xlu1 %1349  ;;  %v3789_v19 = vpop.permute.xlu0 %933 }
 0x1d6   :  { %754 = vrot.lane.b32.xlu1 %v3663_v41, %s3120_s23  ;;  %690 = vrot.lane.b32.xlu0 %v3305_v25, %s3120_s23 }
 0x1d8   :  { %v1346_v58 = vpop.permute.xlu1 %1345  ;;  %v3795_v59 = vpop.permute.xlu0 %836 }
 0x1da   :  { %1458 = vrot.lane.b32.xlu1 %v3677_v24, %s3125_s4 }
 0x1dc   :  { %v3799_v60 = vpop.permute.xlu1 %1252  ;;  %v3801_v61 = vpop.permute.xlu0 %744 }
 0x1de   :  { %1361 = vrot.lane.b32.xlu1 %v3677_v24, %s3126_s20 }
 0x1e0   :  { %v1249_v62 = vpop.permute.xlu1 %1248  ;;  %v1445_v63 = vpop.permute.xlu0 %1444 }
 0x1e1   :  { %v1460_v2 = vsel %vm1411_vm8, %v1443_v55, %v1445_v63  ;;  %v1461_v25 = vsel %vm1411_vm8, %v1445_v63, %v3771_v51 }
 0x1e2   :  { %1480 = vst [vmem:[#allocation2 + $0x2c8] sm:$0xf0] %v1460_v2  ;;  %1481 = vst [vmem:[#allocation2 + $0x2d0] sm:$0xf0] %v1461_v25  ;;  %1264 = vrot.lane.b32.xlu1 %v3677_v24, %s3127_s21 }
 0x1e4   :  { %v3810_v3 = vpop.permute.xlu1 %1155  ;;  %v1348_v4 = vpop.permute.xlu0 %1347 }
 0x1e5   :  { %v1363_v5 = vsel %vm1314_vm9, %v1346_v58, %v1348_v4  ;;  %v1364_v6 = vsel %vm1314_vm9, %v1348_v4, %v3787_v57  ;;  %v1518_v58 = vld [vmem:[#allocation2 + $0x110] sm:$0xff] }
 0x1e6   :  { %1383 = vst [vmem:[#allocation2 + $0x270] sm:$0xf0] %v1363_v5  ;;  %1384 = vst [vmem:[#allocation2 + $0x278] sm:$0xf0] %v1364_v6  ;;  %1167 = vrot.lane.b32.xlu1 %v3677_v24, %s3128_s22  ;;  %v1500_v5 = vld [vmem:[#allocation2 + $0x60] sm:$0xff] }
 0x1e8   :  { %v1152_v7 = vpop.permute.xlu1 %1151  ;;  %v1251_v8 = vpop.permute.xlu0 %1250 }
 0x1e9   :  { %v1266_v9 = vsel %vm1217_vm10, %v1249_v62, %v1251_v8  ;;  %v1267_v11 = vsel %vm1217_vm10, %v1251_v8, %v3799_v60  ;;  %v1564_v12 = vld [vmem:[#allocation2 + $0x2d0] sm:$0xff]  ;;  %v1563_v15 = vld [vmem:[#allocation2 + $0x2c8] sm:$0xff] }
 0x1ea   :  { %1286 = vst [vmem:[#allocation2 + $0x218] sm:$0xf0] %v1266_v9  ;;  %1287 = vst [vmem:[#allocation2 + $0x220] sm:$0xf0] %v1267_v11  ;;  %1041 = vrot.lane.b32.xlu1 %v3677_v24, %s3123_s29  ;;  %1590 = vmatprep.subr.mxu1 %v1564_v12  ;;  %v1491_v11 = vld [vmem:[#allocation2 + $0x8] sm:$0xff] }
 0x1eb   :  { %1591 = vmatpush1.msra.mxu1 %v1563_v15 }
 0x1ec   :  { %v1028_v16 = vpop.permute.xlu1 %1027  ;;  %v1154_v17 = vpop.permute.xlu0 %1153 }
 0x1ed   :  { %v1043_v20 = vsel %vm92_vm4, %v1026_v46, %v1028_v16  ;;  %v1044_v22 = vsel %vm92_vm4, %v1028_v16, %v3781_v56  ;;  %v1169_v23 = vsel %vm1120_vm11, %v1152_v7, %v1154_v17  ;;  %v1170_v26 = vsel %vm1120_vm11, %v1154_v17, %v3810_v3  ;;  %v1555_v27 = vld [vmem:[#allocation2 + $0x278] sm:$0xff]  ;;  %v1554_v28 = vld [vmem:[#allocation2 + $0x270] sm:$0xff] }
 0x1ee   :  { %1062 = vst [vmem:[#allocation2 + $0x118] sm:$0xf0] %v1043_v20  ;;  %1063 = vst [vmem:[#allocation2 + $0x120] sm:$0xf0] %v1044_v22  ;;  %945 = vrot.lane.b32.xlu1 %v3677_v24, %s3129_s25  ;;  %1592 = vmatprep.subr.mxu1 %v1555_v27 }
 0x1ef   :  { %1189 = vst [vmem:[#allocation2 + $0x1c0] sm:$0xf0] %v1169_v23  ;;  %1190 = vst [vmem:[#allocation2 + $0x1c8] sm:$0xf0] %v1170_v26  ;;  %1593 = vmatpush1.msra.mxu1 %v1554_v28 }
 0x1f0   :  { %v932_v29 = vpop.permute.xlu1 %931  ;;  %v3830_v30 = vpop.permute.xlu0 %1448 }
 0x1f1   :  { %v947_v33 = vsel %vm898_vm15, %v3757_v47, %v932_v29  ;;  %v948_v34 = vsel %vm898_vm15, %v932_v29, %v3789_v19  ;;  %v1462_v35 = vsel %vm1411_vm8, %v3771_v51, %v3830_v30  ;;  %v1546_v36 = vld [vmem:[#allocation2 + $0x220] sm:$0xff]  ;;  %v1545_v21 = vld [vmem:[#allocation2 + $0x218] sm:$0xff] }
 0x1f2   :  { %967 = vst [vmem:[#allocation2 + $0xc0] sm:$0xf0] %v947_v33  ;;  %968 = vst [vmem:[#allocation2 + $0xc8] sm:$0xf0] %v948_v34  ;;  %848 = vrot.lane.b32.xlu1 %v3677_v24, %s3121_s24  ;;  %1594 = vmatprep.subr.mxu1 %v1546_v36 }
 0x1f3   :  { %1482 = vst [vmem:[#allocation2 + $0x2d8] sm:$0xf0] %v1462_v35  ;;  %1595 = vmatpush1.msra.mxu1 %v1545_v21 }
 0x1f4   :  { %v835_v18 = vpop.permute.xlu1 %834  ;;  %v3841_v39 = vpop.permute.xlu0 %1351 }
 0x1f5   :  { %v850_v40 = vsel %vm141_vm3, %v3764_v48, %v835_v18  ;;  %v851_v41 = vsel %vm141_vm3, %v835_v18, %v3795_v59  ;;  %v1365_v38 = vsel %vm1314_vm9, %v3787_v57, %v3841_v39  ;;  %v1527_v48 = vld [vmem:[#allocation2 + $0x168] sm:$0xff] }
 0x1f6   :  { %v1537_v42 = vld [vmem:[#allocation2 + $0x1c8] sm:$0xff]  ;;  %v1536_v43 = vld [vmem:[#allocation2 + $0x1c0] sm:$0xff]  ;;  %870 = vst [vmem:[#allocation2 + $0x68] sm:$0xf0] %v850_v40  ;;  %871 = vst [vmem:[#allocation2 + $0x70] sm:$0xf0] %v851_v41  ;;  %756 = vrot.lane.b32.xlu1 %v3677_v24, %s3120_s23 }
 0x1f7   :  { %1385 = vst [vmem:[#allocation2 + $0x280] sm:$0xf0] %v1365_v38  ;;  %1596 = vmatprep.subr.mxu1 %v1537_v42  ;;  %v1519_v24 = vld [vmem:[#allocation2 + $0x118] sm:$0xff] }
 0x1f8   :  { %1597 = vmatpush1.msra.mxu1 %v1536_v43  ;;  %v743_v46 = vpop.permute.xlu1 %742  ;;  %v3852_v47 = vpop.permute.xlu0 %1254 }
 0x1f9   :  { %1598 = vmatprep.subr.mxu1 %v1528_v44  ;;  %v758_v51 = vsel %vm190_vm1, %v3773_v53, %v743_v46  ;;  %v759_v55 = vsel %vm190_vm1, %v743_v46, %v3801_v61  ;;  %v1268_v57 = vsel %vm1217_vm10, %v3799_v60, %v3852_v47  ;;  %v1510_v62 = vld [vmem:[#allocation2 + $0xc0] sm:$0xff]  ;;  %v1509_v53 = vld [vmem:[#allocation2 + $0xb8] sm:$0xff] }
 0x1fa   :  { %1599 = vmatpush1.msra.mxu1 %v1527_v48  ;;  %777 = vst [vmem:[#allocation2 + $0x10] sm:$0xf0] %v758_v51  ;;  %778 = vst [vmem:[#allocation2 + $0x18] sm:$0xf0] %v759_v55 }
 0x1fb   :  { %1288 = vst [vmem:[#allocation2 + $0x228] sm:$0xf0] %v1268_v57  ;;  %1600 = vmatprep.subr.mxu1 %v1519_v24 }
 0x1fc   :  { %1601 = vmatpush1.msra.mxu1 %v1518_v58  ;;  %v1032_v63 = vpop.permute.xlu1 %1031  ;;  %v3861_v2 = vpop.permute.xlu0 %1157 }
 0x1fd   :  { %1602 = vmatprep.subr.mxu1 %v1510_v62  ;;  %v1045_v25 = vsel %vm92_vm4, %v3781_v56, %v1032_v63  ;;  %v1171_v60 = vsel %vm1120_vm11, %v3810_v3, %v3861_v2  ;;  %v1501_v4 = vld [vmem:[#allocation2 + $0x68] sm:$0xff]  ;;  %v3877_v3 = vld [vmem:[%s4515_s5] sm:$0xff] }
 0x1fe   :  { %1603 = vmatpush1.msra.mxu1 %v1509_v53  ;;  %1064 = vst [vmem:[#allocation2 + $0x128] sm:$0xf0] %v1045_v25  ;;  %1191 = vst [vmem:[#allocation2 + $0x1d0] sm:$0xf0] %v1171_v60  ;;  %v1556_v38 = vld [vmem:[#allocation2 + $0x280] sm:$0xff] }
 0x1ff   :  { %1604 = vmatprep.subr.mxu1 %v1501_v4 }
 0x200   :  { %1605 = vmatpush1.msra.mxu1 %v1500_v5  ;;  %v936_v6 = vpop.permute.xlu1 %935  ;;  %v3868_v7 = vpop.permute.xlu0 %1033  ;;  %v1530_v5 = vld [vmem:[#allocation2 + $0x180] sm:$0xff] }
 0x201   :  { %v949_v8 = vsel %vm898_vm15, %v3789_v19, %v936_v6  ;;  %v1046_v56 = vsel %vm92_vm4, %v1032_v63, %v3868_v7  ;;  %v1492_v9 = vld [vmem:[#allocation2 + $0x10] sm:$0xff] }
 0x202   :  { %969 = vst [vmem:[#allocation2 + $0xd0] sm:$0xf0] %v949_v8  ;;  %1065 = vst [vmem:[#allocation2 + $0x130] sm:$0xf0] %v1046_v56  ;;  %1606 = vmatprep.subr.mxu1 %v1492_v9  ;;  %v1547_v48 = vld [vmem:[#allocation2 + $0x228] sm:$0xff]  ;;  %v1529_v56 = vld [vmem:[#allocation2 + $0x178] sm:$0xff] }
 0x203   :  { %1607 = vmatpush1.msra.mxu1 %v1491_v11 }
 0x204   :  { %v839_v12 = vpop.permute.xlu1 %838  ;;  %v3879_v15 = vpop.permute.xlu0 %937  ;;  %2999 = vmatmul.mubr.msk.f32.vlgmr.msra.gmra.mxu1 %vm1572_vm2, %v3877_v3 }
 0x205   :  { %v852_v19 = vsel %vm141_vm3, %v3795_v59, %v839_v12  ;;  %v950_v16 = vsel %vm898_vm15, %v936_v6, %v3879_v15  ;;  %1782 = vmatprep.mubr.f32.mxu1 %v3122_v10  ;;  %v1538_v4 = vld [vmem:[#allocation2 + $0x1d0] sm:$0xff] }
 0x206   :  { %872 = vst [vmem:[#allocation2 + $0x78] sm:$0xf0] %v852_v19  ;;  %970 = vst [vmem:[#allocation2 + $0xd8] sm:$0xf0] %v950_v16 }
 0x208   :  { %v747_v17 = vpop.permute.xlu1 %746  ;;  %v3888_v20 = vpop.permute.xlu0 %840 }
 0x209   :  { %v760_v22 = vsel %vm190_vm1, %v3801_v61, %v747_v17  ;;  %v853_v23 = vsel %vm141_vm3, %v839_v12, %v3888_v20  ;;  %v1521_v12 = vld [vmem:[#allocation2 + $0x128] sm:$0xff] }
 0x20a   :  { %779 = vst [vmem:[#allocation2 + $0x20] sm:$0xf0] %v760_v22  ;;  %873 = vst [vmem:[#allocation2 + $0x80] sm:$0xf0] %v853_v23  ;;  %v1512_v22 = vld [vmem:[#allocation2 + $0xd0] sm:$0xff] }
 0x20c   :  { %v1451_v26 = vpop.permute.xlu1 %1450  ;;  %v3894_v59 = vpop.permute.xlu0 %748 }
 0x20d   :  { %v1463_v27 = vsel %vm1411_vm8, %v3830_v30, %v1451_v26  ;;  %v761_v28 = vsel %vm190_vm1, %v747_v17, %v3894_v59  ;;  %v1565_v30 = vld [vmem:[#allocation2 + $0x2d8] sm:$0xff]  ;;  %v1520_v17 = vld [vmem:[#allocation2 + $0x120] sm:$0xff] }
 0x20e   :  { %1483 = vst [vmem:[#allocation2 + $0x2e0] sm:$0xf0] %v1463_v27  ;;  %780 = vst [vmem:[#allocation2 + $0x28] sm:$0xf0] %v761_v28  ;;  %v1511_v27 = vld [vmem:[#allocation2 + $0xc8] sm:$0xff] }
 0x210   :  { %v1354_v29 = vpop.permute.xlu1 %1353  ;;  %v3900_v33 = vpop.permute.xlu0 %1037 }
 0x211   :  { %v1366_v61 = vsel %vm1314_vm9, %v3841_v39, %v1354_v29 }
 0x212   :  { %1386 = vst [vmem:[#allocation2 + $0x288] sm:$0xf0] %v1366_v61 }
 0x214   :  { %v1257_v34 = vpop.permute.xlu1 %1256  ;;  %v3904_v35 = vpop.permute.xlu0 %941 }
 0x215   :  { %v1269_v36 = vsel %vm1217_vm10, %v3852_v47, %v1257_v34  ;;  %v1566_v21 = vld [vmem:[#allocation2 + $0x2e0] sm:$0xff] }
 0x216   :  { %1289 = vst [vmem:[#allocation2 + $0x230] sm:$0xf0] %v1269_v36  ;;  %1661 = vmatprep.subr.mxu0 %v1566_v21 }
 0x217   :  { %1662 = vmatpush1.msra.mxu0 %v1565_v30  ;;  %v1502_v30 = vld [vmem:[#allocation2 + $0x70] sm:$0xff] }
 0x218   :  { %v3908_v18 = vpop.permute.xlu1 %1454  ;;  %v3910_v40 = vpop.permute.xlu0 %844 }
 0x219   :  { %v1557_v41 = vld [vmem:[#allocation2 + $0x288] sm:$0xff] }
 0x21a   :  { %1663 = vmatprep.subr.mxu0 %v1557_v41 }
 0x21b   :  { %1664 = vmatpush1.msra.mxu0 %v1556_v38 }
 0x21c   :  { %v1160_v39 = vpop.permute.xlu1 %1159  ;;  %v1453_v42 = vpop.permute.xlu0 %1452 }
 0x21d   :  { %v1172_v43 = vsel %vm1120_vm11, %v3861_v2, %v1160_v39  ;;  %v1464_v44 = vsel %vm1411_vm8, %v1451_v26, %v1453_v42  ;;  %v1465_v46 = vsel %vm1411_vm8, %v1453_v42, %v3908_v18  ;;  %v1548_v47 = vld [vmem:[#allocation2 + $0x230] sm:$0xff] }
 0x21e   :  { %1192 = vst [vmem:[#allocation2 + $0x1d8] sm:$0xf0] %v1172_v43  ;;  %1484 = vst [vmem:[#allocation2 + $0x2e8] sm:$0xf0] %v1464_v44  ;;  %1665 = vmatprep.subr.mxu0 %v1548_v47  ;;  %v1532_v47 = vld [vmem:[#allocation2 + $0x190] sm:$0xff] }
 0x21f   :  { %1485 = vst [vmem:[#allocation2 + $0x2f0] sm:$0xf0] %v1465_v46  ;;  %1666 = vmatpush1.msra.mxu0 %v1547_v48 }
 0x220   :  { %v3917_v51 = vpop.permute.xlu1 %1357  ;;  %v1356_v55 = vpop.permute.xlu0 %1355 }
 0x221   :  { %v1367_v57 = vsel %vm1314_vm9, %v1354_v29, %v1356_v55  ;;  %v1368_v24 = vsel %vm1314_vm9, %v1356_v55, %v3917_v51  ;;  %v1531_v55 = vld [vmem:[#allocation2 + $0x188] sm:$0xff] }
 0x222   :  { %1387 = vst [vmem:[#allocation2 + $0x290] sm:$0xf0] %v1367_v57  ;;  %1388 = vst [vmem:[#allocation2 + $0x298] sm:$0xf0] %v1368_v24 }
 0x224   :  { %v3922_v58 = vpop.permute.xlu1 %1260  ;;  %v1259_v62 = vpop.permute.xlu0 %1258 }
 0x225   :  { %v1270_v63 = vsel %vm1217_vm10, %v1257_v34, %v1259_v62  ;;  %v1271_v2 = vsel %vm1217_vm10, %v1259_v62, %v3922_v58  ;;  %v1539_v53 = vld [vmem:[#allocation2 + $0x1d8] sm:$0xff]  ;;  %v1567_v60 = vld [vmem:[#allocation2 + $0x2e8] sm:$0xff] }
 0x226   :  { %v1568_v25 = vld [vmem:[#allocation2 + $0x2f0] sm:$0xff]  ;;  %1290 = vst [vmem:[#allocation2 + $0x238] sm:$0xf0] %v1270_v63  ;;  %1291 = vst [vmem:[#allocation2 + $0x240] sm:$0xf0] %v1271_v2  ;;  %1667 = vmatprep.subr.mxu0 %v1539_v53  ;;  %v1503_v34 = vld [vmem:[#allocation2 + $0x78] sm:$0xff] }
 0x227   :  { %1732 = vmatprep.subr.mxu1 %v1568_v25  ;;  %1668 = vmatpush1.msra.mxu0 %v1538_v4  ;;  %v1522_v63 = vld [vmem:[#allocation2 + $0x130] sm:$0xff] }
 0x228   :  { %1733 = vmatpush1.msra.mxu1 %v1567_v60  ;;  %v3927_v6 = vpop.permute.xlu1 %1163  ;;  %1669 = vmatprep.subr.mxu0 %v1530_v5  ;;  %v1162_v8 = vpop.permute.xlu0 %1161 }
 0x229   :  { %v1173_v9 = vsel %vm1120_vm11, %v1160_v39, %v1162_v8  ;;  %v1174_v11 = vsel %vm1120_vm11, %v1162_v8, %v3927_v6  ;;  %1670 = vmatpush1.msra.mxu0 %v1529_v56  ;;  %v1559_v19 = vld [vmem:[#allocation2 + $0x298] sm:$0xff]  ;;  %v1558_v16 = vld [vmem:[#allocation2 + $0x290] sm:$0xff] }
 0x22a   :  { %1193 = vst [vmem:[#allocation2 + $0x1e0] sm:$0xf0] %v1173_v9  ;;  %1194 = vst [vmem:[#allocation2 + $0x1e8] sm:$0xf0] %v1174_v11  ;;  %1671 = vmatprep.subr.mxu0 %v1521_v12  ;;  %1734 = vmatprep.subr.mxu1 %v1559_v19  ;;  %v1493_v39 = vld [vmem:[#allocation2 + $0x18] sm:$0xff] }
 0x22b   :  { %1672 = vmatpush1.msra.mxu0 %v1520_v17  ;;  %1735 = vmatpush1.msra.mxu1 %v1558_v16 }
 0x22c   :  { %v1036_v23 = vpop.permute.xlu1 %1035  ;;  %1673 = vmatprep.subr.mxu0 %v1512_v22  ;;  %v3932_v26 = vpop.permute.xlu0 %1456 }
 0x22d   :  { %v1047_v28 = vsel %vm92_vm4, %v3868_v7, %v1036_v23  ;;  %v1048_v29 = vsel %vm92_vm4, %v1036_v23, %v3900_v33  ;;  %v1466_v61 = vsel %vm1411_vm8, %v3908_v18, %v3932_v26  ;;  %1674 = vmatpush1.msra.mxu0 %v1511_v27  ;;  %v1550_v36 = vld [vmem:[#allocation2 + $0x240] sm:$0xff]  ;;  %v1549_v21 = vld [vmem:[#allocation2 + $0x238] sm:$0xff] }
 0x22e   :  { %1066 = vst [vmem:[#allocation2 + $0x138] sm:$0xf0] %v1047_v28  ;;  %1067 = vst [vmem:[#allocation2 + $0x140] sm:$0xf0] %v1048_v29  ;;  %1675 = vmatprep.subr.mxu0 %v1503_v34  ;;  %1736 = vmatprep.subr.mxu1 %v1550_v36  ;;  %v1494_v7 = vld [vmem:[#allocation2 + $0x20] sm:$0xff] }
 0x22f   :  { %1486 = vst [vmem:[#allocation2 + $0x2f8] sm:$0xf0] %v1466_v61  ;;  %1676 = vmatpush1.msra.mxu0 %v1502_v30  ;;  %1737 = vmatpush1.msra.mxu1 %v1549_v21 }
 0x230   :  { %v940_v41 = vpop.permute.xlu1 %939  ;;  %1677 = vmatprep.subr.mxu0 %v1494_v7  ;;  %v3941_v38 = vpop.permute.xlu0 %1359 }
 0x231   :  { %v951_v18 = vsel %vm898_vm15, %v3879_v15, %v940_v41  ;;  %v952_v42 = vsel %vm898_vm15, %v940_v41, %v3904_v35  ;;  %v1369_v43 = vsel %vm1314_vm9, %v3917_v51, %v3941_v38  ;;  %1678 = vmatpush1.msra.mxu0 %v1493_v39  ;;  %v1541_v44 = vld [vmem:[#allocation2 + $0x1e8] sm:$0xff]  ;;  %v1540_v46 = vld [vmem:[#allocation2 + $0x1e0] sm:$0xff] }
 0x232   :  { %971 = vst [vmem:[#allocation2 + $0xe0] sm:$0xf0] %v951_v18  ;;  %972 = vst [vmem:[#allocation2 + $0xe8] sm:$0xf0] %v952_v42  ;;  %1738 = vmatprep.subr.mxu1 %v1541_v44  ;;  %3000 = vmatmul.mubr.msk.f32.vlgmr.msra.gmra.mxu0 %vm1572_vm2, %v3877_v3 }
 0x233   :  { %1389 = vst [vmem:[#allocation2 + $0x2a0] sm:$0xf0] %v1369_v43  ;;  %1739 = vmatpush1.msra.mxu1 %v1540_v46  ;;  %1853 = vmatprep.mubr.f32.mxu0 %v3122_v10 }
 0x234   :  { %v843_v15 = vpop.permute.xlu1 %842  ;;  %v3953_v48 = vpop.permute.xlu0 %1262  ;;  %1740 = vmatprep.subr.mxu1 %v1532_v47 }
 0x235   :  { %v854_v51 = vsel %vm141_vm3, %v3888_v20, %v843_v15  ;;  %v855_v57 = vsel %vm141_vm3, %v843_v15, %v3910_v40  ;;  %v1272_v24 = vsel %vm1217_vm10, %v3922_v58, %v3953_v48  ;;  %1741 = vmatpush1.msra.mxu1 %v1531_v55  ;;  %v1523_v62 = vld [vmem:[#allocation2 + $0x138] sm:$0xff] }
 0x236   :  { %874 = vst [vmem:[#allocation2 + $0x88] sm:$0xf0] %v854_v51  ;;  %875 = vst [vmem:[#allocation2 + $0x90] sm:$0xf0] %v855_v57  ;;  %1742 = vmatprep.subr.mxu1 %v1523_v62  ;;  %v1513_v58 = vld [vmem:[#allocation2 + $0xd8] sm:$0xff]  ;;  %v1534_v62 = vld [vmem:[#allocation2 + $0x1a0] sm:$0xff] }
 0x237   :  { %1292 = vst [vmem:[#allocation2 + $0x248] sm:$0xf0] %v1272_v24  ;;  %1743 = vmatpush1.msra.mxu1 %v1522_v63  ;;  %v1535_v24 = vld [vmem:[#allocation2 + $0x1a8] sm:$0xff] }
 0x238   :  { %v751_v2 = vpop.permute.xlu1 %750  ;;  %v3962_v53 = vpop.permute.xlu0 %1165 }
 0x239   :  { %v762_v20 = vsel %vm190_vm1, %v3894_v59, %v751_v2  ;;  %v1175_v25 = vsel %vm1120_vm11, %v3927_v6, %v3962_v53  ;;  %v1514_v60 = vld [vmem:[#allocation2 + $0xe0] sm:$0xff] }
 0x23a   :  { %781 = vst [vmem:[#allocation2 + $0x30] sm:$0xf0] %v762_v20  ;;  %1195 = vst [vmem:[#allocation2 + $0x1f0] sm:$0xf0] %v1175_v25  ;;  %1744 = vmatprep.subr.mxu1 %v1514_v60  ;;  %v1504_v6 = vld [vmem:[#allocation2 + $0x80] sm:$0xff] }
 0x23b   :  { %1745 = vmatpush1.msra.mxu1 %v1513_v58  ;;  %v1560_v18 = vld [vmem:[#allocation2 + $0x2a0] sm:$0xff] }
 0x23c   :  { %v3969_v4 = vpop.permute.xlu1 %1039  ;;  %v753_v5 = vpop.permute.xlu0 %752  ;;  %v1524_v60 = vld [vmem:[#allocation2 + $0x140] sm:$0xff] }
 0x23d   :  { %v1049_v8 = vsel %vm92_vm4, %v3900_v33, %v3969_v4  ;;  %v763_v56 = vsel %vm190_vm1, %v751_v2, %v753_v5  ;;  %v1505_v59 = vld [vmem:[#allocation2 + $0x88] sm:$0xff]  ;;  %v1533_v2 = vld [vmem:[#allocation2 + $0x198] sm:$0xff] }
 0x23e   :  { %1068 = vst [vmem:[#allocation2 + $0x148] sm:$0xf0] %v1049_v8  ;;  %782 = vst [vmem:[#allocation2 + $0x38] sm:$0xf0] %v763_v56  ;;  %1746 = vmatprep.subr.mxu1 %v1505_v59  ;;  %v1495_v33 = vld [vmem:[#allocation2 + $0x28] sm:$0xff] }
 0x23f   :  { %1747 = vmatpush1.msra.mxu1 %v1504_v6  ;;  %v1551_v47 = vld [vmem:[#allocation2 + $0x248] sm:$0xff]  ;;  %v1506_v6 = vld [vmem:[#allocation2 + $0x90] sm:$0xff] }
 0x240   :  { %v3975_v9 = vpop.permute.xlu1 %943  ;;  %v897_v11 = vpop.permute.xlu0 %896 }
 0x241   :  { %v953_v12 = vsel %vm898_vm15, %v3904_v35, %v3975_v9  ;;  %v906_v19 = vsel %vm898_vm15, %v3534_v45, %v897_v11  ;;  %v1496_v16 = vld [vmem:[#allocation2 + $0x30] sm:$0xff] }
 0x242   :  { %973 = vst [vmem:[#allocation2 + $0xf0] sm:$0xf0] %v953_v12  ;;  %926 = vst [vmem:[#allocation2 + $0xf8] sm:$0xf] %v906_v19  ;;  %1748 = vmatprep.subr.mxu1 %v1496_v16  ;;  %v1542_v57 = vld [vmem:[#allocation2 + $0x1f0] sm:$0xff] }
 0x243   :  { %1749 = vmatpush1.msra.mxu1 %v1495_v33 }
 0x244   :  { %v3982_v17 = vpop.permute.xlu1 %846  ;;  %v803_v22 = vpop.permute.xlu0 %802  ;;  %3039 = vmatprep.subr.mxu1 %v3122_v10  ;;  %3001 = vmatmul.mubr.msk.f32.vlgmr.msra.gmra.mxu1 %vm1572_vm2, %v3877_v3 }
 0x245   :  { %v856_v35 = vsel %vm141_vm3, %v3910_v40, %v3982_v17  ;;  %v811_v45 = vsel %vm141_vm3, %v3547_v50, %v803_v22  ;;  %3057 = vmatprep.mubr.msk.f32.mxu1 %vm4528_vm7, %v3122_v10  ;;  %v1525_v20 = vld [vmem:[#allocation2 + $0x148] sm:$0xff]  ;;  %v1497_v11 = vld [vmem:[#allocation2 + $0x38] sm:$0xff]  ;;  %vm4532_vm7 = vcmp.eq.s32.totalorder %v3609_v14, 1 }
 0x246   :  { %876 = vst [vmem:[#allocation2 + $0x98] sm:$0xf0] %v856_v35  ;;  %830 = vst [vmem:[#allocation2 + $0xa0] sm:$0xf] %v811_v45 }
 0x248   :  { %v3994_v23 = vpop.permute.xlu1 %754  ;;  %v691_v27 = vpop.permute.xlu0 %690 }
 0x249   :  { %v764_v28 = vsel %vm190_vm1, %v753_v5, %v3994_v23  ;;  %v699_v29 = vsel %vm190_vm1, %v3555_v54, %v691_v27  ;;  %v1516_v58 = vld [vmem:[#allocation2 + $0xf0] sm:$0xff]  ;;  %v1515_v5 = vld [vmem:[#allocation2 + $0xe8] sm:$0xff] }
 0x24a   :  { %783 = vst [vmem:[#allocation2 + $0x40] sm:$0xf0] %v764_v28  ;;  %719 = vst [vmem:[#allocation2 + $0x48] sm:$0xf] %v699_v29 }
 0x24c   :  { %v1459_v40 = vpop.permute.xlu1 %1458 }
 0x24d   :  { %v1467_v50 = vsel %vm1411_vm8, %v3932_v26, %v1459_v40  ;;  %1489 = vst.msk [vmem:[#allocation2 + $0x308] sm:$0xf0] %vm1488_vm5, %v1459_v40  ;;  %v1569_v26 = vld [vmem:[#allocation2 + $0x2f8] sm:$0xff]  ;;  %vm1197_vm5 = vcmask 1039364  }
 0x24e   :  { %1487 = vst [vmem:[#allocation2 + $0x300] sm:$0xf0] %v1467_v50  ;;  %v1507_v56 = vld [vmem:[#allocation2 + $0x98] sm:$0xff] }
 0x250   :  { %v1362_v61 = vpop.permute.xlu1 %1361 }
 0x251   :  { %v1370_v34 = vsel %vm1314_vm9, %v3941_v38, %v1362_v61  ;;  %1392 = vst.msk [vmem:[#allocation2 + $0x2b0] sm:$0xf0] %vm1391_vm12, %v1362_v61  ;;  %vm4529_vm12 = vcmp.eq.s32.totalorder %v3577_v0, 1 }
 0x252   :  { %1390 = vst [vmem:[#allocation2 + $0x2a8] sm:$0xf0] %v1370_v34 }
 0x254   :  { %v1265_v36 = vpop.permute.xlu1 %1264  ;;  %v1571_v21 = vld [vmem:[#allocation2 + $0x308] sm:$0xff] }
 0x255   :  { %v1273_v54 = vsel %vm1217_vm10, %v3953_v48, %v1265_v36  ;;  %1295 = vst.msk [vmem:[#allocation2 + $0x258] sm:$0xf0] %vm1294_vm13, %v1265_v36  ;;  %3040 = vmatpush3.msra.mxu1 %v1571_v21  ;;  %v1570_v30 = vld [vmem:[#allocation2 + $0x300] sm:$0xff]  ;;  %vm4530_vm13 = vcmp.eq.s32.totalorder %v3582_v1, 1 }
 0x256   :  { %1293 = vst [vmem:[#allocation2 + $0x250] sm:$0xf0] %v1273_v54  ;;  %1803 = vmatprep.subr.mxu0 %v1570_v30  ;;  %3041 = vmatprep.subr.mxu1 %v3122_v10 }
 0x257   :  { %1804 = vmatpush1.msra.mxu0 %v1569_v26 }
 0x258   :  { %v1168_v7 = vpop.permute.xlu1 %1167  ;;  %v1562_v41 = vld [vmem:[#allocation2 + $0x2b0] sm:$0xff] }
 0x259   :  { %v1176_v38 = vsel %vm1120_vm11, %v3962_v53, %v1168_v7  ;;  %1198 = vst.msk [vmem:[#allocation2 + $0x200] sm:$0xf0] %vm1197_vm5, %v1168_v7  ;;  %3042 = vmatpush3.msra.mxu1 %v1562_v41  ;;  %v1561_v39 = vld [vmem:[#allocation2 + $0x2a8] sm:$0xff]  ;;  %vm4531_vm5 = vcmp.eq.s32.totalorder %v3603_v13, 1 }
 0x25a   :  { %1196 = vst [vmem:[#allocation2 + $0x1f8] sm:$0xf0] %v1176_v38  ;;  %1805 = vmatprep.subr.mxu0 %v1561_v39  ;;  %3043 = vmatprep.subr.mxu1 %v3122_v10 }
 0x25b   :  { %1806 = vmatpush1.msra.mxu0 %v1560_v18 }
 0x25c   :  { %v1042_v42 = vpop.permute.xlu1 %1041  ;;  %v1553_v43 = vld [vmem:[#allocation2 + $0x258] sm:$0xff] }
 0x25d   :  { %v1050_v44 = vsel %vm92_vm4, %v3969_v4, %v1042_v42  ;;  %3044 = vmatpush3.msra.mxu1 %v1553_v43  ;;  %v1552_v46 = vld [vmem:[#allocation2 + $0x250] sm:$0xff] }
 0x25e   :  { %1069 = vst [vmem:[#allocation2 + $0x150] sm:$0xf0] %v1050_v44  ;;  %1807 = vmatprep.subr.mxu0 %v1552_v46  ;;  %3045 = vmatprep.subr.mxu1 %v3122_v10 }
 0x25f   :  { %1808 = vmatpush1.msra.mxu0 %v1551_v47 }
 0x260   :  { %v946_v15 = vpop.permute.xlu1 %945  ;;  %v1544_v48 = vld [vmem:[#allocation2 + $0x200] sm:$0xff] }
 0x261   :  { %v954_v55 = vsel %vm898_vm15, %v3975_v9, %v946_v15  ;;  %3046 = vmatpush3.msra.mxu1 %v1544_v48  ;;  %v1543_v51 = vld [vmem:[#allocation2 + $0x1f8] sm:$0xff]  ;;  %v1498_v9 = vld [vmem:[#allocation2 + $0x40] sm:$0xff] }
 0x262   :  { %974 = vst [vmem:[#allocation2 + $0xf8] sm:$0xf0] %v954_v55  ;;  %1809 = vmatprep.subr.mxu0 %v1543_v51  ;;  %3047 = vmatprep.subr.mxu1 %v3122_v10 }
 0x263   :  { %1810 = vmatpush1.msra.mxu0 %v1542_v57  ;;  %3048 = vmatpush3.msra.mxu1 %v1535_v24 }
 0x264   :  { %v849_v63 = vpop.permute.xlu1 %848  ;;  %1811 = vmatprep.subr.mxu0 %v1534_v62  ;;  %3049 = vmatprep.subr.mxu1 %v3122_v10 }
 0x265   :  { %v857_v53 = vsel %vm141_vm3, %v3982_v17, %v849_v63  ;;  %1812 = vmatpush1.msra.mxu0 %v1533_v2  ;;  %v1526_v25 = vld [vmem:[#allocation2 + $0x150] sm:$0xff] }
 0x266   :  { %877 = vst [vmem:[#allocation2 + $0xa0] sm:$0xf0] %v857_v53  ;;  %1813 = vmatprep.subr.mxu0 %v1525_v20  ;;  %3050 = vmatpush3.msra.mxu1 %v1526_v25 }
 0x267   :  { %1814 = vmatpush1.msra.mxu0 %v1524_v60  ;;  %3051 = vmatprep.subr.mxu1 %v3122_v10 }
 0x268   :  { %v757_v4 = vpop.permute.xlu1 %756  ;;  %1815 = vmatprep.subr.mxu0 %v1516_v58 }
 0x269   :  { %v765_v8 = vsel %vm190_vm1, %v3994_v23, %v757_v4  ;;  %1816 = vmatpush1.msra.mxu0 %v1515_v5  ;;  %v1517_v59 = vld [vmem:[#allocation2 + $0xf8] sm:$0xff] }
 0x26a   :  { %784 = vst [vmem:[#allocation2 + $0x48] sm:$0xf0] %v765_v8  ;;  %1817 = vmatprep.subr.mxu0 %v1507_v56  ;;  %3052 = vmatpush3.msra.mxu1 %v1517_v59 }
 0x26b   :  { %1818 = vmatpush1.msra.mxu0 %v1506_v6  ;;  %3053 = vmatprep.subr.mxu1 %v3122_v10 }
 0x26c   :  { %1819 = vmatprep.subr.mxu0 %v1498_v9 }
 0x26d   :  { %1820 = vmatpush1.msra.mxu0 %v1497_v11  ;;  %v1508_v12 = vld [vmem:[#allocation2 + $0xa0] sm:$0xff] }
 0x26e   :  { %3002 = vmatmul.mubr.msk.f32.vlgmr.msra.gmra.mxu0 %vm1572_vm2, %v3877_v3  ;;  %3054 = vmatpush3.msra.mxu1 %v1508_v12 }
 0x26f   :  { %3055 = vmatprep.subr.mxu1 %v3122_v10  ;;  %2582 = vmatprep.mubr.f32.mxu0 %v3122_v10 }
 0x271   :  { %v1499_v19 = vld [vmem:[#allocation2 + $0x48] sm:$0xff] }
 0x272   :  { %3056 = vmatpush3.msra.mxu1 %v1499_v19 }
 0x273   :  { %3058 = vmatmul.mubr.msk.f32.vlgmr.msra.gmra.mxu1 %vm1572_vm2, %v3877_v3 }
 0x274   :  { %2653 = vmatprep.mubr.f32.mxu1 %v3122_v10 }
 0x2c4   :  { %v1642_v16 = vpop.f32.mrf.mxu1 }
 0x2c5   :  { %v1930_v17 = vsel %vm642_vm0, %v1642_v16, 0.0 }
 0x2c6   :  { %v1644_v33 = vpop.f32.mrf.mxu1 }
 0x2c7   :  { %v1931_v22 = vsel %vm643_vm6, %v1644_v33, 0.0 }
 0x2c8   :  { %v1939_v45 = vadd.f32 %v1931_v22, %v1930_v17 }
 0x2f2   :  { %v1713_v35 = vpop.f32.mrf.mxu0 }
 0x2f3   :  { %v1932_v23 = vsel %vm4529_vm12, %v1713_v35, 0.0  ;;  %vm4533_vm12 = vcmp.eq.s32.totalorder %v3641_v32, 1 }
 0x2f4   :  { %v1715_v27 = vpop.f32.mrf.mxu0  ;;  %v1940_v28 = vadd.f32 %v1939_v45, %v1932_v23 }
 0x2f5   :  { %v1933_v3 = vsel %vm4530_vm13, %v1715_v27, 0.0  ;;  %vm4534_vm13 = vcmp.eq.s32.totalorder %v3653_v37, 1 }
 0x2f6   :  { %v1941_v40 = vadd.f32 %v1940_v28, %v1933_v3 }
 0x304   :  { %v1784_v29 = vpop.f32.mrf.mxu1 }
 0x305   :  { %v1934_v50 = vsel %vm4531_vm5, %v1784_v29, 0.0  ;;  %vm4536_vm5 = vcmp.eq.s32.totalorder %v3582_v1, 1 }
 0x306   :  { %v1786_v61 = vpop.f32.mrf.mxu1  ;;  %v1942_v34 = vadd.f32 %v1941_v40, %v1934_v50 }
 0x307   :  { %v1935_v36 = vsel %vm4532_vm7, %v1786_v61, 0.0  ;;  %vm4535_vm7 = vcmp.eq.s32.totalorder %v3577_v0, 1 }
 0x308   :  { %v1943_v21 = vadd.f32 %v1942_v34, %v1935_v36  ;;  %v1988_v34 = vld [vmem:[%s4517_s6] sm:$0xff] }
 0x32e   :  { %v1855_v54 = vpop.f32.mrf.mxu0 }
 0x32f   :  { %v1936_v30 = vsel %vm648_vm14, %v1855_v54, 0.0 }
 0x330   :  { %v1944_v26 = vadd.f32 %v1943_v21, %v1936_v30  ;;  %v1857_v7 = vpop.f32.mrf.mxu0 }
 0x331   :  { %v1937_v41 = vsel %vm4533_vm12, %v1857_v7, 0.0  ;;  %vm4537_vm12 = vcmp.eq.s32.totalorder %v3603_v13, 1 }
 0x332   :  { %v1945_v38 = vadd.f32 %v1944_v26, %v1937_v41 }
 0x333   :  { %v1926_v39 = vpop.f32.mrf.mxu1 }
 0x334   :  { %v1938_v18 = vsel %vm4534_vm13, %v1926_v39, 0.0  ;;  %vm4538_vm13 = vcmp.eq.s32.totalorder %v3609_v14, 1 }
 0x335   :  { %v1946_v42 = vadd.f32 %v1945_v38, %v1938_v18  ;;  %v3059_v43 = vpop.f32.mrf.mxu1 }
 0x337   :  { %1947 = vadd.xlane.f32.xlu0 %v1946_v42 }
 0x3c0   :  { %v1948_v44 = vpop.xlane.xlu0 %1947 }
 0x3c1   :  { %v1949_v46 = vmul.f32 0.001953125, %v1948_v44 }
 0x3c3   :  { %v1950_v47 = vsub.f32 %v1642_v16, %v1949_v46  ;;  %v1951_v15 = vsub.f32 %v1644_v33, %v1949_v46  ;;  %v1952_v48 = vsub.f32 %v1713_v35, %v1949_v46  ;;  %v1953_v55 = vsub.f32 %v1715_v27, %v1949_v46 }
 0x3c4   :  { %v1954_v24 = vsub.f32 %v1784_v29, %v1949_v46  ;;  %v1955_v53 = vsub.f32 %v1786_v61, %v1949_v46  ;;  %v1956_v60 = vsub.f32 %v1855_v54, %v1949_v46  ;;  %v1957_v8 = vsub.f32 %v1857_v7, %v1949_v46  ;;  %v2006_v29 = vld [vmem:[%s4516_s7] sm:$0xff] }
 0x3c5   :  { %v1959_v51 = vmul.f32 %v1950_v47, %v1950_v47  ;;  %v1960_v57 = vmul.f32 %v1951_v15, %v1951_v15  ;;  %v1961_v62 = vmul.f32 %v1952_v48, %v1952_v48  ;;  %v1962_v20 = vmul.f32 %v1953_v55, %v1953_v55 }
 0x3c6   :  { %v1963_v58 = vmul.f32 %v1954_v24, %v1954_v24  ;;  %v1964_v56 = vmul.f32 %v1955_v53, %v1955_v53  ;;  %v4056_v9 = vsub.f32 %v1926_v39, %v1949_v46  ;;  %v1965_v11 = vmul.f32 %v1956_v60, %v1956_v60 }
 0x3c7   :  { %v1968_v63 = vsel %vm642_vm0, %v1959_v51, 0.0  ;;  %v1969_v2 = vsel %vm643_vm6, %v1960_v57, 0.0  ;;  %v1970_v4 = vsel %vm4535_vm7, %v1961_v62, 0.0  ;;  %v1971_v59 = vsel %vm4536_vm5, %v1962_v20, 0.0 }
 0x3c8   :  { %v1977_v25 = vadd.f32 %v1969_v2, %v1968_v63  ;;  %v1972_v12 = vsel %vm4537_vm12, %v1963_v58, 0.0  ;;  %v1966_v16 = vmul.f32 %v1957_v8, %v1957_v8  ;;  %v1973_v33 = vsel %vm4538_vm13, %v1964_v56, 0.0 }
 0x3c9   :  { %v1967_v22 = vmul.f32 %v4056_v9, %v4056_v9  ;;  %v1974_v35 = vsel %vm648_vm14, %v1965_v11, 0.0  ;;  %vm4539_vm7 = vcmp.eq.s32.totalorder %v3641_v32, 1  ;;  %vm4540_vm5 = vcmp.eq.s32.totalorder %v3653_v37, 1 }
 0x3ca   :  { %v1978_v5 = vadd.f32 %v1977_v25, %v1970_v4  ;;  %v1975_v23 = vsel %vm4539_vm7, %v1966_v16, 0.0  ;;  %vm4541_vm12 = vcmp.eq.s32.totalorder %v3577_v0, 1  ;;  %vm4542_vm13 = vcmp.eq.s32.totalorder %v3582_v1, 1 }
 0x3cb   :  { %v1976_v28 = vsel %vm4540_vm5, %v1967_v22, 0.0  ;;  %vm4543_vm7 = vcmp.eq.s32.totalorder %v3609_v14, 1  ;;  %vm4544_vm5 = vcmp.eq.s32.totalorder %v3603_v13, 1 }
 0x3cc   :  { %v1979_v6 = vadd.f32 %v1978_v5, %v1971_v59 }
 0x3ce   :  { %v1980_v19 = vadd.f32 %v1979_v6, %v1972_v12 }
 0x3d0   :  { %v1981_v17 = vadd.f32 %v1980_v19, %v1973_v33 }
 0x3d2   :  { %v1982_v45 = vadd.f32 %v1981_v17, %v1974_v35 }
 0x3d4   :  { %v1983_v27 = vadd.f32 %v1982_v45, %v1975_v23 }
 0x3d6   :  { %v1984_v3 = vadd.f32 %v1983_v27, %v1976_v28 }
 0x3d8   :  { %1985 = vadd.xlane.f32.xlu1 %v1984_v3 }
 0x3e9   :  { %2009 = vperm.xlu1 %3092, %v2006_v29  }
 0x461   :  { %v1986_v40 = vpop.xlane.xlu1 %1985 }
 0x462   :  { %v1987_v50 = vmul.f32 0.001953125, %v1986_v40 }
 0x464   :  { %v1989_v61 = vadd.f32 1e-05, %v1987_v50 }
 0x465   :  { %v2010_v38 = vpop.permute.xlu1 %2009 }
 0x466   :  { %3107 = vrsqrt.f32 %v1989_v61 }
 0x473   :  { %v3108_v36 = vpop.eup %3107 }
 0x474   :  { %v1991_v21 = vmul.f32 %v3108_v36, %v1988_v34 }
 0x476   :  { %1994 = vperm.xlu0 %3093, %v1991_v21  }
 0x4f1   :  { %v1995_v54 = vpop.permute.xlu0 %1994 }
 0x4f2   :  { %v1998_v30 = vmul.f32 %v1995_v54, %v1951_v15  ;;  %v1999_v26 = vmul.f32 %v1995_v54, %v1952_v48  ;;  %v1997_v7 = vmul.f32 %v1995_v54, %v1950_v47  ;;  %v2000_v41 = vmul.f32 %v1995_v54, %v1953_v55 }
 0x4f3   :  { %v2002_v39 = vmul.f32 %v1995_v54, %v1955_v53  ;;  %v2001_v18 = vmul.f32 %v1995_v54, %v1954_v24  ;;  %v2003_v42 = vmul.f32 %v1995_v54, %v1956_v60  ;;  %v2004_v43 = vmul.f32 %v1995_v54, %v1957_v8 }
 0x4f4   :  { %v4076_v44 = vadd.f32 %v2010_v38, %v1998_v30  ;;  %v4078_v46 = vadd.f32 %v2010_v38, %v1999_v26  ;;  %v4080_v51 = vadd.f32 %v2010_v38, %v1997_v7  ;;  %v4082_v57 = vadd.f32 %v2010_v38, %v2000_v41 }
 0x4f5   :  { %v4084_v62 = vadd.f32 %v2010_v38, %v2002_v39  ;;  %v4086_v63 = vadd.f32 %v2010_v38, %v2001_v18  ;;  %v4088_v15 = vadd.f32 %v2010_v38, %v2003_v42  ;;  %v4090_v47 = vadd.f32 %v2010_v38, %v2004_v43 }
 0x4f6   :  { %v2022_v48 = vmax.f32 %v4076_v44, 0.0  ;;  %v2023_v55 = vmax.f32 %v4078_v46, 0.0  ;;  %v2021_v24 = vmax.f32 %v4080_v51, 0.0  ;;  %v2024_v2 = vmax.f32 %v4082_v57, 0.0 }
 0x4f7   :  { %v2026_v53 = vmax.f32 %v4084_v62, 0.0  ;;  %v2025_v20 = vmax.f32 %v4086_v63, 0.0  ;;  %v2027_v25 = vmax.f32 %v4088_v15, 0.0  ;;  %v2028_v60 = vmax.f32 %v4090_v47, 0.0 }
 0x4f8   :  { %v2031_v58 = vsel %vm643_vm6, %v2022_v48, 0.0  ;;  %v2032_v4 = vsel %vm4541_vm12, %v2023_v55, 0.0  ;;  %v2030_v5 = vsel %vm642_vm0, %v2021_v24, 0.0  ;;  %v4116_v8 = vsel %vm4542_vm13, %v2024_v2, 0.0 }
 0x4f9   :  { %2294 = vrot.lane.b32.xlu0 %v2031_v58, %s3127_s21  ;;  %2237 = vst [vmem:[#allocation2 + $0x170] sm:$0xff] %v2031_v58  ;;  %2388 = vrot.lane.b32.xlu1 %v2031_v58, %s3125_s4  ;;  %2238 = vst [vmem:[#allocation2 + $0x178] sm:$0xff] %v2032_v4  ;;  %v4125_v56 = vsel %vm4543_vm7, %v2026_v53, 0.0  ;;  %v2034_v59 = vsel %vm4544_vm5, %v2025_v20, 0.0  ;;  %v4135_v6 = vsel %vm648_vm14, %v2027_v25, 0.0  ;;  %vm4545_vm12 = vcmp.eq.s32.totalorder %v3641_v32, 1 }
 0x4fa   :  { %2236 = vst [vmem:[#allocation2 + $0x168] sm:$0xff] %v2030_v5  ;;  %2239 = vst [vmem:[#allocation2 + $0x180] sm:$0xff] %v4116_v8  ;;  %v4141_v11 = vsel %vm4545_vm12, %v2028_v60, 0.0  ;;  %v2005_v12 = vmul.f32 %v1995_v54, %v4056_v9  ;;  %vm4546_vm13 = vcmp.eq.s32.totalorder %v3653_v37, 1  ;;  %vm2225_vm7 = vcmask 1047560  }
 0x4fb   :  { %2241 = vst [vmem:[#allocation2 + $0x190] sm:$0xff] %v4125_v56  ;;  %2240 = vst [vmem:[#allocation2 + $0x188] sm:$0xff] %v2034_v59  ;;  %vm2178_vm5 = vcmask 1047800   ;;  %vm2131_vm12 = vcmask 1047808  }
 0x4fc   :  { %2242 = vst [vmem:[#allocation2 + $0x198] sm:$0xff] %v4135_v6  ;;  %2243 = vst [vmem:[#allocation2 + $0x1a0] sm:$0xff] %v4141_v11  ;;  %v4147_v19 = vadd.f32 %v2010_v38, %v2005_v12 }
 0x4fd   :  { %2390 = vrot.lane.b32.xlu1 %v2032_v4, %s3125_s4  ;;  %2292 = vrot.lane.b32.xlu0 %v2030_v5, %s3127_s21 }
 0x4fe   :  { %v2029_v16 = vmax.f32 %v4147_v19, 0.0 }
 0x500   :  { %v4156_v33 = vsel %vm4546_vm13, %v2029_v16, 0.0  ;;  %vm2084_vm13 = vcmask 1047816  }
 0x501   :  { %2249 = vrot.lane.b32.xlu0 %v2032_v4, %s3128_s22  ;;  %2386 = vrot.lane.b32.xlu1 %v2030_v5, %s3125_s4  ;;  %2244 = vst [vmem:[#allocation2 + $0x1a8] sm:$0xff] %v4156_v33 }
 0x505   :  { %2189 = vrot.lane.b32.xlu0 %v2030_v5, %s3123_s29  ;;  %2341 = vrot.lane.b32.xlu1 %v2031_v58, %s3126_s20 }
 0x509   :  { %2142 = vrot.lane.b32.xlu0 %v2030_v5, %s3129_s25  ;;  %2343 = vrot.lane.b32.xlu1 %v2032_v4, %s3126_s20 }
 0x50d   :  { %2095 = vrot.lane.b32.xlu0 %v2030_v5, %s3121_s24  ;;  %2339 = vrot.lane.b32.xlu1 %v2030_v5, %s3126_s20 }
 0x511   :  { %2392 = vrot.lane.b32.xlu0 %v4116_v8, %s3125_s4  ;;  %2296 = vrot.lane.b32.xlu1 %v2032_v4, %s3127_s21 }
 0x515   :  { %2048 = vrot.lane.b32.xlu0 %v2030_v5, %s3120_s23  ;;  %2247 = vrot.lane.b32.xlu1 %v2031_v58, %s3128_s22 }
 0x519   :  { %2345 = vrot.lane.b32.xlu0 %v4116_v8, %s3126_s20  ;;  %2245 = vrot.lane.b32.xlu1 %v2030_v5, %s3128_s22 }
 0x51d   :  { %2298 = vrot.lane.b32.xlu0 %v4116_v8, %s3127_s21  ;;  %2191 = vrot.lane.b32.xlu1 %v2031_v58, %s3123_s29 }
 0x521   :  { %2396 = vrot.lane.b32.xlu0 %v4125_v56, %s3125_s4  ;;  %2144 = vrot.lane.b32.xlu1 %v2031_v58, %s3129_s25 }
 0x525   :  { %2251 = vrot.lane.b32.xlu0 %v4116_v8, %s3128_s22  ;;  %2097 = vrot.lane.b32.xlu1 %v2031_v58, %s3121_s24 }
 0x529   :  { %2349 = vrot.lane.b32.xlu0 %v4125_v56, %s3126_s20  ;;  %2394 = vrot.lane.b32.xlu1 %v2034_v59, %s3125_s4 }
 0x52d   :  { %2302 = vrot.lane.b32.xlu0 %v4125_v56, %s3127_s21  ;;  %2050 = vrot.lane.b32.xlu1 %v2031_v58, %s3120_s23 }
 0x531   :  { %2193 = vrot.lane.b32.xlu0 %v2032_v4, %s3123_s29  ;;  %2347 = vrot.lane.b32.xlu1 %v2034_v59, %s3126_s20 }
 0x535   :  { %2255 = vrot.lane.b32.xlu0 %v4125_v56, %s3128_s22  ;;  %2300 = vrot.lane.b32.xlu1 %v2034_v59, %s3127_s21 }
 0x539   :  { %2146 = vrot.lane.b32.xlu0 %v2032_v4, %s3129_s25  ;;  %2398 = vrot.lane.b32.xlu1 %v4135_v6, %s3125_s4 }
 0x53d   :  { %2099 = vrot.lane.b32.xlu0 %v2032_v4, %s3121_s24  ;;  %2253 = vrot.lane.b32.xlu1 %v2034_v59, %s3128_s22 }
 0x541   :  { %2197 = vrot.lane.b32.xlu0 %v2034_v59, %s3123_s29  ;;  %2351 = vrot.lane.b32.xlu1 %v4135_v6, %s3126_s20 }
 0x545   :  { %2052 = vrot.lane.b32.xlu0 %v2032_v4, %s3120_s23  ;;  %2304 = vrot.lane.b32.xlu1 %v4135_v6, %s3127_s21 }
 0x549   :  { %2150 = vrot.lane.b32.xlu0 %v2034_v59, %s3129_s25  ;;  %2195 = vrot.lane.b32.xlu1 %v4116_v8, %s3123_s29 }
 0x54d   :  { %2103 = vrot.lane.b32.xlu0 %v2034_v59, %s3121_s24  ;;  %2257 = vrot.lane.b32.xlu1 %v4135_v6, %s3128_s22 }
 0x551   :  { %2400 = vrot.lane.b32.xlu0 %v4141_v11, %s3125_s4  ;;  %2148 = vrot.lane.b32.xlu1 %v4116_v8, %s3129_s25 }
 0x555   :  { %2056 = vrot.lane.b32.xlu0 %v2034_v59, %s3120_s23  ;;  %2101 = vrot.lane.b32.xlu1 %v4116_v8, %s3121_s24 }
 0x559   :  { %2353 = vrot.lane.b32.xlu0 %v4141_v11, %s3126_s20  ;;  %2199 = vrot.lane.b32.xlu1 %v4125_v56, %s3123_s29 }
 0x55d   :  { %2306 = vrot.lane.b32.xlu0 %v4141_v11, %s3127_s21  ;;  %2054 = vrot.lane.b32.xlu1 %v4116_v8, %s3120_s23 }
 0x561   :  { %2259 = vrot.lane.b32.xlu0 %v4141_v11, %s3128_s22  ;;  %2152 = vrot.lane.b32.xlu1 %v4125_v56, %s3129_s25 }
 0x565   :  { %2201 = vrot.lane.b32.xlu0 %v4135_v6, %s3123_s29  ;;  %2105 = vrot.lane.b32.xlu1 %v4125_v56, %s3121_s24 }
 0x569   :  { %2154 = vrot.lane.b32.xlu0 %v4135_v6, %s3129_s25  ;;  %2402 = vrot.lane.b32.xlu1 %v4156_v33, %s3125_s4 }
 0x56b   :  { %v2295_v9 = vpop.permute.xlu0 %2294  ;;  %v2389_v17 = vpop.permute.xlu1 %2388 }
 0x56d   :  { %2107 = vrot.lane.b32.xlu0 %v4135_v6, %s3121_s24  ;;  %2058 = vrot.lane.b32.xlu1 %v4125_v56, %s3120_s23 }
 0x56f   :  { %v2391_v22 = vpop.permute.xlu1 %2390  ;;  %v2293_v35 = vpop.permute.xlu0 %2292 }
 0x570   :  { %v2405_v45 = vsel %vm1411_vm8, %v2389_v17, %v2391_v22  ;;  %v2310_v23 = vsel %vm1217_vm10, %v2293_v35, %v2295_v9 }
 0x571   :  { %2425 = vst [vmem:[#allocation2 + $0x2d0] sm:$0xff] %v2405_v45  ;;  %2330 = vst [vmem:[#allocation2 + $0x218] sm:$0xff] %v2310_v23  ;;  %2205 = vrot.lane.b32.xlu0 %v4156_v33, %s3123_s29  ;;  %2355 = vrot.lane.b32.xlu1 %v4156_v33, %s3126_s20 }
 0x572   :  { %2532 = vmatprep.subr.mxu0 %v2405_v45 }
 0x573   :  { %v4249_v27 = vpop.permute.xlu0 %2249  ;;  %v2387_v28 = vpop.permute.xlu1 %2386 }
 0x574   :  { %v2404_v3 = vsel %vm1411_vm8, %v2387_v28, %v2389_v17 }
 0x575   :  { %2424 = vst [vmem:[#allocation2 + $0x2c8] sm:$0xff] %v2404_v3  ;;  %2062 = vrot.lane.b32.xlu0 %v4141_v11, %s3120_s23  ;;  %2308 = vrot.lane.b32.xlu1 %v4156_v33, %s3127_s21 }
 0x576   :  { %2533 = vmatpush1.msra.mxu0 %v2404_v3 }
 0x577   :  { %v2190_v29 = vpop.permute.xlu0 %2189  ;;  %v2342_v40 = vpop.permute.xlu1 %2341 }
 0x578   :  { %2226 = vst.msk [vmem:[#allocation2 + $0x110] sm:$0xff] %vm2225_vm7, %v2190_v29  ;;  %vm4547_vm7 = vcmp.eq.s32.totalorder %v3582_v1, 1 }
 0x579   :  { %2111 = vrot.lane.b32.xlu0 %v4156_v33, %s3121_s24  ;;  %2261 = vrot.lane.b32.xlu1 %v4156_v33, %s3128_s22 }
 0x57b   :  { %v2143_v50 = vpop.permute.xlu0 %2142  ;;  %v2344_v61 = vpop.permute.xlu1 %2343 }
 0x57c   :  { %2179 = vst.msk [vmem:[#allocation2 + $0xb8] sm:$0xff] %vm2178_vm5, %v2143_v50  ;;  %v2358_v34 = vsel %vm1314_vm9, %v2342_v40, %v2344_v61  ;;  %vm4548_vm5 = vcmp.eq.s32.totalorder %v3577_v0, 1 }
 0x57d   :  { %2378 = vst [vmem:[#allocation2 + $0x278] sm:$0xff] %v2358_v34  ;;  %2203 = vrot.lane.b32.xlu1 %v4141_v11, %s3123_s29  ;;  %2534 = vmatprep.subr.mxu0 %v2358_v34 }
 0x57f   :  { %v2096_v36 = vpop.permute.xlu0 %2095  ;;  %v2340_v21 = vpop.permute.xlu1 %2339  ;;  %v2461_v44 = vld [vmem:[#allocation2 + $0x110] sm:$0xff] }
 0x580   :  { %2132 = vst.msk [vmem:[#allocation2 + $0x60] sm:$0xff] %vm2131_vm12, %v2096_v36  ;;  %v2357_v54 = vsel %vm1314_vm9, %v2340_v21, %v2342_v40  ;;  %vm4549_vm12 = vcmp.eq.s32.totalorder %v3609_v14, 1 }
 0x581   :  { %2377 = vst [vmem:[#allocation2 + $0x270] sm:$0xff] %v2357_v54  ;;  %2156 = vrot.lane.b32.xlu1 %v4141_v11, %s3129_s25  ;;  %2535 = vmatpush1.msra.mxu0 %v2357_v54 }
 0x583   :  { %v2393_v30 = vpop.permute.xlu0 %2392  ;;  %v2297_v26 = vpop.permute.xlu1 %2296  ;;  %v2452_v51 = vld [vmem:[#allocation2 + $0xb8] sm:$0xff] }
 0x584   :  { %v2406_v7 = vsel %vm1411_vm8, %v2391_v22, %v2393_v30  ;;  %v2311_v41 = vsel %vm1217_vm10, %v2295_v9, %v2297_v26 }
 0x585   :  { %2426 = vst [vmem:[#allocation2 + $0x2d8] sm:$0xff] %v2406_v7  ;;  %2331 = vst [vmem:[#allocation2 + $0x220] sm:$0xff] %v2311_v41  ;;  %2109 = vrot.lane.b32.xlu1 %v4141_v11, %s3121_s24  ;;  %2536 = vmatprep.subr.mxu0 %v2311_v41 }
 0x586   :  { %2537 = vmatpush1.msra.mxu0 %v2310_v23 }
 0x587   :  { %v2049_v38 = vpop.permute.xlu0 %2048  ;;  %v2248_v39 = vpop.permute.xlu1 %2247 }
 0x588   :  { %2085 = vst.msk [vmem:[#allocation2 + $0x8] sm:$0xff] %vm2084_vm13, %v2049_v38  ;;  %v2264_v18 = vsel %vm1120_vm11, %v2248_v39, %v4249_v27  ;;  %vm4550_vm13 = vcmp.eq.s32.totalorder %v3603_v13, 1 }
 0x589   :  { %2284 = vst [vmem:[#allocation2 + $0x1c8] sm:$0xff] %v2264_v18  ;;  %2060 = vrot.lane.b32.xlu1 %v4135_v6, %s3120_s23  ;;  %2538 = vmatprep.subr.mxu0 %v2264_v18 }
 0x58b   :  { %v2346_v42 = vpop.permute.xlu0 %2345  ;;  %v2246_v43 = vpop.permute.xlu1 %2245 }
 0x58c   :  { %v2359_v58 = vsel %vm1314_vm9, %v2344_v61, %v2346_v42  ;;  %v2263_v4 = vsel %vm1120_vm11, %v2246_v43, %v2248_v39 }
 0x58d   :  { %2379 = vst [vmem:[#allocation2 + $0x280] sm:$0xff] %v2359_v58  ;;  %2283 = vst [vmem:[#allocation2 + $0x1c0] sm:$0xff] %v2263_v4  ;;  %2158 = vrot.lane.b32.xlu1 %v4156_v33, %s3129_s25  ;;  %2539 = vmatpush1.msra.mxu0 %v2263_v4 }
 0x58e   :  { %3111 = vmatprep.subr.msk.mxu0 %vm643_vm6, %v2022_v48 }
 0x58f   :  { %v2299_v5 = vpop.permute.xlu0 %2298  ;;  %v2192_v8 = vpop.permute.xlu1 %2191  ;;  %3112 = vmatpush1.msk.msra.mxu0 %vm642_vm0, %v2021_v24  ;;  %v2434_v40 = vld [vmem:[#allocation2 + $0x8] sm:$0xff] }
 0x590   :  { %v2312_v56 = vsel %vm1217_vm10, %v2297_v26, %v2299_v5  ;;  %v2207_v59 = vsel %vm92_vm4, %v2190_v29, %v2192_v8  ;;  %v4300_v29 = vld [vmem:[%s4518_s8] sm:$0xff] }
 0x591   :  { %2332 = vst [vmem:[#allocation2 + $0x228] sm:$0xff] %v2312_v56  ;;  %2227 = vst [vmem:[#allocation2 + $0x118] sm:$0xff] %v2207_v59  ;;  %2064 = vrot.lane.b32.xlu1 %v4156_v33, %s3120_s23  ;;  %2542 = vmatprep.subr.mxu0 %v2207_v59  ;;  %v2443_v33 = vld [vmem:[#allocation2 + $0x60] sm:$0xff] }
 0x592   :  { %2543 = vmatpush1.msra.mxu0 %v2461_v44 }
 0x593   :  { %v2397_v48 = vpop.permute.xlu0 %2396  ;;  %v2145_v6 = vpop.permute.xlu1 %2144 }
 0x594   :  { %v2160_v11 = vsel %vm898_vm15, %v2143_v50, %v2145_v6 }
 0x595   :  { %2180 = vst [vmem:[#allocation2 + $0xc0] sm:$0xff] %v2160_v11  ;;  %2544 = vmatprep.subr.mxu0 %v2160_v11 }
 0x596   :  { %2545 = vmatpush1.msra.mxu0 %v2452_v51 }
 0x597   :  { %v2252_v24 = vpop.permute.xlu0 %2251  ;;  %v2098_v12 = vpop.permute.xlu1 %2097 }
 0x598   :  { %v2265_v9 = vsel %vm1120_vm11, %v4249_v27, %v2252_v24  ;;  %v2113_v17 = vsel %vm141_vm3, %v2096_v36, %v2098_v12 }
 0x599   :  { %2285 = vst [vmem:[#allocation2 + $0x1d0] sm:$0xff] %v2265_v9  ;;  %2133 = vst [vmem:[#allocation2 + $0x68] sm:$0xff] %v2113_v17  ;;  %2546 = vmatprep.subr.mxu0 %v2113_v17 }
 0x59a   :  { %2547 = vmatpush1.msra.mxu0 %v2443_v33 }
 0x59b   :  { %v2350_v22 = vpop.permute.xlu0 %2349  ;;  %v2395_v35 = vpop.permute.xlu1 %2394 }
 0x59c   :  { %v2407_v45 = vsel %vm1411_vm8, %v2393_v30, %v2395_v35  ;;  %v2408_v23 = vsel %vm1411_vm8, %v2395_v35, %v2397_v48 }
 0x59d   :  { %2427 = vst [vmem:[#allocation2 + $0x2e0] sm:$0xff] %v2407_v45  ;;  %2428 = vst [vmem:[#allocation2 + $0x2e8] sm:$0xff] %v2408_v23  ;;  %2603 = vmatprep.subr.mxu1 %v2407_v45 }
 0x59e   :  { %2604 = vmatpush1.msra.mxu1 %v2406_v7 }
 0x59f   :  { %v2303_v28 = vpop.permute.xlu0 %2302  ;;  %v2051_v3 = vpop.permute.xlu1 %2050 }
 0x5a0   :  { %v2066_v27 = vsel %vm190_vm1, %v2049_v38, %v2051_v3 }
 0x5a1   :  { %2086 = vst [vmem:[#allocation2 + $0x10] sm:$0xff] %v2066_v27  ;;  %2548 = vmatprep.subr.mxu0 %v2066_v27 }
 0x5a2   :  { %2549 = vmatpush1.msra.mxu0 %v2434_v40 }
 0x5a3   :  { %v2194_v50 = vpop.permute.xlu0 %2193  ;;  %v2348_v61 = vpop.permute.xlu1 %2347  ;;  %3004 = vmatmul.mubr.msk.f32.vlgmr.msra.gmra.mxu0 %vm1572_vm2, %v4300_v29 }
 0x5a4   :  { %v2208_v34 = vsel %vm92_vm4, %v2192_v8, %v2194_v50  ;;  %v2360_v36 = vsel %vm1314_vm9, %v2346_v42, %v2348_v61  ;;  %v2361_v21 = vsel %vm1314_vm9, %v2348_v61, %v2350_v22  ;;  %2724 = vmatprep.mubr.f32.mxu0 %v3122_v10 }
 0x5a5   :  { %2228 = vst [vmem:[#allocation2 + $0x120] sm:$0xff] %v2208_v34  ;;  %2380 = vst [vmem:[#allocation2 + $0x288] sm:$0xff] %v2360_v36  ;;  %2605 = vmatprep.subr.mxu1 %v2360_v36 }
 0x5a6   :  { %2381 = vst [vmem:[#allocation2 + $0x290] sm:$0xff] %v2361_v21  ;;  %2606 = vmatpush1.msra.mxu1 %v2359_v58 }
 0x5a7   :  { %v2256_v54 = vpop.permute.xlu0 %2255  ;;  %v2301_v30 = vpop.permute.xlu1 %2300 }
 0x5a8   :  { %v2313_v26 = vsel %vm1217_vm10, %v2299_v5, %v2301_v30  ;;  %v2314_v7 = vsel %vm1217_vm10, %v2301_v30, %v2303_v28 }
 0x5a9   :  { %2333 = vst [vmem:[#allocation2 + $0x230] sm:$0xff] %v2313_v26  ;;  %2334 = vst [vmem:[#allocation2 + $0x238] sm:$0xff] %v2314_v7  ;;  %2607 = vmatprep.subr.mxu1 %v2313_v26 }
 0x5aa   :  { %2608 = vmatpush1.msra.mxu1 %v2312_v56 }
 0x5ab   :  { %v2147_v41 = vpop.permute.xlu0 %2146  ;;  %v2399_v38 = vpop.permute.xlu1 %2398 }
 0x5ac   :  { %v2161_v39 = vsel %vm898_vm15, %v2145_v6, %v2147_v41  ;;  %v2409_v18 = vsel %vm1411_vm8, %v2397_v48, %v2399_v38 }
 0x5ad   :  { %2181 = vst [vmem:[#allocation2 + $0xc8] sm:$0xff] %v2161_v39  ;;  %2429 = vst [vmem:[#allocation2 + $0x2f0] sm:$0xff] %v2409_v18  ;;  %2674 = vmatprep.subr.mxu0 %v2409_v18 }
 0x5ae   :  { %2675 = vmatpush1.msra.mxu0 %v2408_v23 }
 0x5af   :  { %v2100_v42 = vpop.permute.xlu0 %2099  ;;  %v2254_v43 = vpop.permute.xlu1 %2253 }
 0x5b0   :  { %v2114_v58 = vsel %vm141_vm3, %v2098_v12, %v2100_v42  ;;  %v2266_v4 = vsel %vm1120_vm11, %v2252_v24, %v2254_v43  ;;  %v2267_v5 = vsel %vm1120_vm11, %v2254_v43, %v2256_v54 }
 0x5b1   :  { %2134 = vst [vmem:[#allocation2 + $0x70] sm:$0xff] %v2114_v58  ;;  %2286 = vst [vmem:[#allocation2 + $0x1d8] sm:$0xff] %v2266_v4  ;;  %2609 = vmatprep.subr.mxu1 %v2266_v4 }
 0x5b2   :  { %2287 = vst [vmem:[#allocation2 + $0x1e0] sm:$0xff] %v2267_v5  ;;  %2610 = vmatpush1.msra.mxu1 %v2265_v9 }
 0x5b3   :  { %v2198_v8 = vpop.permute.xlu0 %2197  ;;  %v2352_v56 = vpop.permute.xlu1 %2351  ;;  %3113 = vmatprep.subr.msk.mxu1 %vm4547_vm7, %v2024_v2 }
 0x5b4   :  { %v2362_v59 = vsel %vm1314_vm9, %v2350_v22, %v2352_v56  ;;  %3114 = vmatpush1.msk.msra.mxu1 %vm4548_vm5, %v2023_v55 }
 0x5b5   :  { %2382 = vst [vmem:[#allocation2 + $0x298] sm:$0xff] %v2362_v59  ;;  %2676 = vmatprep.subr.mxu0 %v2362_v59 }
 0x5b6   :  { %2677 = vmatpush1.msra.mxu0 %v2361_v21 }
 0x5b7   :  { %v2053_v44 = vpop.permute.xlu0 %2052  ;;  %v2305_v48 = vpop.permute.xlu1 %2304 }
 0x5b8   :  { %v2067_v6 = vsel %vm190_vm1, %v2051_v3, %v2053_v44  ;;  %v2315_v11 = vsel %vm1217_vm10, %v2303_v28, %v2305_v48 }
 0x5b9   :  { %2087 = vst [vmem:[#allocation2 + $0x18] sm:$0xff] %v2067_v6  ;;  %2335 = vst [vmem:[#allocation2 + $0x240] sm:$0xff] %v2315_v11  ;;  %2678 = vmatprep.subr.mxu0 %v2315_v11 }
 0x5ba   :  { %2679 = vmatpush1.msra.mxu0 %v2314_v7 }
 0x5bb   :  { %v2151_v57 = vpop.permute.xlu0 %2150  ;;  %v2196_v2 = vpop.permute.xlu1 %2195 }
 0x5bc   :  { %v2209_v46 = vsel %vm92_vm4, %v2194_v50, %v2196_v2  ;;  %v2210_v51 = vsel %vm92_vm4, %v2196_v2, %v2198_v8 }
 0x5bd   :  { %2229 = vst [vmem:[#allocation2 + $0x128] sm:$0xff] %v2209_v46  ;;  %2230 = vst [vmem:[#allocation2 + $0x130] sm:$0xff] %v2210_v51  ;;  %2613 = vmatprep.subr.mxu1 %v2209_v46 }
 0x5be   :  { %2614 = vmatpush1.msra.mxu1 %v2208_v34 }
 0x5bf   :  { %v2104_v55 = vpop.permute.xlu0 %2103  ;;  %v2258_v24 = vpop.permute.xlu1 %2257 }
 0x5c0   :  { %v2268_v12 = vsel %vm1120_vm11, %v2256_v54, %v2258_v24 }
 0x5c1   :  { %2288 = vst [vmem:[#allocation2 + $0x1e8] sm:$0xff] %v2268_v12  ;;  %2680 = vmatprep.subr.mxu0 %v2268_v12 }
 0x5c2   :  { %2681 = vmatpush1.msra.mxu0 %v2267_v5 }
 0x5c3   :  { %v2401_v9 = vpop.permute.xlu0 %2400  ;;  %v2149_v17 = vpop.permute.xlu1 %2148  ;;  %3115 = vmatprep.subr.msk.mxu0 %vm4549_vm12, %v2026_v53 }
 0x5c4   :  { %v2410_v33 = vsel %vm1411_vm8, %v2399_v38, %v2401_v9  ;;  %v2162_v22 = vsel %vm898_vm15, %v2147_v41, %v2149_v17  ;;  %v2163_v35 = vsel %vm898_vm15, %v2149_v17, %v2151_v57  ;;  %3116 = vmatpush1.msk.msra.mxu0 %vm4550_vm13, %v2025_v20 }
 0x5c5   :  { %2430 = vst [vmem:[#allocation2 + $0x2f8] sm:$0xff] %v2410_v33  ;;  %2182 = vst [vmem:[#allocation2 + $0xd0] sm:$0xff] %v2162_v22  ;;  %2615 = vmatprep.subr.mxu1 %v2162_v22 }
 0x5c6   :  { %2183 = vst [vmem:[#allocation2 + $0xd8] sm:$0xff] %v2163_v35  ;;  %2616 = vmatpush1.msra.mxu1 %v2161_v39 }
 0x5c7   :  { %v2057_v62 = vpop.permute.xlu0 %2056  ;;  %v2102_v45 = vpop.permute.xlu1 %2101 }
 0x5c8   :  { %v2115_v53 = vsel %vm141_vm3, %v2100_v42, %v2102_v45  ;;  %v2116_v23 = vsel %vm141_vm3, %v2102_v45, %v2104_v55 }
 0x5c9   :  { %2135 = vst [vmem:[#allocation2 + $0x78] sm:$0xff] %v2115_v53  ;;  %2136 = vst [vmem:[#allocation2 + $0x80] sm:$0xff] %v2116_v23  ;;  %2617 = vmatprep.subr.mxu1 %v2115_v53 }
 0x5ca   :  { %2618 = vmatpush1.msra.mxu1 %v2114_v58 }
 0x5cb   :  { %v2354_v28 = vpop.permute.xlu0 %2353  ;;  %v2200_v63 = vpop.permute.xlu1 %2199 }
 0x5cc   :  { %v2363_v3 = vsel %vm1314_vm9, %v2352_v56, %v2354_v28  ;;  %v2211_v20 = vsel %vm92_vm4, %v2198_v8, %v2200_v63 }
 0x5cd   :  { %2383 = vst [vmem:[#allocation2 + $0x2a0] sm:$0xff] %v2363_v3  ;;  %2231 = vst [vmem:[#allocation2 + $0x138] sm:$0xff] %v2211_v20  ;;  %2684 = vmatprep.subr.mxu0 %v2211_v20 }
 0x5ce   :  { %2685 = vmatpush1.msra.mxu0 %v2210_v51 }
 0x5cf   :  { %v2307_v27 = vpop.permute.xlu0 %2306  ;;  %v2055_v40 = vpop.permute.xlu1 %2054 }
 0x5d0   :  { %v2316_v50 = vsel %vm1217_vm10, %v2305_v48, %v2307_v27  ;;  %v2068_v61 = vsel %vm190_vm1, %v2053_v44, %v2055_v40  ;;  %v2069_v34 = vsel %vm190_vm1, %v2055_v40, %v2057_v62 }
 0x5d1   :  { %2336 = vst [vmem:[#allocation2 + $0x248] sm:$0xff] %v2316_v50  ;;  %2088 = vst [vmem:[#allocation2 + $0x20] sm:$0xff] %v2068_v61  ;;  %2619 = vmatprep.subr.mxu1 %v2068_v61 }
 0x5d2   :  { %2089 = vst [vmem:[#allocation2 + $0x28] sm:$0xff] %v2069_v34  ;;  %2620 = vmatpush1.msra.mxu1 %v2067_v6 }
 0x5d3   :  { %v2260_v36 = vpop.permute.xlu0 %2259  ;;  %v2153_v21 = vpop.permute.xlu1 %2152  ;;  %3005 = vmatmul.mubr.msk.f32.vlgmr.msra.gmra.mxu1 %vm1572_vm2, %v4300_v29 }
 0x5d4   :  { %v2269_v54 = vsel %vm1120_vm11, %v2258_v24, %v2260_v36  ;;  %v2164_v30 = vsel %vm898_vm15, %v2151_v57, %v2153_v21  ;;  %2795 = vmatprep.mubr.f32.mxu1 %v3122_v10 }
 0x5d5   :  { %2289 = vst [vmem:[#allocation2 + $0x1f0] sm:$0xff] %v2269_v54  ;;  %2184 = vst [vmem:[#allocation2 + $0xe0] sm:$0xff] %v2164_v30  ;;  %2686 = vmatprep.subr.mxu0 %v2164_v30 }
 0x5d6   :  { %2687 = vmatpush1.msra.mxu0 %v2163_v35 }
 0x5d7   :  { %v2202_v26 = vpop.permute.xlu0 %2201  ;;  %v2106_v7 = vpop.permute.xlu1 %2105 }
 0x5d8   :  { %v4353_v41 = vsel %vm92_vm4, %v2200_v63, %v2202_v26  ;;  %v2117_v38 = vsel %vm141_vm3, %v2104_v55, %v2106_v7 }
 0x5d9   :  { %2232 = vst [vmem:[#allocation2 + $0x140] sm:$0xff] %v4353_v41  ;;  %2137 = vst [vmem:[#allocation2 + $0x88] sm:$0xff] %v2117_v38  ;;  %2688 = vmatprep.subr.mxu0 %v2117_v38 }
 0x5da   :  { %2689 = vmatpush1.msra.mxu0 %v2116_v23 }
 0x5db   :  { %v2155_v39 = vpop.permute.xlu0 %2154  ;;  %v2403_v18 = vpop.permute.xlu1 %2402 }
 0x5dc   :  { %v4358_v42 = vsel %vm898_vm15, %v2153_v21, %v2155_v39  ;;  %v2411_v43 = vsel %vm1411_vm8, %v2401_v9, %v2403_v18  ;;  %2432 = vst.msk [vmem:[#allocation2 + $0x308] sm:$0xff] %vm1411_vm8, %v2403_v18  ;;  %vm4551_vm8 = vmmov 0  }
 0x5dd   :  { %2185 = vst [vmem:[#allocation2 + $0xe8] sm:$0xff] %v4358_v42  ;;  %2431 = vst [vmem:[#allocation2 + $0x300] sm:$0xff] %v2411_v43  ;;  %2745 = vmatprep.subr.mxu1 %v2411_v43 }
 0x5de   :  { %2746 = vmatpush1.msra.mxu1 %v2410_v33 }
 0x5df   :  { %v2108_v58 = vpop.permute.xlu0 %2107  ;;  %v4363_v4 = vpop.permute.xlu1 %2058 }
 0x5e0   :  { %v4366_v5 = vsel %vm141_vm3, %v2106_v7, %v2108_v58  ;;  %v2070_v8 = vsel %vm190_vm1, %v2057_v62, %v4363_v4 }
 0x5e1   :  { %2138 = vst [vmem:[#allocation2 + $0x90] sm:$0xff] %v4366_v5  ;;  %2090 = vst [vmem:[#allocation2 + $0x30] sm:$0xff] %v2070_v8  ;;  %2690 = vmatprep.subr.mxu0 %v2070_v8 }
 0x5e2   :  { %2691 = vmatpush1.msra.mxu0 %v2069_v34 }
 0x5e3   :  { %v2206_v56 = vpop.permute.xlu0 %2205  ;;  %v2356_v59 = vpop.permute.xlu1 %2355  ;;  %3060 = vmatprep.subr.mxu0 %v3122_v10  ;;  %3006 = vmatmul.mubr.msk.f32.vlgmr.msra.gmra.mxu0 %vm1572_vm2, %v4300_v29  ;;  %v2514_v44 = vld [vmem:[#allocation2 + $0x308] sm:$0xff] }
 0x5e4   :  { %v2364_v48 = vsel %vm1314_vm9, %v2354_v28, %v2356_v59  ;;  %2385 = vst.msk [vmem:[#allocation2 + $0x2b0] sm:$0xff] %vm1314_vm9, %v2356_v59  ;;  %3061 = vmatpush3.msra.mxu0 %v2514_v44  ;;  %3078 = vmatprep.mubr.msk.f32.mxu0 %vm4551_vm8, %v3122_v10  ;;  %vm4552_vm9 = vcmp.eq.s32.totalorder %v3641_v32, 1 }
 0x5e5   :  { %2384 = vst [vmem:[#allocation2 + $0x2a8] sm:$0xff] %v2364_v48  ;;  %2747 = vmatprep.subr.mxu1 %v2364_v48  ;;  %3062 = vmatprep.subr.mxu0 %v3122_v10  ;;  %vm4564_vm8 = vmmov %vm4552_vm9 }
 0x5e6   :  { %2748 = vmatpush1.msra.mxu1 %v2363_v3 }
 0x5e7   :  { %v4379_v6 = vpop.permute.xlu0 %2062  ;;  %v2309_v11 = vpop.permute.xlu1 %2308 }
 0x5e8   :  { %v2317_v57 = vsel %vm1217_vm10, %v2307_v27, %v2309_v11  ;;  %2338 = vst.msk [vmem:[#allocation2 + $0x258] sm:$0xff] %vm1217_vm10, %v2309_v11  ;;  %vm4556_vm10 = vmmov %vm4550_vm13 }
 0x5e9   :  { %2337 = vst [vmem:[#allocation2 + $0x250] sm:$0xff] %v2317_v57  ;;  %2749 = vmatprep.subr.mxu1 %v2317_v57 }
 0x5ea   :  { %2750 = vmatpush1.msra.mxu1 %v2316_v50 }
 0x5eb   :  { %v2112_v2 = vpop.permute.xlu0 %2111  ;;  %v2262_v46 = vpop.permute.xlu1 %2261  ;;  %v2505_v51 = vld [vmem:[#allocation2 + $0x2b0] sm:$0xff] }
 0x5ec   :  { %v2270_v55 = vsel %vm1120_vm11, %v2260_v36, %v2262_v46  ;;  %2291 = vst.msk [vmem:[#allocation2 + $0x200] sm:$0xff] %vm1120_vm11, %v2262_v46  ;;  %3063 = vmatpush3.msra.mxu0 %v2505_v51  ;;  %vm4557_vm11 = vmmov %vm4549_vm12 }
 0x5ed   :  { %2290 = vst [vmem:[#allocation2 + $0x1f8] sm:$0xff] %v2270_v55  ;;  %3064 = vmatprep.subr.mxu0 %v3122_v10  ;;  %2751 = vmatprep.subr.mxu1 %v2270_v55  ;;  %vm4562_vm12 = vmmov %vm4556_vm10 }
 0x5ee   :  { %2752 = vmatpush1.msra.mxu1 %v2269_v54  ;;  %vm4563_vm13 = vmmov %vm4557_vm11 }
 0x5ef   :  { %v2204_v24 = vpop.permute.xlu1 %2203  ;;  %v2496_v12 = vld [vmem:[#allocation2 + $0x258] sm:$0xff]  ;;  %3117 = vmatprep.subr.msk.mxu1 %vm4552_vm9, %v2028_v60 }
 0x5f0   :  { %v2213_v9 = vsel %vm92_vm4, %v2202_v26, %v2204_v24  ;;  %v2214_v17 = vsel %vm92_vm4, %v2204_v24, %v2206_v56  ;;  %3065 = vmatpush3.msra.mxu0 %v2496_v12  ;;  %3118 = vmatpush1.msk.msra.mxu1 %vm648_vm14, %v2027_v25  ;;  %vm4553_vm4 = vcmp.eq.s32.totalorder %v3653_v37, 1 }
 0x5f1   :  { %2233 = vst [vmem:[#allocation2 + $0x148] sm:$0xff] %v2213_v9  ;;  %2234 = vst [vmem:[#allocation2 + $0x150] sm:$0xff] %v2214_v17  ;;  %3066 = vmatprep.subr.mxu0 %v3122_v10  ;;  %2755 = vmatprep.subr.mxu1 %v2213_v9 }
 0x5f2   :  { %2756 = vmatpush1.msra.mxu1 %v4353_v41 }
 0x5f3   :  { %v2157_v47 = vpop.permute.xlu1 %2156  ;;  %v2487_v33 = vld [vmem:[#allocation2 + $0x200] sm:$0xff] }
 0x5f4   :  { %v2166_v60 = vsel %vm898_vm15, %v2155_v39, %v2157_v47  ;;  %3067 = vmatpush3.msra.mxu0 %v2487_v33 }
 0x5f5   :  { %2186 = vst [vmem:[#allocation2 + $0xf0] sm:$0xff] %v2166_v60  ;;  %3068 = vmatprep.subr.mxu0 %v3122_v10  ;;  %2757 = vmatprep.subr.mxu1 %v2166_v60 }
 0x5f6   :  { %3119 = vmatpush3.msk.msra.mxu0 %vm4553_vm4, %v2029_v16  ;;  %2758 = vmatpush1.msra.mxu1 %v4358_v42 }
 0x5f7   :  { %v2110_v15 = vpop.permute.xlu1 %2109  ;;  %3070 = vmatprep.subr.mxu0 %v3122_v10 }
 0x5f8   :  { %v2119_v25 = vsel %vm141_vm3, %v2108_v58, %v2110_v15  ;;  %v2120_v22 = vsel %vm141_vm3, %v2110_v15, %v2112_v2  ;;  %3071 = vmatpush3.msra.mxu0 %v2214_v17  ;;  %vm4554_vm3 = vmmov %vm4548_vm5 }
 0x5f9   :  { %2139 = vst [vmem:[#allocation2 + $0x98] sm:$0xff] %v2119_v25  ;;  %2140 = vst [vmem:[#allocation2 + $0xa0] sm:$0xff] %v2120_v22  ;;  %2759 = vmatprep.subr.mxu1 %v2119_v25  ;;  %3072 = vmatprep.subr.mxu0 %v3122_v10 }
 0x5fa   :  { %2760 = vmatpush1.msra.mxu1 %v4366_v5 }
 0x5fb   :  { %v2061_v19 = vpop.permute.xlu1 %2060 }
 0x5fc   :  { %v2071_v16 = vsel %vm190_vm1, %v4363_v4, %v2061_v19  ;;  %v2072_v35 = vsel %vm190_vm1, %v2061_v19, %v4379_v6 }
 0x5fd   :  { %2091 = vst [vmem:[#allocation2 + $0x38] sm:$0xff] %v2071_v16  ;;  %2092 = vst [vmem:[#allocation2 + $0x40] sm:$0xff] %v2072_v35  ;;  %2761 = vmatprep.subr.mxu1 %v2072_v35 }
 0x5fe   :  { %2762 = vmatpush1.msra.mxu1 %v2071_v16 }
 0x5ff   :  { %v2159_v62 = vpop.permute.xlu1 %2158  ;;  %3007 = vmatmul.mubr.msk.f32.vlgmr.msra.gmra.mxu1 %vm1572_vm2, %v4300_v29 }
 0x600   :  { %v2167_v45 = vsel %vm898_vm15, %v2157_v47, %v2159_v62  ;;  %vm4558_vm15 = vmmov %vm4552_vm9 }
 0x601   :  { %2187 = vst [vmem:[#allocation2 + $0xf8] sm:$0xff] %v2167_v45  ;;  %3073 = vmatpush3.msra.mxu0 %v2167_v45 }
 0x602   :  { %3074 = vmatprep.subr.mxu0 %v3122_v10 }
 0x603   :  { %v2065_v53 = vpop.permute.xlu1 %2064  ;;  %3075 = vmatpush3.msra.mxu0 %v2120_v22 }
 0x604   :  { %v2073_v23 = vsel %vm190_vm1, %v4379_v6, %v2065_v53  ;;  %3076 = vmatprep.subr.mxu0 %v3122_v10  ;;  %vm4555_vm1 = vmmov %vm4547_vm7 }
 0x605   :  { %2093 = vst [vmem:[#allocation2 + $0x48] sm:$0xff] %v2073_v23  ;;  %3077 = vmatpush3.msra.mxu0 %v2073_v23  ;;  %vm4560_vm7 = vmmov %vm4554_vm3 }
 0x606   :  { %3079 = vmatmul.mubr.msk.f32.vlgmr.msra.gmra.mxu0 %vm1572_vm2, %v4300_v29  ;;  %vm4559_vm2 = vmmov %vm4553_vm4 }
 0x607   :  { %vm4561_vm5 = vmmov %vm4555_vm1 }
 0x608   :  { %vm4565_vm9 = vmmov %vm4559_vm2 }
 0x609   :  { %vm4566_vm4 = vmmov %vm4554_vm3 }
 0x663   :  { %v2584_v28 = vpop.f32.mrf.mxu0 }
 0x664   :  { %v2872_v3 = vsel %vm642_vm0, %v2584_v28, 0.0 }
 0x665   :  { %v2586_v63 = vpop.f32.mrf.mxu0 }
 0x666   :  { %v2873_v20 = vsel %vm643_vm6, %v2586_v63, 0.0 }
 0x667   :  { %v2881_v40 = vadd.f32 %v2873_v20, %v2872_v3 }
 0x693   :  { %v2655_v27 = vpop.f32.mrf.mxu1 }
 0x694   :  { %v2874_v50 = vsel %vm4554_vm3, %v2655_v27, 0.0  ;;  %vm4567_vm3 = vmmov %vm4555_vm1 }
 0x695   :  { %v2657_v61 = vpop.f32.mrf.mxu1  ;;  %v2882_v10 = vadd.f32 %v2881_v40, %v2874_v50 }
 0x696   :  { %v2875_v34 = vsel %vm4555_vm1, %v2657_v61, 0.0  ;;  %vm4568_vm1 = vmmov %vm4556_vm10 }
 0x697   :  { %v2883_v29 = vadd.f32 %v2882_v10, %v2875_v34  ;;  %v2948_v34 = vld [vmem:[%s4519_s10] sm:$0xff] }
 0x6a3   :  { %v2726_v36 = vpop.f32.mrf.mxu0 }
 0x6a4   :  { %v2876_v21 = vsel %vm4556_vm10, %v2726_v36, 0.0  ;;  %vm4569_vm10 = vmmov %vm4557_vm11 }
 0x6a5   :  { %v2728_v54 = vpop.f32.mrf.mxu0  ;;  %v2884_v30 = vadd.f32 %v2883_v29, %v2876_v21 }
 0x6a6   :  { %v2877_v26 = vsel %vm4557_vm11, %v2728_v54, 0.0 }
 0x6a7   :  { %v2885_v41 = vadd.f32 %v2884_v30, %v2877_v26 }
 0x6bf   :  { %v2797_v7 = vpop.f32.mrf.mxu1 }
 0x6c0   :  { %v2878_v38 = vsel %vm648_vm14, %v2797_v7, 0.0 }
 0x6c1   :  { %v2799_v39 = vpop.f32.mrf.mxu1  ;;  %v2886_v18 = vadd.f32 %v2885_v41, %v2878_v38 }
 0x6c2   :  { %v2879_v42 = vsel %vm4558_vm15, %v2799_v39, 0.0 }
 0x6c3   :  { %v2887_v43 = vadd.f32 %v2886_v18, %v2879_v42 }
 0x6c6   :  { %v2868_v58 = vpop.f32.mrf.mxu0 }
 0x6c7   :  { %v2880_v4 = vsel %vm4559_vm2, %v2868_v58, 0.0 }
 0x6c8   :  { %v2888_v5 = vadd.f32 %v2887_v43, %v2880_v4  ;;  %v3080_v8 = vpop.f32.mrf.mxu0 }
 0x6ca   :  { %2889 = vadd.xlane.f32.xlu0 %v2888_v5 }
 0x753   :  { %v2890_v56 = vpop.xlane.xlu0 %2889 }
 0x754   :  { %v2891_v59 = vmul.f32 0.001953125, %v2890_v56 }
 0x756   :  { %v2892_v44 = vsub.f32 %v2584_v28, %v2891_v59  ;;  %v2893_v48 = vsub.f32 %v2586_v63, %v2891_v59  ;;  %v2894_v6 = vsub.f32 %v2655_v27, %v2891_v59  ;;  %v2895_v11 = vsub.f32 %v2657_v61, %v2891_v59 }
 0x757   :  { %v2896_v46 = vsub.f32 %v2726_v36, %v2891_v59  ;;  %v2897_v12 = vsub.f32 %v2728_v54, %v2891_v59  ;;  %v2898_v47 = vsub.f32 %v2797_v7, %v2891_v59  ;;  %v2899_v25 = vsub.f32 %v2799_v39, %v2891_v59  ;;  %v2930_v54 = vld [vmem:[%s4520_s9] sm:$0xff] }
 0x758   :  { %v2901_v57 = vmul.f32 %v2892_v44, %v2892_v44  ;;  %v2902_v2 = vmul.f32 %v2893_v48, %v2893_v48  ;;  %v2903_v51 = vmul.f32 %v2894_v6, %v2894_v6  ;;  %v2904_v9 = vmul.f32 %v2895_v11, %v2895_v11 }
 0x759   :  { %v2905_v33 = vmul.f32 %v2896_v46, %v2896_v46  ;;  %v2906_v22 = vmul.f32 %v2897_v12, %v2897_v12  ;;  %v2900_v35 = vsub.f32 %v2868_v58, %v2891_v59  ;;  %v2907_v62 = vmul.f32 %v2898_v47, %v2898_v47 }
 0x75a   :  { %v2910_v55 = vsel %vm642_vm0, %v2901_v57, 0.0  ;;  %v2911_v24 = vsel %vm643_vm6, %v2902_v2, 0.0  ;;  %v2912_v60 = vsel %vm4560_vm7, %v2903_v51, 0.0  ;;  %v2913_v19 = vsel %vm4561_vm5, %v2904_v9, 0.0 }
 0x75b   :  { %v2919_v17 = vadd.f32 %v2911_v24, %v2910_v55  ;;  %v2914_v45 = vsel %vm4562_vm12, %v2905_v33, 0.0  ;;  %v2908_v23 = vmul.f32 %v2899_v25, %v2899_v25  ;;  %v2915_v28 = vsel %vm4563_vm13, %v2906_v22, 0.0 }
 0x75c   :  { %v2909_v3 = vmul.f32 %v2900_v35, %v2900_v35  ;;  %v2916_v20 = vsel %vm648_vm14, %v2907_v62, 0.0 }
 0x75d   :  { %v2920_v15 = vadd.f32 %v2919_v17, %v2912_v60  ;;  %v2917_v40 = vsel %vm4564_vm8, %v2908_v23, 0.0 }
 0x75e   :  { %v2918_v61 = vsel %vm4565_vm9, %v2909_v3, 0.0 }
 0x75f   :  { %v2921_v16 = vadd.f32 %v2920_v15, %v2913_v19 }
 0x761   :  { %v2922_v53 = vadd.f32 %v2921_v16, %v2914_v45 }
 0x763   :  { %v2923_v63 = vadd.f32 %v2922_v53, %v2915_v28 }
 0x765   :  { %v2924_v27 = vadd.f32 %v2923_v63, %v2916_v20 }
 0x767   :  { %v2925_v50 = vadd.f32 %v2924_v27, %v2917_v40 }
 0x769   :  { %v2926_v10 = vadd.f32 %v2925_v50, %v2918_v61 }
 0x76b   :  { %2927 = vadd.xlane.f32.xlu1 %v2926_v10 }
 0x77c   :  { %2951 = vperm.xlu1 %3092, %v2948_v34  }
 0x7f4   :  { %v2928_v36 = vpop.xlane.xlu1 %2927 }
 0x7f5   :  { %v2929_v29 = vmul.f32 0.001953125, %v2928_v36 }
 0x7f7   :  { %v2931_v21 = vadd.f32 1e-05, %v2929_v29 }
 0x7f8   :  { %v2952_v42 = vpop.permute.xlu1 %2951 }
 0x7f9   :  { %3109 = vrsqrt.f32 %v2931_v21 }
 0x806   :  { %v3110_v30 = vpop.eup %3109 }
 0x807   :  { %v2933_v26 = vmul.f32 %v3110_v30, %v2930_v54 }
 0x809   :  { %2936 = vperm.xlu0 %3093, %v2933_v26  }
 0x884   :  { %v2937_v7 = vpop.permute.xlu0 %2936 }
 0x885   :  { %v2939_v41 = vmul.f32 %v2937_v7, %v2892_v44  ;;  %v2940_v38 = vmul.f32 %v2937_v7, %v2893_v48  ;;  %v2941_v39 = vmul.f32 %v2937_v7, %v2894_v6  ;;  %v2942_v18 = vmul.f32 %v2937_v7, %v2895_v11 }
 0x886   :  { %v2943_v43 = vmul.f32 %v2937_v7, %v2896_v46  ;;  %v2944_v58 = vmul.f32 %v2937_v7, %v2897_v12  ;;  %v2945_v4 = vmul.f32 %v2937_v7, %v2898_v47  ;;  %v2946_v5 = vmul.f32 %v2937_v7, %v2899_v25 }
 0x887   :  { %v2947_v8 = vmul.f32 %v2937_v7, %v2900_v35  ;;  %v2954_v56 = vadd.f32 %v2952_v42, %v2939_v41  ;;  %v2955_v59 = vadd.f32 %v2952_v42, %v2940_v38  ;;  %v2956_v57 = vadd.f32 %v2952_v42, %v2941_v39 }
 0x888   :  { %v2957_v2 = vadd.f32 %v2952_v42, %v2942_v18  ;;  %v2958_v51 = vadd.f32 %v2952_v42, %v2943_v43  ;;  %v2959_v55 = vadd.f32 %v2952_v42, %v2944_v58  ;;  %v2960_v24 = vadd.f32 %v2952_v42, %v2945_v4 }
 0x889   :  { %v2961_v9 = vadd.f32 %v2952_v42, %v2946_v5  ;;  %v2962_v17 = vadd.f32 %v2952_v42, %v2947_v8  ;;  %v2963_v33 = vmax.f32 %v2954_v56, 0.0  ;;  %v2964_v44 = vmax.f32 %v2955_v59, 0.0 }
 0x88a   :  { %v2965_v48 = vmax.f32 %v2956_v57, 0.0  ;;  %v2966_v6 = vmax.f32 %v2957_v2, 0.0  ;;  %v2967_v11 = vmax.f32 %v2958_v51, 0.0  ;;  %v2968_v60 = vmax.f32 %v2959_v55, 0.0 }
 0x88b   :  { %v2969_v46 = vmax.f32 %v2960_v24, 0.0  ;;  %v2970_v12 = vmax.f32 %v2961_v9, 0.0  ;;  %v2971_v47 = vmax.f32 %v2962_v17, 0.0  ;;  %v2972_v15 = vsel %vm642_vm0, %v2963_v33, 0.0  ;;  %vm4570_vm0 = vmmov %vm4564_vm8 }
 0x88c   :  { %v2973_v25 = vsel %vm643_vm6, %v2964_v44, 0.0  ;;  %v2974_v22 = vsel %vm4566_vm4, %v2965_v48, 0.0  ;;  %v2975_v19 = vsel %vm4567_vm3, %v2966_v6, 0.0  ;;  %v2976_v16 = vsel %vm4568_vm1, %v2967_v11, 0.0  ;;  %2981 = vst [vmem:[%s4521_s11] sm:$0xff] %v2972_v15  ;;  %vm4571_vm6 = vmmov %vm4559_vm2 }
 0x88d   :  { %v2977_v49 = vsel %vm4569_vm10, %v2968_v60, 0.0  ;;  %v2978_v52 = vsel %vm648_vm14, %v2969_v46, 0.0  ;;  %v2979_v0 = vsel %vm4570_vm0, %v2970_v12, 0.0  ;;  %v2980_v1 = vsel %vm4571_vm6, %v2971_v47, 0.0  ;;  %2982 = vst [vmem:[%s4521_s11 + $0x8] sm:$0xff] %v2973_v25  ;;  %2983 = vst [vmem:[%s4521_s11 + $0x10] sm:$0xff] %v2974_v22 }
 0x88e   :  { %2984 = vst [vmem:[%s4521_s11 + $0x18] sm:$0xff] %v2975_v19  ;;  %2985 = vst [vmem:[%s4521_s11 + $0x20] sm:$0xff] %v2976_v16 }
 0x88f   :  { %2986 = vst [vmem:[%s4521_s11 + $0x28] sm:$0xff] %v2977_v49  ;;  %2987 = vst [vmem:[%s4521_s11 + $0x30] sm:$0xff] %v2978_v52 }
 0x890   :  { %2988 = vst [vmem:[%s4521_s11 + $0x38] sm:$0xff] %v2979_v0  ;;  %2989 = vst [vmem:[%s4521_s11 + $0x40] sm:$0xff] %v2980_v1 }

</bundles_post_ra>
